<compile_context>
chip_gen: v5e
topology: v5e:2x2
jax: 0.10.0
libtpu: 0.0.40
codegen_flags: <defaults>
</compile_context>

<pallas_src>
import jax
import jax.numpy as jnp
from jax.experimental import pallas as pl
from jax.experimental.pallas import tpu as pltpu

LEAK = 0.2
BN_EPS = 1e-5
_VMEM_LIMIT = 32 * 1024 * 1024


# ---------------------------------------------------------------- kernels ---

def _l0_kernel(p_ref, w_ref, b_ref, o_ref):
    # conv (bf16 MXU operands, f32 accumulate) + bias + LeakyReLU(0.2)
    y = jnp.dot(p_ref[...], w_ref[...], preferred_element_type=jnp.float32)
    y = y + b_ref[...]
    o_ref[...] = jnp.maximum(y, LEAK * y).astype(o_ref.dtype)


def _conv_bn_lrelu_kernel(p_ref, w_ref, g_ref, bt_ref, o_ref):
    # conv (no bias) -> BatchNorm2d over the full batch (M = N*OH*OW rows
    # resident in VMEM, so the statistics are exact) -> LeakyReLU(0.2).
    y = jnp.dot(p_ref[...], w_ref[...], preferred_element_type=jnp.float32)
    mean = jnp.mean(y, axis=0, keepdims=True)
    var = jnp.mean(jnp.square(y - mean), axis=0, keepdims=True)  # biased var
    z = (y - mean) * jax.lax.rsqrt(var + BN_EPS) * g_ref[...] + bt_ref[...]
    o_ref[...] = jnp.maximum(z, LEAK * z).astype(o_ref.dtype)


def _l3_l4_kernel(p_ref, w3_ref, g_ref, bt_ref, w4_ref, b4_ref, o_ref):
    # layer 3: conv -> BatchNorm (batch stats) -> LeakyReLU, all in VMEM.
    y = jnp.dot(p_ref[...], w3_ref[...], preferred_element_type=jnp.float32)
    mean = jnp.mean(y, axis=0, keepdims=True)
    var = jnp.mean(jnp.square(y - mean), axis=0, keepdims=True)
    z = (y - mean) * jax.lax.rsqrt(var + BN_EPS) * g_ref[...] + bt_ref[...]
    h = jnp.maximum(z, LEAK * z).astype(jnp.bfloat16)   # (n_taps*N, C3)

    # layer 4: 4x4 stride-2 valid conv over layer 3's 4x4 map == weighted
    # sum over the 16 spatial taps.  Rows of `h` are spatial-major
    # (tap p, batch n), so each tap is a contiguous (N, C3) slice.
    n_batch = o_ref.shape[0]
    n_taps = w4_ref.shape[0]
    acc = jnp.zeros((n_batch, 1), jnp.float32)
    for p in range(n_taps):
        acc = acc + jnp.dot(h[p * n_batch:(p + 1) * n_batch, :], w4_ref[p],
                            preferred_element_type=jnp.float32)
    y4 = acc + b4_ref[...]
    # sigmoid(x) = 0.5 * (tanh(x/2) + 1): EUP op, robust for large |x|.
    o_ref[...] = 0.5 * jnp.tanh(0.5 * y4) + 0.5


# ------------------------------------------------------------------- glue ---

def _im2col_nhwc(x, k, s, p, *, spatial_major=False):
    """x: (N, H, W, C) -> bf16 patches (M, k*k*C); feature order (kh, kw, C).

    Row order is (n, oh, ow) by default, or (oh, ow, n) if spatial_major
    (used by the fused layer-3/4 kernel).
    # TODO(synk): build the patch rows inside the kernel (strided ref reads /
    # manual DMA from the activation) to avoid materializing the patch matrix
    # in HBM and to allow fusing layers 1-3 into a single pallas_call.
    """
    N, H, W, C = x.shape
    xp = jnp.pad(x, ((0, 0), (p, p), (p, p), (0, 0)))
    OH = (H + 2 * p - k) // s + 1
    OW = (W + 2 * p - k) // s + 1
    taps = []
    for i in range(k):
        for j in range(k):
            taps.append(xp[:, i:i + s * OH:s, j:j + s * OW:s, :])  # (N,OH,OW,C)
    pm = jnp.concatenate(taps, axis=-1)               # (N, OH, OW, k*k*C)
    if spatial_major:
        pm = jnp.transpose(pm, (1, 2, 0, 3))          # (OH, OW, N, K)
    return pm.reshape(-1, k * k * C).astype(jnp.bfloat16), OH, OW


def _prep_conv_weight(w):
    # PyTorch (Cout, Cin, kh, kw) -> (kh*kw*Cin, Cout) bf16, matching the
    # (kh, kw, C) feature order produced by _im2col_nhwc.
    cout = w.shape[0]
    return jnp.transpose(w, (2, 3, 1, 0)).reshape(-1, cout).astype(jnp.bfloat16)


def _layer0(x_nhwc, w, b, *, tm=512):
    """Conv2d(c, fd, 4, 2, 1) + bias + LeakyReLU, gridded over M rows."""
    N = x_nhwc.shape[0]
    cout = w.shape[0]
    patches, OH, OW = _im2col_nhwc(x_nhwc, 4, 2, 1)
    M, K = patches.shape
    Mp = tm * pl.cdiv(M, tm)
    if Mp != M:                                   # keep the grid divisible
        patches = jnp.pad(patches, ((0, Mp - M), (0, 0)))
    w2d = _prep_conv_weight(w)                    # (K, Cout) bf16
    b2d = b.reshape(1, cout).astype(jnp.float32)

    out = pl.pallas_call(
        _l0_kernel,
        out_shape=jax.ShapeDtypeStruct((Mp, cout), jnp.bfloat16),
        grid=(Mp // tm,),
        in_specs=[
            pl.BlockSpec((tm, K), lambda i: (i, 0)),
            pl.BlockSpec((K, cout), lambda i: (0, 0)),
            pl.BlockSpec((1, cout), lambda i: (0, 0)),
        ],
        out_specs=pl.BlockSpec((tm, cout), lambda i: (i, 0)),
        compiler_params=pltpu.CompilerParams(
            dimension_semantics=("parallel",),
            vmem_limit_bytes=_VMEM_LIMIT),
    )(patches, w2d, b2d)
    return out[:M].reshape(N, OH, OW, cout)       # NHWC, bf16


def _conv_bn_lrelu(h_nhwc, w, gamma, beta):
    """_block(): Conv(no bias) + BatchNorm2d (batch stats) + LeakyReLU."""
    N = h_nhwc.shape[0]
    cout = w.shape[0]
    patches, OH, OW = _im2col_nhwc(h_nhwc, 4, 2, 1)
    w2d = _prep_conv_weight(w)
    g = gamma.reshape(1, cout).astype(jnp.float32)
    bt = beta.reshape(1, cout).astype(jnp.float32)

    vmem = pl.BlockSpec(memory_space=pltpu.MemorySpace.VMEM)
    out = pl.pallas_call(
        _conv_bn_lrelu_kernel,
        out_shape=jax.ShapeDtypeStruct((patches.shape[0], cout), jnp.bfloat16),
        in_specs=[vmem] * 4,
        out_specs=vmem,
        compiler_params=pltpu.CompilerParams(vmem_limit_bytes=_VMEM_LIMIT),
    )(patches, w2d, g, bt)
    return out.reshape(N, OH, OW, cout)           # NHWC, bf16


def _l3_l4(h_nhwc, w3, gamma3, beta3, w4, b4):
    """Fused: _block(fd*4, fd*8) + Conv2d(fd*8, 1, 4, 2, 0) + Sigmoid."""
    N = h_nhwc.shape[0]
    c3 = w3.shape[0]
    # spatial-major rows (tap p, batch n) so layer 4 reads contiguous slices.
    patches, OH, OW = _im2col_nhwc(h_nhwc, 4, 2, 1, spatial_major=True)
    n_taps = OH * OW                              # 16: layer-3 map == 4x4
    w3_2d = _prep_conv_weight(w3)
    g = gamma3.reshape(1, c3).astype(jnp.float32)
    bt = beta3.reshape(1, c3).astype(jnp.float32)
    # layer-4 weight (1, C3, 4, 4) -> (taps, C3, 1), tap index = kh*4 + kw.
    w4_t = jnp.transpose(w4, (2, 3, 1, 0)).reshape(n_taps, c3, 1).astype(jnp.bfloat16)
    b4_2d = b4.reshape(1, 1).astype(jnp.float32)

    vmem = pl.BlockSpec(memory_space=pltpu.MemorySpace.VMEM)
    out = pl.pallas_call(
        _l3_l4_kernel,
        out_shape=jax.ShapeDtypeStruct((N, 1), jnp.float32),
        in_specs=[vmem] * 6,
        out_specs=vmem,
        compiler_params=pltpu.CompilerParams(vmem_limit_bytes=_VMEM_LIMIT),
    )(patches, w3_2d, g, bt, w4_t, b4_2d)
    return out.reshape(N, 1, 1, 1)


# ------------------------------------------------------------ full module ---

def init_discriminator_params(key, c, feats_d):
    params = []
    chans = [c, feats_d, feats_d * 2, feats_d * 4, feats_d * 8, 1]
    keys = jax.random.split(key, 16)
    ki = 0

    def nrm(shape):
        nonlocal ki
        v = 0.05 * jax.random.normal(keys[ki], shape, jnp.float32)
        ki += 1
        return v

    # layer 0: conv(bias) + leaky
    params.append(dict(w=nrm((chans[1], chans[0], 4, 4)), b=nrm((chans[1],))))
    # layers 1..3: conv(no bias) + BN(gamma, beta) + leaky
    for li in range(1, 4):
        params.append(dict(w=nrm((chans[li + 1], chans[li], 4, 4)),
                           gamma=1.0 + nrm((chans[li + 1],)),
                           beta=nrm((chans[li + 1],))))
    # layer 4: conv(bias) + sigmoid
    params.append(dict(w=nrm((chans[5], chans[4], 4, 4)), b=nrm((chans[5],))))
    return params


@jax.jit
def discriminator_forward(params, x_nchw):
    x = jnp.transpose(x_nchw, (0, 2, 3, 1))       # NCHW -> NHWC, once
    # Conv2d(c, fd, 4, 2, 1) + LeakyReLU(0.2)   (gridded over M)
    h = _layer0(x, params[0]["w"], params[0]["b"])
    # two _block()s: Conv(no bias) + BatchNorm2d + LeakyReLU
    for li in (1, 2):
        pr = params[li]
        h = _conv_bn_lrelu(h, pr["w"], pr["gamma"], pr["beta"])
    # fused: third _block() + Conv2d(fd*8, 1, 4, 2, 0) + Sigmoid
    p3, p4 = params[3], params[4]
    return _l3_l4(h, p3["w"], p3["gamma"], p3["beta"], p4["w"], p4["b"])


if __name__ == "__main__":
    key = jax.random.PRNGKey(0)
    k_x, k_p = jax.random.split(key)

    N, C, H, W = 2, 3, 64, 64     # DCGAN discriminator expects 64x64 input
    FEATS_D = 8

    x = jax.random.normal(k_x, (N, C, H, W), jnp.float32)
    params = init_discriminator_params(k_p, C, FEATS_D)

    out = discriminator_forward(params, x)
    out = jax.block_until_ready(out)

    assert out.shape == (N, 1, 1, 1), out.shape
    assert bool(jnp.all(jnp.isfinite(out)))
    assert bool(jnp.all((out >= 0.0) & (out <= 1.0)))
    print("KERNEL_OK")
</pallas_src>

<mosaic_0001>
module attributes {stable_mosaic.version = 11 : i64} {
  func.func @_l0_kernel(%arg0: i32, %arg1: memref<512x48xbf16, #tpu.memory_space<vmem>>, %arg2: memref<48x8xbf16, #tpu.memory_space<vmem>>, %arg3: memref<1x8xf32, #tpu.memory_space<vmem>>, %arg4: memref<512x8xbf16, #tpu.memory_space<vmem>>) attributes {dimension_semantics = [#tpu.dimension_semantics<parallel>], iteration_bounds = array<i64: 4>, scalar_prefetch = 0 : i64, scratch_operands = 0 : i64, tpu.core_type = #tpu.core_type<tc>, window_params = [{transform_indices = @transform_0, window_bounds = array<i64: 512, 48>}, {pipeline_mode = #tpu.pipeline_mode<synchronous>, transform_indices = @transform_1, window_bounds = array<i64: 48, 8>}, {pipeline_mode = #tpu.pipeline_mode<synchronous>, transform_indices = @transform_2, window_bounds = array<i64: 1, 8>}, {transform_indices = @transform_3, window_bounds = array<i64: 512, 8>}]} {
    %c0 = arith.constant 0 : index
    %c0_0 = arith.constant 0 : index
    %0 = vector.load %arg1[%c0, %c0_0] : memref<512x48xbf16, #tpu.memory_space<vmem>>, vector<512x48xbf16>
    %c0_1 = arith.constant 0 : index
    %c0_2 = arith.constant 0 : index
    %1 = vector.load %arg2[%c0_1, %c0_2] : memref<48x8xbf16, #tpu.memory_space<vmem>>, vector<48x8xbf16>
    %cst = arith.constant dense<0.000000e+00> : vector<512x8xf32>
    %2 = tpu.matmul %0, %1, %cst {dimension_numbers = #tpu.dot_dimension_numbers<[1], [0], [0], [1], [0, 0, 1, 1], [], []>} : vector<512x48xbf16>, vector<48x8xbf16>, vector<512x8xf32> -> vector<512x8xf32>
    %c0_3 = arith.constant 0 : index
    %c0_4 = arith.constant 0 : index
    %3 = vector.load %arg3[%c0_3, %c0_4] : memref<1x8xf32, #tpu.memory_space<vmem>>, vector<1x8xf32>
    %4 = vector.broadcast %3 : vector<1x8xf32> to vector<512x8xf32>
    %5 = arith.addf %2, %4 : vector<512x8xf32>
    %cst_5 = arith.constant 2.000000e-01 : f32
    %6 = vector.broadcast %cst_5 : f32 to vector<512x8xf32>
    %7 = arith.mulf %6, %5 : vector<512x8xf32>
    %8 = arith.maximumf %5, %7 : vector<512x8xf32>
    %9 = arith.truncf %8 : vector<512x8xf32> to vector<512x8xbf16>
    %c0_6 = arith.constant 0 : index
    %c0_7 = arith.constant 0 : index
    %10 = vector.load %arg4[%c0_6, %c0_7] : memref<512x8xbf16, #tpu.memory_space<vmem>>, vector<512x8xbf16>
    tpu.vector_store %arg4[%c0_6, %c0_7], %9 {strides = array<i32>} : memref<512x8xbf16, #tpu.memory_space<vmem>>, vector<512x8xbf16>,
    return
  }
  func.func @transform_0(%arg0: i32) -> (i32, i32) {
    %c0_i32 = arith.constant 0 : i32
    %c0_i32_0 = arith.constant 0 : i32
    return %arg0, %c0_i32 : i32, i32
  }
  func.func @transform_1(%arg0: i32) -> (i32, i32) {
    %c0_i32 = arith.constant 0 : i32
    %c0_i32_0 = arith.constant 0 : i32
    %c0_i32_1 = arith.constant 0 : i32
    return %c0_i32, %c0_i32_0 : i32, i32
  }
  func.func @transform_2(%arg0: i32) -> (i32, i32) {
    %c0_i32 = arith.constant 0 : i32
    %c0_i32_0 = arith.constant 0 : i32
    %c0_i32_1 = arith.constant 0 : i32
    return %c0_i32, %c0_i32_0 : i32, i32
  }
  func.func @transform_3(%arg0: i32) -> (i32, i32) {
    %c0_i32 = arith.constant 0 : i32
    %c0_i32_0 = arith.constant 0 : i32
    return %arg0, %c0_i32 : i32, i32
  }
}

module attributes {stable_mosaic.version = 11 : i64} {
  func.func @_conv_bn_lrelu_kernel(%arg0: memref<512x128xbf16, #tpu.memory_space<vmem>>, %arg1: memref<128x16xbf16, #tpu.memory_space<vmem>>, %arg2: memref<1x16xf32, #tpu.memory_space<vmem>>, %arg3: memref<1x16xf32, #tpu.memory_space<vmem>>, %arg4: memref<512x16xbf16, #tpu.memory_space<vmem>>) attributes {dimension_semantics = [], scalar_prefetch = 0 : i64, scratch_operands = 0 : i64, tpu.core_type = #tpu.core_type<tc>} {
    %c0 = arith.constant 0 : index
    %c0_0 = arith.constant 0 : index
    %0 = vector.load %arg0[%c0, %c0_0] : memref<512x128xbf16, #tpu.memory_space<vmem>>, vector<512x128xbf16>
    %c0_1 = arith.constant 0 : index
    %c0_2 = arith.constant 0 : index
    %1 = vector.load %arg1[%c0_1, %c0_2] : memref<128x16xbf16, #tpu.memory_space<vmem>>, vector<128x16xbf16>
    %cst = arith.constant dense<0.000000e+00> : vector<512x16xf32>
    %2 = tpu.matmul %0, %1, %cst {dimension_numbers = #tpu.dot_dimension_numbers<[1], [0], [0], [1], [0, 0, 1, 1], [], []>} : vector<512x128xbf16>, vector<128x16xbf16>, vector<512x16xf32> -> vector<512x16xf32>
    %cst_3 = arith.constant dense<0.000000e+00> : vector<16xf32>
    %3 = vector.multi_reduction <add>, %2, %cst_3 [0] : vector<512x16xf32> to vector<16xf32>
    %4 = vector.shape_cast %3 : vector<16xf32> to vector<1x16xf32>
    %cst_4 = arith.constant 5.120000e+02 : f32
    %5 = vector.broadcast %cst_4 : f32 to vector<1x16xf32>
    %6 = arith.divf %4, %5 : vector<1x16xf32>
    %7 = vector.broadcast %6 : vector<1x16xf32> to vector<512x16xf32>
    %8 = arith.subf %2, %7 : vector<512x16xf32>
    %9 = arith.mulf %8, %8 : vector<512x16xf32>
    %cst_5 = arith.constant dense<0.000000e+00> : vector<16xf32>
    %10 = vector.multi_reduction <add>, %9, %cst_5 [0] : vector<512x16xf32> to vector<16xf32>
    %11 = vector.shape_cast %10 : vector<16xf32> to vector<1x16xf32>
    %cst_6 = arith.constant 5.120000e+02 : f32
    %12 = vector.broadcast %cst_6 : f32 to vector<1x16xf32>
    %13 = arith.divf %11, %12 : vector<1x16xf32>
    %14 = vector.broadcast %6 : vector<1x16xf32> to vector<512x16xf32>
    %15 = arith.subf %2, %14 : vector<512x16xf32>
    %cst_7 = arith.constant 9.99999974E-6 : f32
    %16 = vector.broadcast %cst_7 : f32 to vector<1x16xf32>
    %17 = arith.addf %13, %16 : vector<1x16xf32>
    %18 = math.rsqrt %17 : vector<1x16xf32>
    %19 = vector.broadcast %18 : vector<1x16xf32> to vector<512x16xf32>
    %20 = arith.mulf %15, %19 : vector<512x16xf32>
    %c0_8 = arith.constant 0 : index
    %c0_9 = arith.constant 0 : index
    %21 = vector.load %arg2[%c0_8, %c0_9] : memref<1x16xf32, #tpu.memory_space<vmem>>, vector<1x16xf32>
    %22 = vector.broadcast %21 : vector<1x16xf32> to vector<512x16xf32>
    %23 = arith.mulf %20, %22 : vector<512x16xf32>
    %c0_10 = arith.constant 0 : index
    %c0_11 = arith.constant 0 : index
    %24 = vector.load %arg3[%c0_10, %c0_11] : memref<1x16xf32, #tpu.memory_space<vmem>>, vector<1x16xf32>
    %25 = vector.broadcast %24 : vector<1x16xf32> to vector<512x16xf32>
    %26 = arith.addf %23, %25 : vector<512x16xf32>
    %cst_12 = arith.constant 2.000000e-01 : f32
    %27 = vector.broadcast %cst_12 : f32 to vector<512x16xf32>
    %28 = arith.mulf %27, %26 : vector<512x16xf32>
    %29 = arith.maximumf %26, %28 : vector<512x16xf32>
    %30 = arith.truncf %29 : vector<512x16xf32> to vector<512x16xbf16>
    %c0_13 = arith.constant 0 : index
    %c0_14 = arith.constant 0 : index
    %31 = vector.load %arg4[%c0_13, %c0_14] : memref<512x16xbf16, #tpu.memory_space<vmem>>, vector<512x16xbf16>
    tpu.vector_store %arg4[%c0_13, %c0_14], %30 {strides = array<i32>} : memref<512x16xbf16, #tpu.memory_space<vmem>>, vector<512x16xbf16>,
    return
  }
}

module attributes {stable_mosaic.version = 11 : i64} {
  func.func @_conv_bn_lrelu_kernel(%arg0: memref<128x256xbf16, #tpu.memory_space<vmem>>, %arg1: memref<256x32xbf16, #tpu.memory_space<vmem>>, %arg2: memref<1x32xf32, #tpu.memory_space<vmem>>, %arg3: memref<1x32xf32, #tpu.memory_space<vmem>>, %arg4: memref<128x32xbf16, #tpu.memory_space<vmem>>) attributes {dimension_semantics = [], scalar_prefetch = 0 : i64, scratch_operands = 0 : i64, tpu.core_type = #tpu.core_type<tc>} {
    %c0 = arith.constant 0 : index
    %c0_0 = arith.constant 0 : index
    %0 = vector.load %arg0[%c0, %c0_0] : memref<128x256xbf16, #tpu.memory_space<vmem>>, vector<128x256xbf16>
    %c0_1 = arith.constant 0 : index
    %c0_2 = arith.constant 0 : index
    %1 = vector.load %arg1[%c0_1, %c0_2] : memref<256x32xbf16, #tpu.memory_space<vmem>>, vector<256x32xbf16>
    %cst = arith.constant dense<0.000000e+00> : vector<128x32xf32>
    %2 = tpu.matmul %0, %1, %cst {dimension_numbers = #tpu.dot_dimension_numbers<[1], [0], [0], [1], [0, 0, 1, 1], [], []>} : vector<128x256xbf16>, vector<256x32xbf16>, vector<128x32xf32> -> vector<128x32xf32>
    %cst_3 = arith.constant dense<0.000000e+00> : vector<32xf32>
    %3 = vector.multi_reduction <add>, %2, %cst_3 [0] : vector<128x32xf32> to vector<32xf32>
    %4 = vector.shape_cast %3 : vector<32xf32> to vector<1x32xf32>
    %cst_4 = arith.constant 1.280000e+02 : f32
    %5 = vector.broadcast %cst_4 : f32 to vector<1x32xf32>
    %6 = arith.divf %4, %5 : vector<1x32xf32>
    %7 = vector.broadcast %6 : vector<1x32xf32> to vector<128x32xf32>
    %8 = arith.subf %2, %7 : vector<128x32xf32>
    %9 = arith.mulf %8, %8 : vector<128x32xf32>
    %cst_5 = arith.constant dense<0.000000e+00> : vector<32xf32>
    %10 = vector.multi_reduction <add>, %9, %cst_5 [0] : vector<128x32xf32> to vector<32xf32>
    %11 = vector.shape_cast %10 : vector<32xf32> to vector<1x32xf32>
    %cst_6 = arith.constant 1.280000e+02 : f32
    %12 = vector.broadcast %cst_6 : f32 to vector<1x32xf32>
    %13 = arith.divf %11, %12 : vector<1x32xf32>
    %14 = vector.broadcast %6 : vector<1x32xf32> to vector<128x32xf32>
    %15 = arith.subf %2, %14 : vector<128x32xf32>
    %cst_7 = arith.constant 9.99999974E-6 : f32
    %16 = vector.broadcast %cst_7 : f32 to vector<1x32xf32>
    %17 = arith.addf %13, %16 : vector<1x32xf32>
    %18 = math.rsqrt %17 : vector<1x32xf32>
    %19 = vector.broadcast %18 : vector<1x32xf32> to vector<128x32xf32>
    %20 = arith.mulf %15, %19 : vector<128x32xf32>
    %c0_8 = arith.constant 0 : index
    %c0_9 = arith.constant 0 : index
    %21 = vector.load %arg2[%c0_8, %c0_9] : memref<1x32xf32, #tpu.memory_space<vmem>>, vector<1x32xf32>
    %22 = vector.broadcast %21 : vector<1x32xf32> to vector<128x32xf32>
    %23 = arith.mulf %20, %22 : vector<128x32xf32>
    %c0_10 = arith.constant 0 : index
    %c0_11 = arith.constant 0 : index
    %24 = vector.load %arg3[%c0_10, %c0_11] : memref<1x32xf32, #tpu.memory_space<vmem>>, vector<1x32xf32>
    %25 = vector.broadcast %24 : vector<1x32xf32> to vector<128x32xf32>
    %26 = arith.addf %23, %25 : vector<128x32xf32>
    %cst_12 = arith.constant 2.000000e-01 : f32
    %27 = vector.broadcast %cst_12 : f32 to vector<128x32xf32>
    %28 = arith.mulf %27, %26 : vector<128x32xf32>
    %29 = arith.maximumf %26, %28 : vector<128x32xf32>
    %30 = arith.truncf %29 : vector<128x32xf32> to vector<128x32xbf16>
    %c0_13 = arith.constant 0 : index
    %c0_14 = arith.constant 0 : index
    %31 = vector.load %arg4[%c0_13, %c0_14] : memref<128x32xbf16, #tpu.memory_space<vmem>>, vector<128x32xbf16>
    tpu.vector_store %arg4[%c0_13, %c0_14], %30 {strides = array<i32>} : memref<128x32xbf16, #tpu.memory_space<vmem>>, vector<128x32xbf16>,
    return
  }
}

module attributes {stable_mosaic.version = 11 : i64} {
  func.func @_l3_l4_kernel(%arg0: memref<32x512xbf16, #tpu.memory_space<vmem>>, %arg1: memref<512x64xbf16, #tpu.memory_space<vmem>>, %arg2: memref<1x64xf32, #tpu.memory_space<vmem>>, %arg3: memref<1x64xf32, #tpu.memory_space<vmem>>, %arg4: memref<16x64x1xbf16, #tpu.memory_space<vmem>>, %arg5: memref<1x1xf32, #tpu.memory_space<vmem>>, %arg6: memref<2x1xf32, #tpu.memory_space<vmem>>) attributes {dimension_semantics = [], scalar_prefetch = 0 : i64, scratch_operands = 0 : i64, tpu.core_type = #tpu.core_type<tc>} {
    %c0 = arith.constant 0 : index
    %c0_0 = arith.constant 0 : index
    %0 = vector.load %arg0[%c0, %c0_0] : memref<32x512xbf16, #tpu.memory_space<vmem>>, vector<32x512xbf16>
    %c0_1 = arith.constant 0 : index
    %c0_2 = arith.constant 0 : index
    %1 = vector.load %arg1[%c0_1, %c0_2] : memref<512x64xbf16, #tpu.memory_space<vmem>>, vector<512x64xbf16>
    %cst = arith.constant dense<0.000000e+00> : vector<32x64xf32>
    %2 = tpu.matmul %0, %1, %cst {dimension_numbers = #tpu.dot_dimension_numbers<[1], [0], [0], [1], [0, 0, 1, 1], [], []>} : vector<32x512xbf16>, vector<512x64xbf16>, vector<32x64xf32> -> vector<32x64xf32>
    %cst_3 = arith.constant dense<0.000000e+00> : vector<64xf32>
    %3 = vector.multi_reduction <add>, %2, %cst_3 [0] : vector<32x64xf32> to vector<64xf32>
    %4 = vector.shape_cast %3 : vector<64xf32> to vector<1x64xf32>
    %cst_4 = arith.constant 3.200000e+01 : f32
    %5 = vector.broadcast %cst_4 : f32 to vector<1x64xf32>
    %6 = arith.divf %4, %5 : vector<1x64xf32>
    %7 = vector.broadcast %6 : vector<1x64xf32> to vector<32x64xf32>
    %8 = arith.subf %2, %7 : vector<32x64xf32>
    %9 = arith.mulf %8, %8 : vector<32x64xf32>
    %cst_5 = arith.constant dense<0.000000e+00> : vector<64xf32>
    %10 = vector.multi_reduction <add>, %9, %cst_5 [0] : vector<32x64xf32> to vector<64xf32>
    %11 = vector.shape_cast %10 : vector<64xf32> to vector<1x64xf32>
    %cst_6 = arith.constant 3.200000e+01 : f32
    %12 = vector.broadcast %cst_6 : f32 to vector<1x64xf32>
    %13 = arith.divf %11, %12 : vector<1x64xf32>
    %14 = vector.broadcast %6 : vector<1x64xf32> to vector<32x64xf32>
    %15 = arith.subf %2, %14 : vector<32x64xf32>
    %cst_7 = arith.constant 9.99999974E-6 : f32
    %16 = vector.broadcast %cst_7 : f32 to vector<1x64xf32>
    %17 = arith.addf %13, %16 : vector<1x64xf32>
    %18 = math.rsqrt %17 : vector<1x64xf32>
    %19 = vector.broadcast %18 : vector<1x64xf32> to vector<32x64xf32>
    %20 = arith.mulf %15, %19 : vector<32x64xf32>
    %c0_8 = arith.constant 0 : index
    %c0_9 = arith.constant 0 : index
    %21 = vector.load %arg2[%c0_8, %c0_9] : memref<1x64xf32, #tpu.memory_space<vmem>>, vector<1x64xf32>
    %22 = vector.broadcast %21 : vector<1x64xf32> to vector<32x64xf32>
    %23 = arith.mulf %20, %22 : vector<32x64xf32>
    %c0_10 = arith.constant 0 : index
    %c0_11 = arith.constant 0 : index
    %24 = vector.load %arg3[%c0_10, %c0_11] : memref<1x64xf32, #tpu.memory_space<vmem>>, vector<1x64xf32>
    %25 = vector.broadcast %24 : vector<1x64xf32> to vector<32x64xf32>
    %26 = arith.addf %23, %25 : vector<32x64xf32>
    %cst_12 = arith.constant 2.000000e-01 : f32
    %27 = vector.broadcast %cst_12 : f32 to vector<32x64xf32>
    %28 = arith.mulf %27, %26 : vector<32x64xf32>
    %29 = arith.maximumf %26, %28 : vector<32x64xf32>
    %30 = arith.truncf %29 : vector<32x64xf32> to vector<32x64xbf16>
    %cst_13 = arith.constant 0.000000e+00 : f32
    %31 = vector.broadcast %cst_13 : f32 to vector<2x1xf32>
    %32 = vector.extract_strided_slice %30 {offsets = [0, 0], sizes = [2, 64], strides = [1, 1]} : vector<32x64xbf16> to vector<2x64xbf16>
    %c0_14 = arith.constant 0 : index
    %c0_15 = arith.constant 0 : index
    %c0_16 = arith.constant 0 : index
    %33 = vector.load %arg4[%c0_14, %c0_15, %c0_16] : memref<16x64x1xbf16, #tpu.memory_space<vmem>>, vector<1x64x1xbf16>
    %34 = vector.shape_cast %33 : vector<1x64x1xbf16> to vector<64x1xbf16>
    %cst_17 = arith.constant dense<0.000000e+00> : vector<2x1xf32>
    %35 = tpu.matmul %32, %34, %cst_17 {dimension_numbers = #tpu.dot_dimension_numbers<[1], [0], [0], [1], [0, 0, 1, 1], [], []>} : vector<2x64xbf16>, vector<64x1xbf16>, vector<2x1xf32> -> vector<2x1xf32>
    %36 = arith.addf %31, %35 : vector<2x1xf32>
    %37 = vector.extract_strided_slice %30 {offsets = [2, 0], sizes = [2, 64], strides = [1, 1]} : vector<32x64xbf16> to vector<2x64xbf16>
    %c1 = arith.constant 1 : index
    %c0_18 = arith.constant 0 : index
    %c0_19 = arith.constant 0 : index
    %38 = vector.load %arg4[%c1, %c0_18, %c0_19] : memref<16x64x1xbf16, #tpu.memory_space<vmem>>, vector<1x64x1xbf16>
    %39 = vector.shape_cast %38 : vector<1x64x1xbf16> to vector<64x1xbf16>
    %cst_20 = arith.constant dense<0.000000e+00> : vector<2x1xf32>
    %40 = tpu.matmul %37, %39, %cst_20 {dimension_numbers = #tpu.dot_dimension_numbers<[1], [0], [0], [1], [0, 0, 1, 1], [], []>} : vector<2x64xbf16>, vector<64x1xbf16>, vector<2x1xf32> -> vector<2x1xf32>
    %41 = arith.addf %36, %40 : vector<2x1xf32>
    %42 = vector.extract_strided_slice %30 {offsets = [4, 0], sizes = [2, 64], strides = [1, 1]} : vector<32x64xbf16> to vector<2x64xbf16>
    %c2 = arith.constant 2 : index
    %c0_21 = arith.constant 0 : index
    %c0_22 = arith.constant 0 : index
    %43 = vector.load %arg4[%c2, %c0_21, %c0_22] : memref<16x64x1xbf16, #tpu.memory_space<vmem>>, vector<1x64x1xbf16>
    %44 = vector.shape_cast %43 : vector<1x64x1xbf16> to vector<64x1xbf16>
    %cst_23 = arith.constant dense<0.000000e+00> : vector<2x1xf32>
    %45 = tpu.matmul %42, %44, %cst_23 {dimension_numbers = #tpu.dot_dimension_numbers<[1], [0], [0], [1], [0, 0, 1, 1], [], []>} : vector<2x64xbf16>, vector<64x1xbf16>, vector<2x1xf32> -> vector<2x1xf32>
    %46 = arith.addf %41, %45 : vector<2x1xf32>
    %47 = vector.extract_strided_slice %30 {offsets = [6, 0], sizes = [2, 64], strides = [1, 1]} : vector<32x64xbf16> to vector<2x64xbf16>
    %c3 = arith.constant 3 : index
    %c0_24 = arith.constant 0 : index
    %c0_25 = arith.constant 0 : index
    %48 = vector.load %arg4[%c3, %c0_24, %c0_25] : memref<16x64x1xbf16, #tpu.memory_space<vmem>>, vector<1x64x1xbf16>
    %49 = vector.shape_cast %48 : vector<1x64x1xbf16> to vector<64x1xbf16>
    %cst_26 = arith.constant dense<0.000000e+00> : vector<2x1xf32>
    %50 = tpu.matmul %47, %49, %cst_26 {dimension_numbers = #tpu.dot_dimension_numbers<[1], [0], [0], [1], [0, 0, 1, 1], [], []>} : vector<2x64xbf16>, vector<64x1xbf16>, vector<2x1xf32> -> vector<2x1xf32>
    %51 = arith.addf %46, %50 : vector<2x1xf32>
    %52 = vector.extract_strided_slice %30 {offsets = [8, 0], sizes = [2, 64], strides = [1, 1]} : vector<32x64xbf16> to vector<2x64xbf16>
    %c4 = arith.constant 4 : index
    %c0_27 = arith.constant 0 : index
    %c0_28 = arith.constant 0 : index
    %53 = vector.load %arg4[%c4, %c0_27, %c0_28] : memref<16x64x1xbf16, #tpu.memory_space<vmem>>, vector<1x64x1xbf16>
    %54 = vector.shape_cast %53 : vector<1x64x1xbf16> to vector<64x1xbf16>
    %cst_29 = arith.constant dense<0.000000e+00> : vector<2x1xf32>
    %55 = tpu.matmul %52, %54, %cst_29 {dimension_numbers = #tpu.dot_dimension_numbers<[1], [0], [0], [1], [0, 0, 1, 1], [], []>} : vector<2x64xbf16>, vector<64x1xbf16>, vector<2x1xf32> -> vector<2x1xf32>
    %56 = arith.addf %51, %55 : vector<2x1xf32>
    %57 = vector.extract_strided_slice %30 {offsets = [10, 0], sizes = [2, 64], strides = [1, 1]} : vector<32x64xbf16> to vector<2x64xbf16>
    %c5 = arith.constant 5 : index
    %c0_30 = arith.constant 0 : index
    %c0_31 = arith.constant 0 : index
    %58 = vector.load %arg4[%c5, %c0_30, %c0_31] : memref<16x64x1xbf16, #tpu.memory_space<vmem>>, vector<1x64x1xbf16>
    %59 = vector.shape_cast %58 : vector<1x64x1xbf16> to vector<64x1xbf16>
    %cst_32 = arith.constant dense<0.000000e+00> : vector<2x1xf32>
    %60 = tpu.matmul %57, %59, %cst_32 {dimension_numbers = #tpu.dot_dimension_numbers<[1], [0], [0], [1], [0, 0, 1, 1], [], []>} : vector<2x64xbf16>, vector<64x1xbf16>, vector<2x1xf32> -> vector<2x1xf32>
    %61 = arith.addf %56, %60 : vector<2x1xf32>
    %62 = vector.extract_strided_slice %30 {offsets = [12, 0], sizes = [2, 64], strides = [1, 1]} : vector<32x64xbf16> to vector<2x64xbf16>
    %c6 = arith.constant 6 : index
    %c0_33 = arith.constant 0 : index
    %c0_34 = arith.constant 0 : index
    %63 = vector.load %arg4[%c6, %c0_33, %c0_34] : memref<16x64x1xbf16, #tpu.memory_space<vmem>>, vector<1x64x1xbf16>
    %64 = vector.shape_cast %63 : vector<1x64x1xbf16> to vector<64x1xbf16>
    %cst_35 = arith.constant dense<0.000000e+00> : vector<2x1xf32>
    %65 = tpu.matmul %62, %64, %cst_35 {dimension_numbers = #tpu.dot_dimension_numbers<[1], [0], [0], [1], [0, 0, 1, 1], [], []>} : vector<2x64xbf16>, vector<64x1xbf16>, vector<2x1xf32> -> vector<2x1xf32>
    %66 = arith.addf %61, %65 : vector<2x1xf32>
    %67 = vector.extract_strided_slice %30 {offsets = [14, 0], sizes = [2, 64], strides = [1, 1]} : vector<32x64xbf16> to vector<2x64xbf16>
    %c7 = arith.constant 7 : index
    %c0_36 = arith.constant 0 : index
    %c0_37 = arith.constant 0 : index
    %68 = vector.load %arg4[%c7, %c0_36, %c0_37] : memref<16x64x1xbf16, #tpu.memory_space<vmem>>, vector<1x64x1xbf16>
    %69 = vector.shape_cast %68 : vector<1x64x1xbf16> to vector<64x1xbf16>
    %cst_38 = arith.constant dense<0.000000e+00> : vector<2x1xf32>
    %70 = tpu.matmul %67, %69, %cst_38 {dimension_numbers = #tpu.dot_dimension_numbers<[1], [0], [0], [1], [0, 0, 1, 1], [], []>} : vector<2x64xbf16>, vector<64x1xbf16>, vector<2x1xf32> -> vector<2x1xf32>
    %71 = arith.addf %66, %70 : vector<2x1xf32>
    %72 = vector.extract_strided_slice %30 {offsets = [16, 0], sizes = [2, 64], strides = [1, 1]} : vector<32x64xbf16> to vector<2x64xbf16>
    %c8 = arith.constant 8 : index
    %c0_39 = arith.constant 0 : index
    %c0_40 = arith.constant 0 : index
    %73 = vector.load %arg4[%c8, %c0_39, %c0_40] : memref<16x64x1xbf16, #tpu.memory_space<vmem>>, vector<1x64x1xbf16>
    %74 = vector.shape_cast %73 : vector<1x64x1xbf16> to vector<64x1xbf16>
    %cst_41 = arith.constant dense<0.000000e+00> : vector<2x1xf32>
    %75 = tpu.matmul %72, %74, %cst_41 {dimension_numbers = #tpu.dot_dimension_numbers<[1], [0], [0], [1], [0, 0, 1, 1], [], []>} : vector<2x64xbf16>, vector<64x1xbf16>, vector<2x1xf32> -> vector<2x1xf32>
    %76 = arith.addf %71, %75 : vector<2x1xf32>
    %77 = vector.extract_strided_slice %30 {offsets = [18, 0], sizes = [2, 64], strides = [1, 1]} : vector<32x64xbf16> to vector<2x64xbf16>
    %c9 = arith.constant 9 : index
    %c0_42 = arith.constant 0 : index
    %c0_43 = arith.constant 0 : index
    %78 = vector.load %arg4[%c9, %c0_42, %c0_43] : memref<16x64x1xbf16, #tpu.memory_space<vmem>>, vector<1x64x1xbf16>
    %79 = vector.shape_cast %78 : vector<1x64x1xbf16> to vector<64x1xbf16>
    %cst_44 = arith.constant dense<0.000000e+00> : vector<2x1xf32>
    %80 = tpu.matmul %77, %79, %cst_44 {dimension_numbers = #tpu.dot_dimension_numbers<[1], [0], [0], [1], [0, 0, 1, 1], [], []>} : vector<2x64xbf16>, vector<64x1xbf16>, vector<2x1xf32> -> vector<2x1xf32>
    %81 = arith.addf %76, %80 : vector<2x1xf32>
    %82 = vector.extract_strided_slice %30 {offsets = [20, 0], sizes = [2, 64], strides = [1, 1]} : vector<32x64xbf16> to vector<2x64xbf16>
    %c10 = arith.constant 10 : index
    %c0_45 = arith.constant 0 : index
    %c0_46 = arith.constant 0 : index
    %83 = vector.load %arg4[%c10, %c0_45, %c0_46] : memref<16x64x1xbf16, #tpu.memory_space<vmem>>, vector<1x64x1xbf16>
    %84 = vector.shape_cast %83 : vector<1x64x1xbf16> to vector<64x1xbf16>
    %cst_47 = arith.constant dense<0.000000e+00> : vector<2x1xf32>
    %85 = tpu.matmul %82, %84, %cst_47 {dimension_numbers = #tpu.dot_dimension_numbers<[1], [0], [0], [1], [0, 0, 1, 1], [], []>} : vector<2x64xbf16>, vector<64x1xbf16>, vector<2x1xf32> -> vector<2x1xf32>
    %86 = arith.addf %81, %85 : vector<2x1xf32>
    %87 = vector.extract_strided_slice %30 {offsets = [22, 0], sizes = [2, 64], strides = [1, 1]} : vector<32x64xbf16> to vector<2x64xbf16>
    %c11 = arith.constant 11 : index
    %c0_48 = arith.constant 0 : index
    %c0_49 = arith.constant 0 : index
    %88 = vector.load %arg4[%c11, %c0_48, %c0_49] : memref<16x64x1xbf16, #tpu.memory_space<vmem>>, vector<1x64x1xbf16>
    %89 = vector.shape_cast %88 : vector<1x64x1xbf16> to vector<64x1xbf16>
    %cst_50 = arith.constant dense<0.000000e+00> : vector<2x1xf32>
    %90 = tpu.matmul %87, %89, %cst_50 {dimension_numbers = #tpu.dot_dimension_numbers<[1], [0], [0], [1], [0, 0, 1, 1], [], []>} : vector<2x64xbf16>, vector<64x1xbf16>, vector<2x1xf32> -> vector<2x1xf32>
    %91 = arith.addf %86, %90 : vector<2x1xf32>
    %92 = vector.extract_strided_slice %30 {offsets = [24, 0], sizes = [2, 64], strides = [1, 1]} : vector<32x64xbf16> to vector<2x64xbf16>
    %c12 = arith.constant 12 : index
    %c0_51 = arith.constant 0 : index
    %c0_52 = arith.constant 0 : index
    %93 = vector.load %arg4[%c12, %c0_51, %c0_52] : memref<16x64x1xbf16, #tpu.memory_space<vmem>>, vector<1x64x1xbf16>
    %94 = vector.shape_cast %93 : vector<1x64x1xbf16> to vector<64x1xbf16>
    %cst_53 = arith.constant dense<0.000000e+00> : vector<2x1xf32>
    %95 = tpu.matmul %92, %94, %cst_53 {dimension_numbers = #tpu.dot_dimension_numbers<[1], [0], [0], [1], [0, 0, 1, 1], [], []>} : vector<2x64xbf16>, vector<64x1xbf16>, vector<2x1xf32> -> vector<2x1xf32>
    %96 = arith.addf %91, %95 : vector<2x1xf32>
    %97 = vector.extract_strided_slice %30 {offsets = [26, 0], sizes = [2, 64], strides = [1, 1]} : vector<32x64xbf16> to vector<2x64xbf16>
    %c13 = arith.constant 13 : index
    %c0_54 = arith.constant 0 : index
    %c0_55 = arith.constant 0 : index
    %98 = vector.load %arg4[%c13, %c0_54, %c0_55] : memref<16x64x1xbf16, #tpu.memory_space<vmem>>, vector<1x64x1xbf16>
    %99 = vector.shape_cast %98 : vector<1x64x1xbf16> to vector<64x1xbf16>
    %cst_56 = arith.constant dense<0.000000e+00> : vector<2x1xf32>
    %100 = tpu.matmul %97, %99, %cst_56 {dimension_numbers = #tpu.dot_dimension_numbers<[1], [0], [0], [1], [0, 0, 1, 1], [], []>} : vector<2x64xbf16>, vector<64x1xbf16>, vector<2x1xf32> -> vector<2x1xf32>
    %101 = arith.addf %96, %100 : vector<2x1xf32>
    %102 = vector.extract_strided_slice %30 {offsets = [28, 0], sizes = [2, 64], strides = [1, 1]} : vector<32x64xbf16> to vector<2x64xbf16>
    %c14 = arith.constant 14 : index
    %c0_57 = arith.constant 0 : index
    %c0_58 = arith.constant 0 : index
    %103 = vector.load %arg4[%c14, %c0_57, %c0_58] : memref<16x64x1xbf16, #tpu.memory_space<vmem>>, vector<1x64x1xbf16>
    %104 = vector.shape_cast %103 : vector<1x64x1xbf16> to vector<64x1xbf16>
    %cst_59 = arith.constant dense<0.000000e+00> : vector<2x1xf32>
    %105 = tpu.matmul %102, %104, %cst_59 {dimension_numbers = #tpu.dot_dimension_numbers<[1], [0], [0], [1], [0, 0, 1, 1], [], []>} : vector<2x64xbf16>, vector<64x1xbf16>, vector<2x1xf32> -> vector<2x1xf32>
    %106 = arith.addf %101, %105 : vector<2x1xf32>
    %107 = vector.extract_strided_slice %30 {offsets = [30, 0], sizes = [2, 64], strides = [1, 1]} : vector<32x64xbf16> to vector<2x64xbf16>
    %c15 = arith.constant 15 : index
    %c0_60 = arith.constant 0 : index
    %c0_61 = arith.constant 0 : index
    %108 = vector.load %arg4[%c15, %c0_60, %c0_61] : memref<16x64x1xbf16, #tpu.memory_space<vmem>>, vector<1x64x1xbf16>
    %109 = vector.shape_cast %108 : vector<1x64x1xbf16> to vector<64x1xbf16>
    %cst_62 = arith.constant dense<0.000000e+00> : vector<2x1xf32>
    %110 = tpu.matmul %107, %109, %cst_62 {dimension_numbers = #tpu.dot_dimension_numbers<[1], [0], [0], [1], [0, 0, 1, 1], [], []>} : vector<2x64xbf16>, vector<64x1xbf16>, vector<2x1xf32> -> vector<2x1xf32>
    %111 = arith.addf %106, %110 : vector<2x1xf32>
    %c0_63 = arith.constant 0 : index
    %c0_64 = arith.constant 0 : index
    %112 = vector.load %arg5[%c0_63, %c0_64] : memref<1x1xf32, #tpu.memory_space<vmem>>, vector<1x1xf32>
    %113 = vector.broadcast %112 : vector<1x1xf32> to vector<2x1xf32>
    %114 = arith.addf %111, %113 : vector<2x1xf32>
    %cst_65 = arith.constant 5.000000e-01 : f32
    %115 = vector.broadcast %cst_65 : f32 to vector<2x1xf32>
    %116 = arith.mulf %115, %114 : vector<2x1xf32>
    %117 = math.tanh %116 : vector<2x1xf32>
    %cst_66 = arith.constant 5.000000e-01 : f32
    %118 = vector.broadcast %cst_66 : f32 to vector<2x1xf32>
    %119 = arith.mulf %118, %117 : vector<2x1xf32>
    %cst_67 = arith.constant 5.000000e-01 : f32
    %120 = vector.broadcast %cst_67 : f32 to vector<2x1xf32>
    %121 = arith.addf %119, %120 : vector<2x1xf32>
    %c0_68 = arith.constant 0 : index
    %c0_69 = arith.constant 0 : index
    %122 = vector.load %arg6[%c0_68, %c0_69] : memref<2x1xf32, #tpu.memory_space<vmem>>, vector<2x1xf32>
    tpu.vector_store %arg6[%c0_68, %c0_69], %121 {strides = array<i32>} : memref<2x1xf32, #tpu.memory_space<vmem>>, vector<2x1xf32>,
    return
  }
}

</mosaic_0001>

<bundles_post_ra>
// kernel: discriminator_forward.4
= control target key start
LH: loop header
LB: loop body
LE: loop exit
PB: predicated region body
PF: predicated region fallthrough
CT: control target
= control target key end

     0   :  { %s1270_s12 = smov 0   ;;  %s1568_s0 = inlined_call_operand.vmem [shape: bf16[2048,48], index: 0, kind: input, shape index: {}]   ;;  %s1569_s1 = inlined_call_operand.vmem [shape: bf16[48,8], index: 1, kind: input, shape index: {}]   ;;  %s1570_s2 = inlined_call_operand.vmem [shape: f32[1,8], index: 2, kind: input, shape index: {}]   ;;  %s1571_s3 = inlined_call_operand.vmem [shape: bf16[2048,8], index: 3, kind: output, shape index: {}]  }
   0x1 LB: > { %s1006_s13 = sadd.s32 4294967295, %s1248_s12   ;;  %p1010_p0 = scmp.ge.s32.totalorder %s1248_s12, 1  ;;  %s1248_s12 = sphi %s1270_s12, %s13_s12  }
   0x2   : > { %p138_p1 = scmp.lt.s32.totalorder %s1248_s12, 5 }
   0x4   : > { %p139_p2 = pnand %p1010_p0, %p138_p1 }
   0x5   : > { %s1011_s16 = sshll.u32 (!%p139_p2), %s1006_s13, 6 }
   0x6   : > { %142 = sbr.rel (%p139_p2) target bundleno = 286 (0x11e), region = 32  ;;  %p163_p3 = scmp.lt.s32.totalorder (!%p139_p2), %s1011_s16, 255 }
   0xb   : > { %v1223_v0 = vld [vmem:[%s1569_s1 + $0x10] sm:$0xff]  ;;  %v1222_v1 = vld [vmem:[%s1569_s1 + $0x8] sm:$0xff]  ;;  %s1573_s16 = smov (!%p163_p3, %s1011_s16), 255  ;;  %v1221_v2 = vld [vmem:[%s1569_s1] sm:$0xff]  ;;  %vm427_vm0 = vcmask 392192   ;;  %vm885_vm1 = vcmask 60416  }
   0xc   : > { %529 = vmatpush.bf16.msra.mxu0 %v1223_v0  ;;  %1224 = vmatpush.bf16.msra.mxu1 %v1223_v0  ;;  %s1012_s19 = sshll.u32 %s1573_s16, 2  ;;  %v1364_v35 = vld [vmem:[%s1570_s2] ss:$0 sm:$0xff] }
   0xd   : > { %1225 = vmatpush.bf16.msra.mxu2 %v1223_v0  ;;  %1226 = vmatpush.bf16.msra.mxu3 %v1223_v0  ;;  %s1295_s24 = scalar_lea.vmem %s1568_s0, %s1012_s19  ;;  %s1373_s29 = scalar_lea.vmem %s1571_s3, %s1012_s19 }
   0xe   : > { %v1189_v3 = vld [vmem:[%s1295_s24] sm:$0xff]  ;;  %v1190_v7 = vld [vmem:[%s1295_s24 + $0x8] sm:$0xff]  ;;  %v1191_v11 = vld [vmem:[%s1295_s24 + $0x10] sm:$0xff] }
   0xf   : > { %v1197_v4 = vld [vmem:[%s1295_s24 + $0x40] sm:$0xff]  ;;  %v1198_v8 = vld [vmem:[%s1295_s24 + $0x48] sm:$0xff]  ;;  %v1199_v12 = vld [vmem:[%s1295_s24 + $0x50] sm:$0xff] }
  0x10   : > { %530 = vmatpush.bf16.msra.mxu0 %v1222_v1  ;;  %1227 = vmatpush.bf16.msra.mxu1 %v1222_v1  ;;  %v1205_v5 = vld [vmem:[%s1295_s24 + $0x80] sm:$0xff]  ;;  %v1206_v9 = vld [vmem:[%s1295_s24 + $0x88] sm:$0xff]  ;;  %v1207_v13 = vld [vmem:[%s1295_s24 + $0x90] sm:$0xff] }
  0x11   : > { %1228 = vmatpush.bf16.msra.mxu2 %v1222_v1  ;;  %1229 = vmatpush.bf16.msra.mxu3 %v1222_v1  ;;  %v1213_v6 = vld [vmem:[%s1295_s24 + $0xc0] sm:$0xff]  ;;  %v1214_v10 = vld [vmem:[%s1295_s24 + $0xc8] sm:$0xff]  ;;  %v1215_v14 = vld [vmem:[%s1295_s24 + $0xd0] sm:$0xff] }
  0x12   : > { %v1192_v15 = vld [vmem:[%s1295_s24 + $0x18] sm:$0xff]  ;;  %v1193_v19 = vld [vmem:[%s1295_s24 + $0x20] sm:$0xff]  ;;  %v1194_v23 = vld [vmem:[%s1295_s24 + $0x28] sm:$0xff] }
  0x13   : > { %v1200_v16 = vld [vmem:[%s1295_s24 + $0x58] sm:$0xff]  ;;  %v1201_v20 = vld [vmem:[%s1295_s24 + $0x60] sm:$0xff]  ;;  %v1202_v24 = vld [vmem:[%s1295_s24 + $0x68] sm:$0xff] }
  0x14   : > { %531 = vmatpush.bf16.msra.mxu0 %v1221_v2  ;;  %1230 = vmatpush.bf16.msra.mxu1 %v1221_v2  ;;  %v1208_v17 = vld [vmem:[%s1295_s24 + $0x98] sm:$0xff]  ;;  %v1209_v21 = vld [vmem:[%s1295_s24 + $0xa0] sm:$0xff]  ;;  %v1210_v25 = vld [vmem:[%s1295_s24 + $0xa8] sm:$0xff] }
  0x15   : > { %1231 = vmatpush.bf16.msra.mxu2 %v1221_v2  ;;  %1232 = vmatpush.bf16.msra.mxu3 %v1221_v2  ;;  %v1216_v18 = vld [vmem:[%s1295_s24 + $0xd8] sm:$0xff]  ;;  %v1217_v22 = vld [vmem:[%s1295_s24 + $0xe0] sm:$0xff]  ;;  %v1218_v26 = vld [vmem:[%s1295_s24 + $0xe8] sm:$0xff] }
  0x16   : > { %v1195_v27 = vld [vmem:[%s1295_s24 + $0x30] sm:$0xff]  ;;  %v1196_v31 = vld [vmem:[%s1295_s24 + $0x38] sm:$0xff] }
  0x17   : > { %1155 = vmatmul.msk.bf16.vlgmr.msra.gmra.mxu0 %vm427_vm0, %v1189_v3  ;;  %1163 = vmatmul.msk.bf16.vlgmr.msra.gmra.mxu1 %vm427_vm0, %v1197_v4  ;;  %v1203_v28 = vld [vmem:[%s1295_s24 + $0x70] sm:$0xff]  ;;  %v1204_v32 = vld [vmem:[%s1295_s24 + $0x78] sm:$0xff] }
  0x18   : > { %1171 = vmatmul.msk.bf16.vlgmr.msra.gmra.mxu2 %vm427_vm0, %v1205_v5  ;;  %1179 = vmatmul.msk.bf16.vlgmr.msra.gmra.mxu3 %vm427_vm0, %v1213_v6  ;;  %v1211_v29 = vld [vmem:[%s1295_s24 + $0xb0] sm:$0xff]  ;;  %v1212_v33 = vld [vmem:[%s1295_s24 + $0xb8] sm:$0xff] }
  0x19   : > { %v1219_v30 = vld [vmem:[%s1295_s24 + $0xf0] sm:$0xff]  ;;  %v1220_v34 = vld [vmem:[%s1295_s24 + $0xf8] sm:$0xff] }
  0x27   : > { %1156 = vmatmul.msk.bf16.gmra.mxu0 %vm427_vm0, %v1190_v7  ;;  %1164 = vmatmul.msk.bf16.gmra.mxu1 %vm427_vm0, %v1198_v8 }
  0x28   : > { %1172 = vmatmul.msk.bf16.gmra.mxu2 %vm427_vm0, %v1206_v9  ;;  %1180 = vmatmul.msk.bf16.gmra.mxu3 %vm427_vm0, %v1214_v10 }
  0x37   : > { %1157 = vmatmul.msk.bf16.gmra.mxu0 %vm427_vm0, %v1191_v11  ;;  %1165 = vmatmul.msk.bf16.gmra.mxu1 %vm427_vm0, %v1199_v12 }
  0x38   : > { %1173 = vmatmul.msk.bf16.gmra.mxu2 %vm427_vm0, %v1207_v13  ;;  %1181 = vmatmul.msk.bf16.gmra.mxu3 %vm427_vm0, %v1215_v14 }
  0x47   : > { %1158 = vmatmul.msk.bf16.gmra.mxu0 %vm427_vm0, %v1192_v15  ;;  %1166 = vmatmul.msk.bf16.gmra.mxu1 %vm427_vm0, %v1200_v16 }
  0x48   : > { %1174 = vmatmul.msk.bf16.gmra.mxu2 %vm427_vm0, %v1208_v17  ;;  %1182 = vmatmul.msk.bf16.gmra.mxu3 %vm427_vm0, %v1216_v18 }
  0x57   : > { %1159 = vmatmul.msk.bf16.gmra.mxu0 %vm427_vm0, %v1193_v19  ;;  %1167 = vmatmul.msk.bf16.gmra.mxu1 %vm427_vm0, %v1201_v20 }
  0x58   : > { %1175 = vmatmul.msk.bf16.gmra.mxu2 %vm427_vm0, %v1209_v21  ;;  %1183 = vmatmul.msk.bf16.gmra.mxu3 %vm427_vm0, %v1217_v22 }
  0x67   : > { %1160 = vmatmul.msk.bf16.gmra.mxu0 %vm427_vm0, %v1194_v23  ;;  %1168 = vmatmul.msk.bf16.gmra.mxu1 %vm427_vm0, %v1202_v24 }
  0x68   : > { %1176 = vmatmul.msk.bf16.gmra.mxu2 %vm427_vm0, %v1210_v25  ;;  %1184 = vmatmul.msk.bf16.gmra.mxu3 %vm427_vm0, %v1218_v26 }
  0x77   : > { %1161 = vmatmul.msk.bf16.gmra.mxu0 %vm427_vm0, %v1195_v27  ;;  %1169 = vmatmul.msk.bf16.gmra.mxu1 %vm427_vm0, %v1203_v28 }
  0x78   : > { %1177 = vmatmul.msk.bf16.gmra.mxu2 %vm427_vm0, %v1211_v29  ;;  %1185 = vmatmul.msk.bf16.gmra.mxu3 %vm427_vm0, %v1219_v30 }
  0x87   : > { %1162 = vmatmul.msk.bf16.gmra.mxu0 %vm427_vm0, %v1196_v31  ;;  %1170 = vmatmul.msk.bf16.gmra.mxu1 %vm427_vm0, %v1204_v32 }
  0x88   : > { %1178 = vmatmul.msk.bf16.gmra.mxu2 %vm427_vm0, %v1212_v33  ;;  %1186 = vmatmul.msk.bf16.gmra.mxu3 %vm427_vm0, %v1220_v34 }
  0x94   : > { %v533_v36 = vpop.f32.mrf.mxu0  ;;  %v573_v37 = vpop.f32.mrf.mxu1 }
  0x95   : > { %v534_v38 = vadd.f32 %v1364_v35, %v533_v36  ;;  %v574_v39 = vadd.f32 %v1364_v35, %v573_v37 }
  0x97   : > { %v693_v40 = vmul.f32 0.2, %v534_v38  ;;  %v709_v41 = vmul.f32 0.2, %v574_v39 }
  0x99   : > { %v757_v42 = vmax.f32 %v534_v38, %v693_v40  ;;  %v773_v43 = vmax.f32 %v574_v39, %v709_v41 }
  0x9b   : > { %v821_v44 = vpack.c.bf16 %v757_v42, %v757_v42  ;;  %v837_v45 = vpack.c.bf16 %v773_v43, %v773_v43  ;;  %v613_v46 = vpop.f32.mrf.mxu2  ;;  %v653_v47 = vpop.f32.mrf.mxu3 }
  0x9c   : > { %v614_v48 = vadd.f32 %v1364_v35, %v613_v46  ;;  %v654_v49 = vadd.f32 %v1364_v35, %v653_v47  ;;  %v535_v50 = vpop.f32.mrf.mxu0  ;;  %v575_v51 = vpop.f32.mrf.mxu1 }
  0x9d   : > { %886 = vst.msk [vmem:[%s1373_s29] sm:$0xf] %vm885_vm1, %v821_v44  ;;  %v536_v52 = vadd.f32 %v1364_v35, %v535_v50  ;;  %v576_v53 = vadd.f32 %v1364_v35, %v575_v51 }
  0x9e   : > { %902 = vst.msk [vmem:[%s1373_s29 + $0x40] sm:$0xf] %vm885_vm1, %v837_v45  ;;  %v725_v54 = vmul.f32 0.2, %v614_v48  ;;  %v741_v55 = vmul.f32 0.2, %v654_v49 }
  0x9f   : > { %v694_v56 = vmul.f32 0.2, %v536_v52  ;;  %v710_v57 = vmul.f32 0.2, %v576_v53 }
  0xa0   : > { %v789_v58 = vmax.f32 %v614_v48, %v725_v54  ;;  %v805_v59 = vmax.f32 %v654_v49, %v741_v55 }
  0xa1   : > { %v758_v60 = vmax.f32 %v536_v52, %v694_v56  ;;  %v774_v61 = vmax.f32 %v576_v53, %v710_v57 }
  0xa2   : > { %v853_v62 = vpack.c.bf16 %v789_v58, %v789_v58  ;;  %v869_v63 = vpack.c.bf16 %v805_v59, %v805_v59 }
  0xa3   : > { %v822_v0 = vpack.c.bf16 %v758_v60, %v758_v60  ;;  %v838_v1 = vpack.c.bf16 %v774_v61, %v774_v61  ;;  %v615_v2 = vpop.f32.mrf.mxu2  ;;  %v655_v3 = vpop.f32.mrf.mxu3 }
  0xa4   : > { %918 = vst.msk [vmem:[%s1373_s29 + $0x80] sm:$0xf] %vm885_vm1, %v853_v62  ;;  %v616_v4 = vadd.f32 %v1364_v35, %v615_v2  ;;  %v656_v5 = vadd.f32 %v1364_v35, %v655_v3  ;;  %v538_v6 = vpop.f32.mrf.mxu0  ;;  %v578_v7 = vpop.f32.mrf.mxu1 }
  0xa5   : > { %934 = vst.msk [vmem:[%s1373_s29 + $0xc0] sm:$0xf] %vm885_vm1, %v869_v63  ;;  %v539_v8 = vadd.f32 %v1364_v35, %v538_v6  ;;  %v579_v9 = vadd.f32 %v1364_v35, %v578_v7 }
  0xa6   : > { %887 = vst.msk [vmem:[%s1373_s29 + $0x4] sm:$0xf] %vm885_vm1, %v822_v0  ;;  %v726_v10 = vmul.f32 0.2, %v616_v4  ;;  %v742_v11 = vmul.f32 0.2, %v656_v5 }
  0xa7   : > { %903 = vst.msk [vmem:[%s1373_s29 + $0x44] sm:$0xf] %vm885_vm1, %v838_v1  ;;  %v695_v12 = vmul.f32 0.2, %v539_v8  ;;  %v711_v13 = vmul.f32 0.2, %v579_v9 }
  0xa8   : > { %v790_v14 = vmax.f32 %v616_v4, %v726_v10  ;;  %v806_v15 = vmax.f32 %v656_v5, %v742_v11 }
  0xa9   : > { %v759_v16 = vmax.f32 %v539_v8, %v695_v12  ;;  %v775_v17 = vmax.f32 %v579_v9, %v711_v13 }
  0xaa   : > { %v854_v18 = vpack.c.bf16 %v790_v14, %v790_v14  ;;  %v870_v19 = vpack.c.bf16 %v806_v15, %v806_v15 }
  0xab   : > { %v823_v20 = vpack.c.bf16 %v759_v16, %v759_v16  ;;  %v839_v21 = vpack.c.bf16 %v775_v17, %v775_v17  ;;  %v618_v22 = vpop.f32.mrf.mxu2  ;;  %v658_v23 = vpop.f32.mrf.mxu3 }
  0xac   : > { %919 = vst.msk [vmem:[%s1373_s29 + $0x84] sm:$0xf] %vm885_vm1, %v854_v18  ;;  %v619_v24 = vadd.f32 %v1364_v35, %v618_v22  ;;  %v659_v25 = vadd.f32 %v1364_v35, %v658_v23  ;;  %v540_v26 = vpop.f32.mrf.mxu0  ;;  %v580_v27 = vpop.f32.mrf.mxu1 }
  0xad   : > { %935 = vst.msk [vmem:[%s1373_s29 + $0xc4] sm:$0xf] %vm885_vm1, %v870_v19  ;;  %v541_v28 = vadd.f32 %v1364_v35, %v540_v26  ;;  %v581_v29 = vadd.f32 %v1364_v35, %v580_v27 }
  0xae   : > { %888 = vst.msk [vmem:[%s1373_s29 + $0x8] sm:$0xf] %vm885_vm1, %v823_v20  ;;  %v727_v30 = vmul.f32 0.2, %v619_v24  ;;  %v743_v31 = vmul.f32 0.2, %v659_v25 }
  0xaf   : > { %904 = vst.msk [vmem:[%s1373_s29 + $0x48] sm:$0xf] %vm885_vm1, %v839_v21  ;;  %v696_v32 = vmul.f32 0.2, %v541_v28  ;;  %v712_v33 = vmul.f32 0.2, %v581_v29 }
  0xb0   : > { %v791_v34 = vmax.f32 %v619_v24, %v727_v30  ;;  %v807_v36 = vmax.f32 %v659_v25, %v743_v31 }
  0xb1   : > { %v760_v37 = vmax.f32 %v541_v28, %v696_v32  ;;  %v776_v38 = vmax.f32 %v581_v29, %v712_v33 }
  0xb2   : > { %v855_v39 = vpack.c.bf16 %v791_v34, %v791_v34  ;;  %v871_v40 = vpack.c.bf16 %v807_v36, %v807_v36 }
  0xb3   : > { %v824_v41 = vpack.c.bf16 %v760_v37, %v760_v37  ;;  %v840_v42 = vpack.c.bf16 %v776_v38, %v776_v38  ;;  %v620_v43 = vpop.f32.mrf.mxu2  ;;  %v660_v44 = vpop.f32.mrf.mxu3 }
  0xb4   : > { %920 = vst.msk [vmem:[%s1373_s29 + $0x88] sm:$0xf] %vm885_vm1, %v855_v39  ;;  %v621_v45 = vadd.f32 %v1364_v35, %v620_v43  ;;  %v661_v46 = vadd.f32 %v1364_v35, %v660_v44  ;;  %v543_v47 = vpop.f32.mrf.mxu0  ;;  %v583_v48 = vpop.f32.mrf.mxu1 }
  0xb5   : > { %936 = vst.msk [vmem:[%s1373_s29 + $0xc8] sm:$0xf] %vm885_vm1, %v871_v40  ;;  %v544_v49 = vadd.f32 %v1364_v35, %v543_v47  ;;  %v584_v50 = vadd.f32 %v1364_v35, %v583_v48 }
  0xb6   : > { %889 = vst.msk [vmem:[%s1373_s29 + $0xc] sm:$0xf] %vm885_vm1, %v824_v41  ;;  %v728_v51 = vmul.f32 0.2, %v621_v45  ;;  %v744_v52 = vmul.f32 0.2, %v661_v46 }
  0xb7   : > { %905 = vst.msk [vmem:[%s1373_s29 + $0x4c] sm:$0xf] %vm885_vm1, %v840_v42  ;;  %v697_v53 = vmul.f32 0.2, %v544_v49  ;;  %v713_v54 = vmul.f32 0.2, %v584_v50 }
  0xb8   : > { %v792_v55 = vmax.f32 %v621_v45, %v728_v51  ;;  %v808_v56 = vmax.f32 %v661_v46, %v744_v52 }
  0xb9   : > { %v761_v57 = vmax.f32 %v544_v49, %v697_v53  ;;  %v777_v58 = vmax.f32 %v584_v50, %v713_v54 }
  0xba   : > { %v856_v59 = vpack.c.bf16 %v792_v55, %v792_v55  ;;  %v872_v60 = vpack.c.bf16 %v808_v56, %v808_v56 }
  0xbb   : > { %v825_v61 = vpack.c.bf16 %v761_v57, %v761_v57  ;;  %v841_v62 = vpack.c.bf16 %v777_v58, %v777_v58  ;;  %v623_v63 = vpop.f32.mrf.mxu2  ;;  %v663_v0 = vpop.f32.mrf.mxu3 }
  0xbc   : > { %921 = vst.msk [vmem:[%s1373_s29 + $0x8c] sm:$0xf] %vm885_vm1, %v856_v59  ;;  %v624_v1 = vadd.f32 %v1364_v35, %v623_v63  ;;  %v664_v2 = vadd.f32 %v1364_v35, %v663_v0  ;;  %v545_v3 = vpop.f32.mrf.mxu0  ;;  %v585_v4 = vpop.f32.mrf.mxu1 }
  0xbd   : > { %937 = vst.msk [vmem:[%s1373_s29 + $0xcc] sm:$0xf] %vm885_vm1, %v872_v60  ;;  %v546_v5 = vadd.f32 %v1364_v35, %v545_v3  ;;  %v586_v6 = vadd.f32 %v1364_v35, %v585_v4 }
  0xbe   : > { %890 = vst.msk [vmem:[%s1373_s29 + $0x10] sm:$0xf] %vm885_vm1, %v825_v61  ;;  %v729_v7 = vmul.f32 0.2, %v624_v1  ;;  %v745_v8 = vmul.f32 0.2, %v664_v2 }
  0xbf   : > { %906 = vst.msk [vmem:[%s1373_s29 + $0x50] sm:$0xf] %vm885_vm1, %v841_v62  ;;  %v698_v9 = vmul.f32 0.2, %v546_v5  ;;  %v714_v10 = vmul.f32 0.2, %v586_v6 }
  0xc0   : > { %v793_v11 = vmax.f32 %v624_v1, %v729_v7  ;;  %v809_v12 = vmax.f32 %v664_v2, %v745_v8 }
  0xc1   : > { %v762_v13 = vmax.f32 %v546_v5, %v698_v9  ;;  %v778_v14 = vmax.f32 %v586_v6, %v714_v10 }
  0xc2   : > { %v857_v15 = vpack.c.bf16 %v793_v11, %v793_v11  ;;  %v873_v16 = vpack.c.bf16 %v809_v12, %v809_v12 }
  0xc3   : > { %v826_v17 = vpack.c.bf16 %v762_v13, %v762_v13  ;;  %v842_v18 = vpack.c.bf16 %v778_v14, %v778_v14  ;;  %v625_v19 = vpop.f32.mrf.mxu2  ;;  %v665_v20 = vpop.f32.mrf.mxu3 }
  0xc4   : > { %922 = vst.msk [vmem:[%s1373_s29 + $0x90] sm:$0xf] %vm885_vm1, %v857_v15  ;;  %v626_v21 = vadd.f32 %v1364_v35, %v625_v19  ;;  %v666_v22 = vadd.f32 %v1364_v35, %v665_v20  ;;  %v548_v23 = vpop.f32.mrf.mxu0  ;;  %v588_v24 = vpop.f32.mrf.mxu1 }
  0xc5   : > { %938 = vst.msk [vmem:[%s1373_s29 + $0xd0] sm:$0xf] %vm885_vm1, %v873_v16  ;;  %v549_v25 = vadd.f32 %v1364_v35, %v548_v23  ;;  %v589_v26 = vadd.f32 %v1364_v35, %v588_v24 }
  0xc6   : > { %891 = vst.msk [vmem:[%s1373_s29 + $0x14] sm:$0xf] %vm885_vm1, %v826_v17  ;;  %v730_v27 = vmul.f32 0.2, %v626_v21  ;;  %v746_v28 = vmul.f32 0.2, %v666_v22 }
  0xc7   : > { %907 = vst.msk [vmem:[%s1373_s29 + $0x54] sm:$0xf] %vm885_vm1, %v842_v18  ;;  %v699_v29 = vmul.f32 0.2, %v549_v25  ;;  %v715_v30 = vmul.f32 0.2, %v589_v26 }
  0xc8   : > { %v794_v31 = vmax.f32 %v626_v21, %v730_v27  ;;  %v810_v32 = vmax.f32 %v666_v22, %v746_v28 }
  0xc9   : > { %v763_v33 = vmax.f32 %v549_v25, %v699_v29  ;;  %v779_v34 = vmax.f32 %v589_v26, %v715_v30 }
  0xca   : > { %v858_v36 = vpack.c.bf16 %v794_v31, %v794_v31  ;;  %v874_v37 = vpack.c.bf16 %v810_v32, %v810_v32 }
  0xcb   : > { %v827_v38 = vpack.c.bf16 %v763_v33, %v763_v33  ;;  %v843_v39 = vpack.c.bf16 %v779_v34, %v779_v34  ;;  %v628_v40 = vpop.f32.mrf.mxu2  ;;  %v668_v41 = vpop.f32.mrf.mxu3 }
  0xcc   : > { %923 = vst.msk [vmem:[%s1373_s29 + $0x94] sm:$0xf] %vm885_vm1, %v858_v36  ;;  %v629_v42 = vadd.f32 %v1364_v35, %v628_v40  ;;  %v669_v43 = vadd.f32 %v1364_v35, %v668_v41  ;;  %v550_v44 = vpop.f32.mrf.mxu0  ;;  %v590_v45 = vpop.f32.mrf.mxu1 }
  0xcd   : > { %939 = vst.msk [vmem:[%s1373_s29 + $0xd4] sm:$0xf] %vm885_vm1, %v874_v37  ;;  %v551_v46 = vadd.f32 %v1364_v35, %v550_v44  ;;  %v591_v47 = vadd.f32 %v1364_v35, %v590_v45 }
  0xce   : > { %892 = vst.msk [vmem:[%s1373_s29 + $0x18] sm:$0xf] %vm885_vm1, %v827_v38  ;;  %v731_v48 = vmul.f32 0.2, %v629_v42  ;;  %v747_v49 = vmul.f32 0.2, %v669_v43 }
  0xcf   : > { %908 = vst.msk [vmem:[%s1373_s29 + $0x58] sm:$0xf] %vm885_vm1, %v843_v39  ;;  %v700_v50 = vmul.f32 0.2, %v551_v46  ;;  %v716_v51 = vmul.f32 0.2, %v591_v47 }
  0xd0   : > { %v795_v52 = vmax.f32 %v629_v42, %v731_v48  ;;  %v811_v53 = vmax.f32 %v669_v43, %v747_v49 }
  0xd1   : > { %v764_v54 = vmax.f32 %v551_v46, %v700_v50  ;;  %v780_v55 = vmax.f32 %v591_v47, %v716_v51 }
  0xd2   : > { %v859_v56 = vpack.c.bf16 %v795_v52, %v795_v52  ;;  %v875_v57 = vpack.c.bf16 %v811_v53, %v811_v53 }
  0xd3   : > { %v828_v58 = vpack.c.bf16 %v764_v54, %v764_v54  ;;  %v844_v59 = vpack.c.bf16 %v780_v55, %v780_v55  ;;  %v630_v60 = vpop.f32.mrf.mxu2  ;;  %v670_v61 = vpop.f32.mrf.mxu3 }
  0xd4   : > { %924 = vst.msk [vmem:[%s1373_s29 + $0x98] sm:$0xf] %vm885_vm1, %v859_v56  ;;  %v631_v62 = vadd.f32 %v1364_v35, %v630_v60  ;;  %v671_v63 = vadd.f32 %v1364_v35, %v670_v61  ;;  %v553_v0 = vpop.f32.mrf.mxu0  ;;  %v593_v1 = vpop.f32.mrf.mxu1 }
  0xd5   : > { %940 = vst.msk [vmem:[%s1373_s29 + $0xd8] sm:$0xf] %vm885_vm1, %v875_v57  ;;  %v554_v2 = vadd.f32 %v1364_v35, %v553_v0  ;;  %v594_v3 = vadd.f32 %v1364_v35, %v593_v1 }
  0xd6   : > { %893 = vst.msk [vmem:[%s1373_s29 + $0x1c] sm:$0xf] %vm885_vm1, %v828_v58  ;;  %v732_v4 = vmul.f32 0.2, %v631_v62  ;;  %v748_v5 = vmul.f32 0.2, %v671_v63 }
  0xd7   : > { %909 = vst.msk [vmem:[%s1373_s29 + $0x5c] sm:$0xf] %vm885_vm1, %v844_v59  ;;  %v701_v6 = vmul.f32 0.2, %v554_v2  ;;  %v717_v7 = vmul.f32 0.2, %v594_v3 }
  0xd8   : > { %v796_v8 = vmax.f32 %v631_v62, %v732_v4  ;;  %v812_v9 = vmax.f32 %v671_v63, %v748_v5 }
  0xd9   : > { %v765_v10 = vmax.f32 %v554_v2, %v701_v6  ;;  %v781_v11 = vmax.f32 %v594_v3, %v717_v7 }
  0xda   : > { %v860_v12 = vpack.c.bf16 %v796_v8, %v796_v8  ;;  %v876_v13 = vpack.c.bf16 %v812_v9, %v812_v9 }
  0xdb   : > { %v829_v14 = vpack.c.bf16 %v765_v10, %v765_v10  ;;  %v845_v15 = vpack.c.bf16 %v781_v11, %v781_v11  ;;  %v633_v16 = vpop.f32.mrf.mxu2  ;;  %v673_v17 = vpop.f32.mrf.mxu3 }
  0xdc   : > { %925 = vst.msk [vmem:[%s1373_s29 + $0x9c] sm:$0xf] %vm885_vm1, %v860_v12  ;;  %v634_v18 = vadd.f32 %v1364_v35, %v633_v16  ;;  %v674_v19 = vadd.f32 %v1364_v35, %v673_v17  ;;  %v555_v20 = vpop.f32.mrf.mxu0  ;;  %v595_v21 = vpop.f32.mrf.mxu1 }
  0xdd   : > { %941 = vst.msk [vmem:[%s1373_s29 + $0xdc] sm:$0xf] %vm885_vm1, %v876_v13  ;;  %v556_v22 = vadd.f32 %v1364_v35, %v555_v20  ;;  %v596_v23 = vadd.f32 %v1364_v35, %v595_v21 }
  0xde   : > { %894 = vst.msk [vmem:[%s1373_s29 + $0x20] sm:$0xf] %vm885_vm1, %v829_v14  ;;  %v733_v24 = vmul.f32 0.2, %v634_v18  ;;  %v749_v25 = vmul.f32 0.2, %v674_v19 }
  0xdf   : > { %910 = vst.msk [vmem:[%s1373_s29 + $0x60] sm:$0xf] %vm885_vm1, %v845_v15  ;;  %v702_v26 = vmul.f32 0.2, %v556_v22  ;;  %v718_v27 = vmul.f32 0.2, %v596_v23 }
  0xe0   : > { %v797_v28 = vmax.f32 %v634_v18, %v733_v24  ;;  %v813_v29 = vmax.f32 %v674_v19, %v749_v25 }
  0xe1   : > { %v766_v30 = vmax.f32 %v556_v22, %v702_v26  ;;  %v782_v31 = vmax.f32 %v596_v23, %v718_v27 }
  0xe2   : > { %v861_v32 = vpack.c.bf16 %v797_v28, %v797_v28  ;;  %v877_v33 = vpack.c.bf16 %v813_v29, %v813_v29 }
  0xe3   : > { %v830_v34 = vpack.c.bf16 %v766_v30, %v766_v30  ;;  %v846_v36 = vpack.c.bf16 %v782_v31, %v782_v31  ;;  %v635_v37 = vpop.f32.mrf.mxu2  ;;  %v675_v38 = vpop.f32.mrf.mxu3 }
  0xe4   : > { %926 = vst.msk [vmem:[%s1373_s29 + $0xa0] sm:$0xf] %vm885_vm1, %v861_v32  ;;  %v636_v39 = vadd.f32 %v1364_v35, %v635_v37  ;;  %v676_v40 = vadd.f32 %v1364_v35, %v675_v38  ;;  %v558_v41 = vpop.f32.mrf.mxu0  ;;  %v598_v42 = vpop.f32.mrf.mxu1 }
  0xe5   : > { %942 = vst.msk [vmem:[%s1373_s29 + $0xe0] sm:$0xf] %vm885_vm1, %v877_v33  ;;  %v559_v43 = vadd.f32 %v1364_v35, %v558_v41  ;;  %v599_v44 = vadd.f32 %v1364_v35, %v598_v42 }
  0xe6   : > { %895 = vst.msk [vmem:[%s1373_s29 + $0x24] sm:$0xf] %vm885_vm1, %v830_v34  ;;  %v734_v45 = vmul.f32 0.2, %v636_v39  ;;  %v750_v46 = vmul.f32 0.2, %v676_v40 }
  0xe7   : > { %911 = vst.msk [vmem:[%s1373_s29 + $0x64] sm:$0xf] %vm885_vm1, %v846_v36  ;;  %v703_v47 = vmul.f32 0.2, %v559_v43  ;;  %v719_v48 = vmul.f32 0.2, %v599_v44 }
  0xe8   : > { %v798_v49 = vmax.f32 %v636_v39, %v734_v45  ;;  %v814_v50 = vmax.f32 %v676_v40, %v750_v46 }
  0xe9   : > { %v767_v51 = vmax.f32 %v559_v43, %v703_v47  ;;  %v783_v52 = vmax.f32 %v599_v44, %v719_v48 }
  0xea   : > { %v862_v53 = vpack.c.bf16 %v798_v49, %v798_v49  ;;  %v878_v54 = vpack.c.bf16 %v814_v50, %v814_v50 }
  0xeb   : > { %v831_v55 = vpack.c.bf16 %v767_v51, %v767_v51  ;;  %v847_v56 = vpack.c.bf16 %v783_v52, %v783_v52  ;;  %v638_v57 = vpop.f32.mrf.mxu2  ;;  %v678_v58 = vpop.f32.mrf.mxu3 }
  0xec   : > { %927 = vst.msk [vmem:[%s1373_s29 + $0xa4] sm:$0xf] %vm885_vm1, %v862_v53  ;;  %v639_v59 = vadd.f32 %v1364_v35, %v638_v57  ;;  %v679_v60 = vadd.f32 %v1364_v35, %v678_v58  ;;  %v560_v61 = vpop.f32.mrf.mxu0  ;;  %v600_v62 = vpop.f32.mrf.mxu1 }
  0xed   : > { %943 = vst.msk [vmem:[%s1373_s29 + $0xe4] sm:$0xf] %vm885_vm1, %v878_v54  ;;  %v561_v63 = vadd.f32 %v1364_v35, %v560_v61  ;;  %v601_v0 = vadd.f32 %v1364_v35, %v600_v62 }
  0xee   : > { %896 = vst.msk [vmem:[%s1373_s29 + $0x28] sm:$0xf] %vm885_vm1, %v831_v55  ;;  %v735_v1 = vmul.f32 0.2, %v639_v59  ;;  %v751_v2 = vmul.f32 0.2, %v679_v60 }
  0xef   : > { %912 = vst.msk [vmem:[%s1373_s29 + $0x68] sm:$0xf] %vm885_vm1, %v847_v56  ;;  %v704_v3 = vmul.f32 0.2, %v561_v63  ;;  %v720_v4 = vmul.f32 0.2, %v601_v0 }
  0xf0   : > { %v799_v5 = vmax.f32 %v639_v59, %v735_v1  ;;  %v815_v6 = vmax.f32 %v679_v60, %v751_v2 }
  0xf1   : > { %v768_v7 = vmax.f32 %v561_v63, %v704_v3  ;;  %v784_v8 = vmax.f32 %v601_v0, %v720_v4 }
  0xf2   : > { %v863_v9 = vpack.c.bf16 %v799_v5, %v799_v5  ;;  %v879_v10 = vpack.c.bf16 %v815_v6, %v815_v6 }
  0xf3   : > { %v832_v11 = vpack.c.bf16 %v768_v7, %v768_v7  ;;  %v848_v12 = vpack.c.bf16 %v784_v8, %v784_v8  ;;  %v640_v13 = vpop.f32.mrf.mxu2  ;;  %v680_v14 = vpop.f32.mrf.mxu3 }
  0xf4   : > { %928 = vst.msk [vmem:[%s1373_s29 + $0xa8] sm:$0xf] %vm885_vm1, %v863_v9  ;;  %v641_v15 = vadd.f32 %v1364_v35, %v640_v13  ;;  %v681_v16 = vadd.f32 %v1364_v35, %v680_v14  ;;  %v563_v17 = vpop.f32.mrf.mxu0  ;;  %v603_v18 = vpop.f32.mrf.mxu1 }
  0xf5   : > { %944 = vst.msk [vmem:[%s1373_s29 + $0xe8] sm:$0xf] %vm885_vm1, %v879_v10  ;;  %v564_v19 = vadd.f32 %v1364_v35, %v563_v17  ;;  %v604_v20 = vadd.f32 %v1364_v35, %v603_v18 }
  0xf6   : > { %897 = vst.msk [vmem:[%s1373_s29 + $0x2c] sm:$0xf] %vm885_vm1, %v832_v11  ;;  %v736_v21 = vmul.f32 0.2, %v641_v15  ;;  %v752_v22 = vmul.f32 0.2, %v681_v16 }
  0xf7   : > { %913 = vst.msk [vmem:[%s1373_s29 + $0x6c] sm:$0xf] %vm885_vm1, %v848_v12  ;;  %v705_v23 = vmul.f32 0.2, %v564_v19  ;;  %v721_v24 = vmul.f32 0.2, %v604_v20 }
  0xf8   : > { %v800_v25 = vmax.f32 %v641_v15, %v736_v21  ;;  %v816_v26 = vmax.f32 %v681_v16, %v752_v22 }
  0xf9   : > { %v769_v27 = vmax.f32 %v564_v19, %v705_v23  ;;  %v785_v28 = vmax.f32 %v604_v20, %v721_v24 }
  0xfa   : > { %v864_v29 = vpack.c.bf16 %v800_v25, %v800_v25  ;;  %v880_v30 = vpack.c.bf16 %v816_v26, %v816_v26 }
  0xfb   : > { %v833_v31 = vpack.c.bf16 %v769_v27, %v769_v27  ;;  %v849_v32 = vpack.c.bf16 %v785_v28, %v785_v28  ;;  %v643_v33 = vpop.f32.mrf.mxu2  ;;  %v683_v34 = vpop.f32.mrf.mxu3 }
  0xfc   : > { %929 = vst.msk [vmem:[%s1373_s29 + $0xac] sm:$0xf] %vm885_vm1, %v864_v29  ;;  %v644_v36 = vadd.f32 %v1364_v35, %v643_v33  ;;  %v684_v37 = vadd.f32 %v1364_v35, %v683_v34  ;;  %v565_v38 = vpop.f32.mrf.mxu0  ;;  %v605_v39 = vpop.f32.mrf.mxu1 }
  0xfd   : > { %945 = vst.msk [vmem:[%s1373_s29 + $0xec] sm:$0xf] %vm885_vm1, %v880_v30  ;;  %v566_v40 = vadd.f32 %v1364_v35, %v565_v38  ;;  %v606_v41 = vadd.f32 %v1364_v35, %v605_v39 }
  0xfe   : > { %898 = vst.msk [vmem:[%s1373_s29 + $0x30] sm:$0xf] %vm885_vm1, %v833_v31  ;;  %v737_v42 = vmul.f32 0.2, %v644_v36  ;;  %v753_v43 = vmul.f32 0.2, %v684_v37 }
  0xff   : > { %914 = vst.msk [vmem:[%s1373_s29 + $0x70] sm:$0xf] %vm885_vm1, %v849_v32  ;;  %v706_v44 = vmul.f32 0.2, %v566_v40  ;;  %v722_v45 = vmul.f32 0.2, %v606_v41 }
 0x100   : > { %v801_v46 = vmax.f32 %v644_v36, %v737_v42  ;;  %v817_v47 = vmax.f32 %v684_v37, %v753_v43 }
 0x101   : > { %v770_v48 = vmax.f32 %v566_v40, %v706_v44  ;;  %v786_v49 = vmax.f32 %v606_v41, %v722_v45 }
 0x102   : > { %v865_v50 = vpack.c.bf16 %v801_v46, %v801_v46  ;;  %v881_v51 = vpack.c.bf16 %v817_v47, %v817_v47 }
 0x103   : > { %v834_v52 = vpack.c.bf16 %v770_v48, %v770_v48  ;;  %v850_v53 = vpack.c.bf16 %v786_v49, %v786_v49  ;;  %v645_v54 = vpop.f32.mrf.mxu2  ;;  %v685_v55 = vpop.f32.mrf.mxu3 }
 0x104   : > { %930 = vst.msk [vmem:[%s1373_s29 + $0xb0] sm:$0xf] %vm885_vm1, %v865_v50  ;;  %v646_v56 = vadd.f32 %v1364_v35, %v645_v54  ;;  %v686_v57 = vadd.f32 %v1364_v35, %v685_v55  ;;  %v568_v58 = vpop.f32.mrf.mxu0  ;;  %v608_v59 = vpop.f32.mrf.mxu1 }
 0x105   : > { %946 = vst.msk [vmem:[%s1373_s29 + $0xf0] sm:$0xf] %vm885_vm1, %v881_v51  ;;  %v569_v60 = vadd.f32 %v1364_v35, %v568_v58  ;;  %v609_v61 = vadd.f32 %v1364_v35, %v608_v59 }
 0x106   : > { %899 = vst.msk [vmem:[%s1373_s29 + $0x34] sm:$0xf] %vm885_vm1, %v834_v52  ;;  %v738_v62 = vmul.f32 0.2, %v646_v56  ;;  %v754_v63 = vmul.f32 0.2, %v686_v57 }
 0x107   : > { %915 = vst.msk [vmem:[%s1373_s29 + $0x74] sm:$0xf] %vm885_vm1, %v850_v53  ;;  %v707_v0 = vmul.f32 0.2, %v569_v60  ;;  %v723_v1 = vmul.f32 0.2, %v609_v61 }
 0x108   : > { %v802_v2 = vmax.f32 %v646_v56, %v738_v62  ;;  %v818_v3 = vmax.f32 %v686_v57, %v754_v63 }
 0x109   : > { %v771_v4 = vmax.f32 %v569_v60, %v707_v0  ;;  %v787_v5 = vmax.f32 %v609_v61, %v723_v1 }
 0x10a   : > { %v866_v6 = vpack.c.bf16 %v802_v2, %v802_v2  ;;  %v882_v7 = vpack.c.bf16 %v818_v3, %v818_v3 }
 0x10b   : > { %v835_v8 = vpack.c.bf16 %v771_v4, %v771_v4  ;;  %v851_v9 = vpack.c.bf16 %v787_v5, %v787_v5  ;;  %v648_v10 = vpop.f32.mrf.mxu2  ;;  %v688_v11 = vpop.f32.mrf.mxu3 }
 0x10c   : > { %931 = vst.msk [vmem:[%s1373_s29 + $0xb4] sm:$0xf] %vm885_vm1, %v866_v6  ;;  %v649_v12 = vadd.f32 %v1364_v35, %v648_v10  ;;  %v689_v13 = vadd.f32 %v1364_v35, %v688_v11  ;;  %v570_v14 = vpop.f32.mrf.mxu0  ;;  %v610_v15 = vpop.f32.mrf.mxu1 }
 0x10d   : > { %947 = vst.msk [vmem:[%s1373_s29 + $0xf4] sm:$0xf] %vm885_vm1, %v882_v7  ;;  %v571_v16 = vadd.f32 %v1364_v35, %v570_v14  ;;  %v611_v17 = vadd.f32 %v1364_v35, %v610_v15 }
 0x10e   : > { %900 = vst.msk [vmem:[%s1373_s29 + $0x38] sm:$0xf] %vm885_vm1, %v835_v8  ;;  %v739_v18 = vmul.f32 0.2, %v649_v12  ;;  %v755_v19 = vmul.f32 0.2, %v689_v13 }
 0x10f   : > { %916 = vst.msk [vmem:[%s1373_s29 + $0x78] sm:$0xf] %vm885_vm1, %v851_v9  ;;  %v708_v20 = vmul.f32 0.2, %v571_v16  ;;  %v724_v21 = vmul.f32 0.2, %v611_v17 }
 0x110   : > { %v803_v22 = vmax.f32 %v649_v12, %v739_v18  ;;  %v819_v23 = vmax.f32 %v689_v13, %v755_v19 }
 0x111   : > { %v772_v24 = vmax.f32 %v571_v16, %v708_v20  ;;  %v788_v25 = vmax.f32 %v611_v17, %v724_v21 }
 0x112   : > { %v867_v26 = vpack.c.bf16 %v803_v22, %v803_v22  ;;  %v883_v27 = vpack.c.bf16 %v819_v23, %v819_v23 }
 0x113   : > { %v836_v28 = vpack.c.bf16 %v772_v24, %v772_v24  ;;  %v852_v29 = vpack.c.bf16 %v788_v25, %v788_v25  ;;  %v650_v30 = vpop.f32.mrf.mxu2  ;;  %v690_v31 = vpop.f32.mrf.mxu3 }
 0x114   : > { %932 = vst.msk [vmem:[%s1373_s29 + $0xb8] sm:$0xf] %vm885_vm1, %v867_v26  ;;  %v651_v32 = vadd.f32 %v1364_v35, %v650_v30  ;;  %v691_v33 = vadd.f32 %v1364_v35, %v690_v31 }
 0x115   : > { %948 = vst.msk [vmem:[%s1373_s29 + $0xf8] sm:$0xf] %vm885_vm1, %v883_v27 }
 0x116   : > { %901 = vst.msk [vmem:[%s1373_s29 + $0x3c] sm:$0xf] %vm885_vm1, %v836_v28  ;;  %v740_v34 = vmul.f32 0.2, %v651_v32  ;;  %v756_v36 = vmul.f32 0.2, %v691_v33 }
 0x117   : > { %917 = vst.msk [vmem:[%s1373_s29 + $0x7c] sm:$0xf] %vm885_vm1, %v852_v29 }
 0x118   : > { %v804_v37 = vmax.f32 %v651_v32, %v740_v34  ;;  %v820_v38 = vmax.f32 %v691_v33, %v756_v36 }
 0x11a   : > { %v868_v39 = vpack.c.bf16 %v804_v37, %v804_v37  ;;  %v884_v40 = vpack.c.bf16 %v820_v38, %v820_v38 }
 0x11c   : > { %933 = vst.msk [vmem:[%s1373_s29 + $0xbc] sm:$0xf] %vm885_vm1, %v868_v39 }
 0x11d   : > { %949 = vst.msk [vmem:[%s1373_s29 + $0xfc] sm:$0xf] %vm885_vm1, %v884_v40 }
 0x11e PF: > { %s13_s12 = sadd.s32 1, %s1248_s12  }
 0x11f   : > { %p10_p4 = scmp.ge.s32.totalorder %s13_s12, 6  }
 0x121   :  { %12 = sbr.rel (!%p10_p4) target bundleno = 1 (0x1), region = 62 }

// kernel: discriminator_forward.5
= control target key start
LH: loop header
LB: loop body
LE: loop exit
PB: predicated region body
PF: predicated region fallthrough
CT: control target
= control target key end

     0   :  { %vm506_vm0 = vcmask 130048   ;;  %vm1313_vm5 = vcmask 125952   ;;  %s3349_s1 = inlined_call_operand.vmem [shape: bf16[128,16], index: 1, kind: input, shape index: {}]   ;;  %s3350_s0 = inlined_call_operand.vmem [shape: bf16[512,128], index: 0, kind: input, shape index: {}]   ;;  %s3351_s2 = inlined_call_operand.vmem [shape: f32[1,16], index: 2, kind: input, shape index: {}]   ;;  %s3352_s3 = inlined_call_operand.vmem [shape: f32[1,16], index: 3, kind: input, shape index: {}]   ;;  %s3353_s4 = inlined_call_operand.vmem [shape: bf16[512,16], index: 4, kind: output, shape index: {}]  }
   0x1   :  { %v1581_v0 = vld [vmem:[%s3349_s1 + $0x38] sm:$0xff]  ;;  %v1580_v1 = vld [vmem:[%s3349_s1 + $0x30] sm:$0xff]  ;;  %v1579_v2 = vld [vmem:[%s3349_s1 + $0x28] sm:$0xff] }
   0x2   :  { %337 = vmatpush.bf16.msra.mxu0 %v1581_v0  ;;  %1582 = vmatpush.bf16.msra.mxu1 %v1581_v0  ;;  %v1578_v3 = vld [vmem:[%s3349_s1 + $0x20] sm:$0xff]  ;;  %v1577_v4 = vld [vmem:[%s3349_s1 + $0x18] sm:$0xff]  ;;  %v1576_v5 = vld [vmem:[%s3349_s1 + $0x10] sm:$0xff] }
   0x3   :  { %1583 = vmatpush.bf16.msra.mxu2 %v1581_v0  ;;  %1584 = vmatpush.bf16.msra.mxu3 %v1581_v0  ;;  %v1575_v6 = vld [vmem:[%s3349_s1 + $0x8] sm:$0xff]  ;;  %v1574_v7 = vld [vmem:[%s3349_s1] sm:$0xff]  ;;  %v1544_v13 = vld [vmem:[%s3350_s0 + $0x10] sm:$0xff] }
   0x4   :  { %v1542_v8 = vld [vmem:[%s3350_s0] sm:$0xff]  ;;  %v1543_v10 = vld [vmem:[%s3350_s0 + $0x8] sm:$0xff]  ;;  %v1552_v14 = vld [vmem:[%s3350_s0 + $0x50] sm:$0xff] }
   0x5   :  { %v1550_v9 = vld [vmem:[%s3350_s0 + $0x40] sm:$0xff]  ;;  %v1551_v11 = vld [vmem:[%s3350_s0 + $0x48] sm:$0xff]  ;;  %v1545_v16 = vld [vmem:[%s3350_s0 + $0x18] sm:$0xff] }
   0x6   :  { %338 = vmatpush.bf16.msra.mxu0 %v1580_v1  ;;  %1585 = vmatpush.bf16.msra.mxu1 %v1580_v1  ;;  %v1558_v12 = vld [vmem:[%s3350_s0 + $0x80] sm:$0xff]  ;;  %v1559_v15 = vld [vmem:[%s3350_s0 + $0x88] sm:$0xff]  ;;  %v1553_v17 = vld [vmem:[%s3350_s0 + $0x58] sm:$0xff] }
   0x7   :  { %1586 = vmatpush.bf16.msra.mxu2 %v1580_v1  ;;  %1587 = vmatpush.bf16.msra.mxu3 %v1580_v1  ;;  %v1560_v18 = vld [vmem:[%s3350_s0 + $0x90] sm:$0xff]  ;;  %v1566_v19 = vld [vmem:[%s3350_s0 + $0xc0] sm:$0xff]  ;;  %v1561_v22 = vld [vmem:[%s3350_s0 + $0x98] sm:$0xff] }
   0x8   :  { %v1546_v20 = vld [vmem:[%s3350_s0 + $0x20] sm:$0xff]  ;;  %v1567_v23 = vld [vmem:[%s3350_s0 + $0xc8] sm:$0xff]  ;;  %v1568_v27 = vld [vmem:[%s3350_s0 + $0xd0] sm:$0xff] }
   0x9   :  { %v1554_v21 = vld [vmem:[%s3350_s0 + $0x60] sm:$0xff]  ;;  %v1547_v24 = vld [vmem:[%s3350_s0 + $0x28] sm:$0xff]  ;;  %v1548_v28 = vld [vmem:[%s3350_s0 + $0x30] sm:$0xff] }
   0xa   :  { %339 = vmatpush.bf16.msra.mxu0 %v1579_v2  ;;  %1588 = vmatpush.bf16.msra.mxu1 %v1579_v2  ;;  %v1555_v25 = vld [vmem:[%s3350_s0 + $0x68] sm:$0xff]  ;;  %v1562_v26 = vld [vmem:[%s3350_s0 + $0xa0] sm:$0xff]  ;;  %v1556_v29 = vld [vmem:[%s3350_s0 + $0x70] sm:$0xff] }
   0xb   :  { %1589 = vmatpush.bf16.msra.mxu2 %v1579_v2  ;;  %1590 = vmatpush.bf16.msra.mxu3 %v1579_v2  ;;  %v1563_v30 = vld [vmem:[%s3350_s0 + $0xa8] sm:$0xff]  ;;  %v1569_v31 = vld [vmem:[%s3350_s0 + $0xd8] sm:$0xff]  ;;  %v1564_v34 = vld [vmem:[%s3350_s0 + $0xb0] sm:$0xff] }
   0xc   :  { %v1549_v32 = vld [vmem:[%s3350_s0 + $0x38] sm:$0xff]  ;;  %v1570_v35 = vld [vmem:[%s3350_s0 + $0xe0] sm:$0xff]  ;;  %v1571_v39 = vld [vmem:[%s3350_s0 + $0xe8] sm:$0xff] }
   0xd   :  { %v1557_v33 = vld [vmem:[%s3350_s0 + $0x78] sm:$0xff]  ;;  %v1572_v43 = vld [vmem:[%s3350_s0 + $0xf0] sm:$0xff] }
   0xe   :  { %340 = vmatpush.bf16.msra.mxu0 %v1578_v3  ;;  %1591 = vmatpush.bf16.msra.mxu1 %v1578_v3  ;;  %v1565_v38 = vld [vmem:[%s3350_s0 + $0xb8] sm:$0xff] }
   0xf   :  { %1592 = vmatpush.bf16.msra.mxu2 %v1578_v3  ;;  %1593 = vmatpush.bf16.msra.mxu3 %v1578_v3  ;;  %v1573_v49 = vld [vmem:[%s3350_s0 + $0xf8] sm:$0xff] }
  0x12   :  { %341 = vmatpush.bf16.msra.mxu0 %v1577_v4  ;;  %1594 = vmatpush.bf16.msra.mxu1 %v1577_v4 }
  0x13   :  { %1595 = vmatpush.bf16.msra.mxu2 %v1577_v4  ;;  %1596 = vmatpush.bf16.msra.mxu3 %v1577_v4 }
  0x16   :  { %342 = vmatpush.bf16.msra.mxu0 %v1576_v5  ;;  %1597 = vmatpush.bf16.msra.mxu1 %v1576_v5 }
  0x17   :  { %1598 = vmatpush.bf16.msra.mxu2 %v1576_v5  ;;  %1599 = vmatpush.bf16.msra.mxu3 %v1576_v5 }
  0x1a   :  { %343 = vmatpush.bf16.msra.mxu0 %v1575_v6  ;;  %1600 = vmatpush.bf16.msra.mxu1 %v1575_v6 }
  0x1b   :  { %1601 = vmatpush.bf16.msra.mxu2 %v1575_v6  ;;  %1602 = vmatpush.bf16.msra.mxu3 %v1575_v6 }
  0x1e   :  { %344 = vmatpush.bf16.msra.mxu0 %v1574_v7  ;;  %1603 = vmatpush.bf16.msra.mxu1 %v1574_v7 }
  0x1f   :  { %1604 = vmatpush.bf16.msra.mxu2 %v1574_v7  ;;  %1605 = vmatpush.bf16.msra.mxu3 %v1574_v7 }
  0x21   :  { %345 = vmatmul.bf16.vlgmr.msra.gmra.mxu0 %v1542_v8  ;;  %385 = vmatmul.bf16.vlgmr.msra.gmra.mxu1 %v1550_v9 }
  0x22   :  { %425 = vmatmul.bf16.vlgmr.msra.gmra.mxu2 %v1558_v12  ;;  %465 = vmatmul.bf16.vlgmr.msra.gmra.mxu3 %v1566_v19 }
  0x31   :  { %350 = vmatmul.bf16.gmra.mxu0 %v1543_v10  ;;  %390 = vmatmul.bf16.gmra.mxu1 %v1551_v11 }
  0x32   :  { %430 = vmatmul.bf16.gmra.mxu2 %v1559_v15  ;;  %470 = vmatmul.bf16.gmra.mxu3 %v1567_v23 }
  0x41   :  { %355 = vmatmul.bf16.gmra.mxu0 %v1544_v13  ;;  %395 = vmatmul.bf16.gmra.mxu1 %v1552_v14 }
  0x42   :  { %435 = vmatmul.bf16.gmra.mxu2 %v1560_v18  ;;  %475 = vmatmul.bf16.gmra.mxu3 %v1568_v27 }
  0x51   :  { %360 = vmatmul.bf16.gmra.mxu0 %v1545_v16  ;;  %400 = vmatmul.bf16.gmra.mxu1 %v1553_v17 }
  0x52   :  { %440 = vmatmul.bf16.gmra.mxu2 %v1561_v22  ;;  %480 = vmatmul.bf16.gmra.mxu3 %v1569_v31 }
  0x61   :  { %365 = vmatmul.bf16.gmra.mxu0 %v1546_v20  ;;  %405 = vmatmul.bf16.gmra.mxu1 %v1554_v21 }
  0x62   :  { %445 = vmatmul.bf16.gmra.mxu2 %v1562_v26  ;;  %485 = vmatmul.bf16.gmra.mxu3 %v1570_v35 }
  0x71   :  { %370 = vmatmul.bf16.gmra.mxu0 %v1547_v24  ;;  %410 = vmatmul.bf16.gmra.mxu1 %v1555_v25 }
  0x72   :  { %450 = vmatmul.bf16.gmra.mxu2 %v1563_v30  ;;  %490 = vmatmul.bf16.gmra.mxu3 %v1571_v39 }
  0x81   :  { %375 = vmatmul.bf16.gmra.mxu0 %v1548_v28  ;;  %415 = vmatmul.bf16.gmra.mxu1 %v1556_v29 }
  0x82   :  { %455 = vmatmul.bf16.gmra.mxu2 %v1564_v34  ;;  %495 = vmatmul.bf16.gmra.mxu3 %v1572_v43 }
  0x91   :  { %380 = vmatmul.bf16.gmra.mxu0 %v1549_v32  ;;  %420 = vmatmul.bf16.gmra.mxu1 %v1557_v33 }
  0x92   :  { %460 = vmatmul.bf16.gmra.mxu2 %v1565_v38  ;;  %500 = vmatmul.bf16.gmra.mxu3 %v1573_v49 }
  0x9e   :  { %v1747_v36 = vpop.f32.mrf.mxu0  ;;  %v1749_v37 = vpop.f32.mrf.mxu1 }
  0x9f   :  { %v507_v9 = vsel %vm506_vm0, %v1747_v36, 0.0 }
  0xa5   :  { %v1772_v47 = vpop.f32.mrf.mxu2  ;;  %v1805_v63 = vpop.f32.mrf.mxu3 }
  0xa6   :  { %v1757_v40 = vpop.f32.mrf.mxu0  ;;  %v1759_v41 = vpop.f32.mrf.mxu1 }
  0xa7   :  { %v508_v6 = vsel %vm506_vm0, %v1757_v40, 0.0 }
  0xa8   :  { %v509_v11 = vadd.f32 %v508_v6, %v507_v9 }
  0xad   :  { %v1783_v52 = vpop.f32.mrf.mxu2  ;;  %v1813_v3 = vpop.f32.mrf.mxu3 }
  0xae   :  { %v1761_v42 = vpop.f32.mrf.mxu0  ;;  %v1766_v44 = vpop.f32.mrf.mxu1 }
  0xaf   :  { %v510_v10 = vsel %vm506_vm0, %v1761_v42, 0.0 }
  0xb0   :  { %v511_v13 = vadd.f32 %v510_v10, %v509_v11 }
  0xb5   :  { %v1789_v55 = vpop.f32.mrf.mxu2  ;;  %v1823_v8 = vpop.f32.mrf.mxu3 }
  0xb6   :  { %v1768_v45 = vpop.f32.mrf.mxu0  ;;  %v1770_v46 = vpop.f32.mrf.mxu1  ;;  %3395 = vst [vmem:[#allocation4_spill] sm:$0xff] %v1823_v8 }
  0xb7   :  { %v512_v12 = vsel %vm506_vm0, %v1768_v45, 0.0 }
  0xb8   :  { %v513_v16 = vadd.f32 %v512_v12, %v511_v13 }
  0xbd   :  { %v1795_v58 = vpop.f32.mrf.mxu2  ;;  %v1843_v23 = vpop.f32.mrf.mxu3 }
  0xbe   :  { %v1774_v48 = vpop.f32.mrf.mxu0  ;;  %v1781_v51 = vpop.f32.mrf.mxu1  ;;  %3393 = vst [vmem:[#allocation2_spill] sm:$0xff] %v1795_v58 }
  0xbf   :  { %v514_v15 = vsel %vm506_vm0, %v1774_v48, 0.0 }
  0xc0   :  { %v515_v18 = vadd.f32 %v514_v15, %v513_v16 }
  0xc5   :  { %v1801_v61 = vpop.f32.mrf.mxu2  ;;  %v1863_v43 = vpop.f32.mrf.mxu3 }
  0xc6   :  { %v1779_v50 = vpop.f32.mrf.mxu0  ;;  %v1787_v54 = vpop.f32.mrf.mxu1  ;;  %3394 = vst [vmem:[#allocation3_spill] sm:$0xff] %v1801_v61 }
  0xc7   :  { %v516_v17 = vsel %vm506_vm0, %v1779_v50, 0.0 }
  0xc8   :  { %v517_v22 = vadd.f32 %v516_v17, %v515_v18 }
  0xcd   :  { %v1811_v2 = vpop.f32.mrf.mxu2 }
  0xce   :  { %v1785_v53 = vpop.f32.mrf.mxu0  ;;  %v1793_v57 = vpop.f32.mrf.mxu1 }
  0xcf   :  { %v518_v20 = vsel %vm506_vm0, %v1785_v53, 0.0 }
  0xd0   :  { %v519_v25 = vadd.f32 %v518_v20, %v517_v22  ;;  %v1879_v22 = vpop.f32.mrf.mxu3 }
  0xd5   :  { %v1821_v7 = vpop.f32.mrf.mxu2 }
  0xd6   :  { %v1791_v56 = vpop.f32.mrf.mxu0  ;;  %v1799_v60 = vpop.f32.mrf.mxu1 }
  0xd7   :  { %v520_v24 = vsel %vm506_vm0, %v1791_v56, 0.0 }
  0xd8   :  { %v521_v28 = vadd.f32 %v520_v24, %v519_v25  ;;  %v538_v24 = vsel %vm506_vm0, %v1749_v37, 0.0 }
  0xdd   :  { %v1841_v21 = vpop.f32.mrf.mxu2 }
  0xde   :  { %v1797_v59 = vpop.f32.mrf.mxu0  ;;  %v1809_v1 = vpop.f32.mrf.mxu1 }
  0xdf   :  { %v522_v27 = vsel %vm506_vm0, %v1797_v59, 0.0 }
  0xe0   :  { %v523_v30 = vadd.f32 %v522_v27, %v521_v28  ;;  %v540_v27 = vsel %vm506_vm0, %v1759_v41, 0.0 }
  0xe5   :  { %v1859_v35 = vpop.f32.mrf.mxu2 }
  0xe6   :  { %v1803_v62 = vpop.f32.mrf.mxu0  ;;  %v1817_v5 = vpop.f32.mrf.mxu1  ;;  %3396 = vst [vmem:[#allocation5_spill] sm:$0xff] %v1859_v35 }
  0xe7   :  { %v524_v29 = vsel %vm506_vm0, %v1803_v62, 0.0 }
  0xe8   :  { %v525_v32 = vadd.f32 %v524_v29, %v523_v30  ;;  %v542_v29 = vsel %vm506_vm0, %v1766_v44, 0.0 }
  0xed   :  { %v1877_v20 = vpop.f32.mrf.mxu2 }
  0xee   :  { %v1807_v0 = vpop.f32.mrf.mxu0  ;;  %v1837_v19 = vpop.f32.mrf.mxu1  ;;  %3397 = vst [vmem:[#allocation6_spill] sm:$0xff] %v1877_v20 }
  0xef   :  { %v526_v31 = vsel %vm506_vm0, %v1807_v0, 0.0 }
  0xf0   :  { %v527_v38 = vadd.f32 %v526_v31, %v525_v32  ;;  %v544_v31 = vsel %vm506_vm0, %v1770_v46, 0.0 }
  0xf6   :  { %v1815_v4 = vpop.f32.mrf.mxu0  ;;  %v1855_v33 = vpop.f32.mrf.mxu1 }
  0xf7   :  { %v528_v34 = vsel %vm506_vm0, %v1815_v4, 0.0 }
  0xf8   :  { %v529_v6 = vadd.f32 %v528_v34, %v527_v38  ;;  %v546_v38 = vsel %vm506_vm0, %v1781_v51, 0.0 }
  0xfe   :  { %v1831_v14 = vpop.f32.mrf.mxu0  ;;  %v1873_v16 = vpop.f32.mrf.mxu1 }
  0xff   :  { %v530_v49 = vsel %vm506_vm0, %v1831_v14, 0.0 }
 0x100   :  { %v531_v10 = vadd.f32 %v530_v49, %v529_v6  ;;  %v1893_v6 = vpop.f32.mrf.mxu2 }
 0x106   :  { %v1847_v26 = vpop.f32.mrf.mxu0  ;;  %v1889_v34 = vpop.f32.mrf.mxu1 }
 0x107   :  { %v532_v9 = vsel %vm506_vm0, %v1847_v26, 0.0  ;;  %3398 = vst [vmem:[#allocation7_spill] sm:$0xff] %v1889_v34 }
 0x108   :  { %v533_v12 = vadd.f32 %v532_v9, %v531_v10  ;;  %v1895_v9 = vpop.f32.mrf.mxu3  ;;  %v548_v10 = vsel %vm506_vm0, %v1787_v54, 0.0 }
 0x10e   :  { %v1861_v39 = vpop.f32.mrf.mxu0 }
 0x10f   :  { %v534_v11 = vsel %vm506_vm0, %v1861_v39, 0.0 }
 0x110   :  { %v535_v13 = vadd.f32 %v534_v11, %v533_v12  ;;  %v550_v12 = vsel %vm506_vm0, %v1793_v57, 0.0 }
 0x116   :  { %v1871_v15 = vpop.f32.mrf.mxu0 }
 0x117   :  { %v536_v17 = vsel %vm506_vm0, %v1871_v15, 0.0 }
 0x118   :  { %v537_v18 = vadd.f32 %v536_v17, %v535_v13  ;;  %v552_v17 = vsel %vm506_vm0, %v1799_v60, 0.0 }
 0x11a   :  { %v539_v25 = vadd.f32 %v538_v24, %v537_v18  ;;  %v554_v24 = vsel %vm506_vm0, %v1809_v1, 0.0 }
 0x11c   :  { %v541_v28 = vadd.f32 %v540_v27, %v539_v25  ;;  %v1905_v27 = vpop.f32.mrf.mxu1 }
 0x11d   :  { %3399 = vst [vmem:[#allocation8_spill] sm:$0xff] %v1905_v27 }
 0x11e   :  { %v543_v30 = vadd.f32 %v542_v29, %v541_v28  ;;  %v556_v28 = vsel %vm506_vm0, %v1817_v5, 0.0 }
 0x120   :  { %v545_v32 = vadd.f32 %v544_v31, %v543_v30  ;;  %v1909_v30 = vpop.f32.mrf.mxu2  ;;  %v1911_v31 = vpop.f32.mrf.mxu3 }
 0x121   :  { %3400 = vst [vmem:[#allocation9_spill] sm:$0xff] %v1911_v31 }
 0x122   :  { %v547_v49 = vadd.f32 %v546_v38, %v545_v32  ;;  %v558_v32 = vsel %vm506_vm0, %v1837_v19, 0.0 }
 0x124   :  { %v549_v11 = vadd.f32 %v548_v10, %v547_v49  ;;  %v560_v49 = vsel %vm506_vm0, %v1855_v33, 0.0 }
 0x126   :  { %v551_v13 = vadd.f32 %v550_v12, %v549_v11  ;;  %v562_v11 = vsel %vm506_vm0, %v1873_v16, 0.0 }
 0x128   :  { %v553_v18 = vadd.f32 %v552_v17, %v551_v13  ;;  %v564_v13 = vsel %vm506_vm0, %v1889_v34, 0.0 }
 0x12a   :  { %v555_v25 = vadd.f32 %v554_v24, %v553_v18  ;;  %v1921_v18 = vpop.f32.mrf.mxu1  ;;  %v566_v24 = vsel %vm506_vm0, %v1905_v27, 0.0 }
 0x12b   :  { %3401 = vst [vmem:[#allocation10_spill] sm:$0xff] %v1921_v18 }
 0x12c   :  { %v557_v29 = vadd.f32 %v556_v28, %v555_v25  ;;  %v1925_v28 = vpop.f32.mrf.mxu2 }
 0x12e   :  { %v559_v38 = vadd.f32 %v558_v32, %v557_v29  ;;  %v1927_v29 = vpop.f32.mrf.mxu3  ;;  %v568_v32 = vsel %vm506_vm0, %v1921_v18, 0.0 }
 0x12f   :  { %3402 = vst [vmem:[#allocation11_spill] sm:$0xff] %v1927_v29 }
 0x130   :  { %v561_v10 = vadd.f32 %v560_v49, %v559_v38  ;;  %v570_v49 = vsel %vm506_vm0, %v1772_v47, 0.0 }
 0x132   :  { %v563_v12 = vadd.f32 %v562_v11, %v561_v10  ;;  %v572_v11 = vsel %vm506_vm0, %v1783_v52, 0.0 }
 0x134   :  { %v565_v17 = vadd.f32 %v564_v13, %v563_v12  ;;  %v574_v13 = vsel %vm506_vm0, %v1789_v55, 0.0  ;;  %v1939_v34 = vpop.f32.mrf.mxu2 }
 0x135   :  { %3403 = vst [vmem:[#allocation12_spill] sm:$0xff] %v1939_v34 }
 0x136   :  { %v567_v25 = vadd.f32 %v566_v24, %v565_v17  ;;  %v576_v24 = vsel %vm506_vm0, %v1795_v58, 0.0  ;;  %v1941_v18 = vpop.f32.mrf.mxu3 }
 0x137   :  { %3404 = vst [vmem:[#allocation13_spill] sm:$0xff] %v1941_v18 }
 0x138   :  { %v569_v38 = vadd.f32 %v568_v32, %v567_v25  ;;  %v578_v25 = vsel %vm506_vm0, %v1801_v61, 0.0 }
 0x13a   :  { %v571_v10 = vadd.f32 %v570_v49, %v569_v38  ;;  %v580_v38 = vsel %vm506_vm0, %v1811_v2, 0.0 }
 0x13c   :  { %v573_v12 = vadd.f32 %v572_v11, %v571_v10  ;;  %v582_v10 = vsel %vm506_vm0, %v1821_v7, 0.0  ;;  %v1953_v58 = vpop.f32.mrf.mxu2 }
 0x13e   :  { %v575_v17 = vadd.f32 %v574_v13, %v573_v12  ;;  %v584_v12 = vsel %vm506_vm0, %v1841_v21, 0.0  ;;  %v1955_v61 = vpop.f32.mrf.mxu3 }
 0x13f   :  { %3405 = vst [vmem:[#allocation14_spill] sm:$0xff] %v1955_v61 }
 0x140   :  { %v577_v27 = vadd.f32 %v576_v24, %v575_v17  ;;  %v586_v17 = vsel %vm506_vm0, %v1859_v35, 0.0 }
 0x142   :  { %v579_v32 = vadd.f32 %v578_v25, %v577_v27  ;;  %v588_v27 = vsel %vm506_vm0, %v1877_v20, 0.0 }
 0x144   :  { %v581_v49 = vadd.f32 %v580_v38, %v579_v32  ;;  %v590_v32 = vsel %vm506_vm0, %v1893_v6, 0.0  ;;  %v1967_v35 = vpop.f32.mrf.mxu2 }
 0x146   :  { %v583_v11 = vadd.f32 %v582_v10, %v581_v49  ;;  %v592_v49 = vsel %vm506_vm0, %v1909_v30, 0.0  ;;  %v1969_v20 = vpop.f32.mrf.mxu3 }
 0x147   :  { %3406 = vst [vmem:[#allocation15_spill] sm:$0xff] %v1969_v20 }
 0x148   :  { %v585_v13 = vadd.f32 %v584_v12, %v583_v11  ;;  %v594_v11 = vsel %vm506_vm0, %v1925_v28, 0.0 }
 0x14a   :  { %v587_v24 = vadd.f32 %v586_v17, %v585_v13  ;;  %v596_v13 = vsel %vm506_vm0, %v1939_v34, 0.0 }
 0x14c   :  { %v589_v25 = vadd.f32 %v588_v27, %v587_v24  ;;  %v598_v24 = vsel %vm506_vm0, %v1953_v58, 0.0 }
 0x14e   :  { %v591_v38 = vadd.f32 %v590_v32, %v589_v25  ;;  %v600_v25 = vsel %vm506_vm0, %v1967_v35, 0.0  ;;  %v1981_v34 = vpop.f32.mrf.mxu3 }
 0x14f   :  { %3407 = vst [vmem:[#allocation16_spill] sm:$0xff] %v1981_v34 }
 0x150   :  { %v593_v10 = vadd.f32 %v592_v49, %v591_v38  ;;  %v602_v38 = vsel %vm506_vm0, %v1805_v63, 0.0 }
 0x152   :  { %v595_v12 = vadd.f32 %v594_v11, %v593_v10  ;;  %v604_v10 = vsel %vm506_vm0, %v1813_v3, 0.0 }
 0x154   :  { %v597_v17 = vadd.f32 %v596_v13, %v595_v12  ;;  %v606_v12 = vsel %vm506_vm0, %v1823_v8, 0.0 }
 0x156   :  { %v599_v27 = vadd.f32 %v598_v24, %v597_v17  ;;  %v608_v17 = vsel %vm506_vm0, %v1843_v23, 0.0  ;;  %v1993_v8 = vpop.f32.mrf.mxu3 }
 0x157   :  { %3408 = vst [vmem:[#allocation17_spill] sm:$0xff] %v1993_v8 }
 0x158   :  { %v601_v32 = vadd.f32 %v600_v25, %v599_v27  ;;  %v610_v27 = vsel %vm506_vm0, %v1863_v43, 0.0 }
 0x15a   :  { %v603_v49 = vadd.f32 %v602_v38, %v601_v32  ;;  %v612_v32 = vsel %vm506_vm0, %v1879_v22, 0.0 }
 0x15c   :  { %v605_v11 = vadd.f32 %v604_v10, %v603_v49  ;;  %v614_v49 = vsel %vm506_vm0, %v1895_v9, 0.0 }
 0x15e   :  { %v607_v13 = vadd.f32 %v606_v12, %v605_v11  ;;  %v616_v11 = vsel %vm506_vm0, %v1911_v31, 0.0  ;;  %v2003_v31 = vpop.f32.mrf.mxu3 }
 0x15f   :  { %3409 = vst [vmem:[#allocation18_spill] sm:$0xff] %v2003_v31 }
 0x160   :  { %v609_v24 = vadd.f32 %v608_v17, %v607_v13  ;;  %v618_v13 = vsel %vm506_vm0, %v1927_v29, 0.0 }
 0x162   :  { %v611_v25 = vadd.f32 %v610_v27, %v609_v24  ;;  %v620_v24 = vsel %vm506_vm0, %v1941_v18, 0.0 }
 0x164   :  { %v613_v38 = vadd.f32 %v612_v32, %v611_v25  ;;  %v622_v25 = vsel %vm506_vm0, %v1955_v61, 0.0 }
 0x166   :  { %v615_v10 = vadd.f32 %v614_v49, %v613_v38  ;;  %v624_v38 = vsel %vm506_vm0, %v1969_v20, 0.0  ;;  %v2011_v61 = vpop.f32.mrf.mxu3 }
 0x168   :  { %v617_v12 = vadd.f32 %v616_v11, %v615_v10  ;;  %v626_v10 = vsel %vm506_vm0, %v1981_v34, 0.0 }
 0x16a   :  { %v619_v17 = vadd.f32 %v618_v13, %v617_v12  ;;  %v628_v12 = vsel %vm506_vm0, %v1993_v8, 0.0 }
 0x16c   :  { %v621_v27 = vadd.f32 %v620_v24, %v619_v17  ;;  %v630_v17 = vsel %vm506_vm0, %v2003_v31, 0.0 }
 0x16e   :  { %v623_v32 = vadd.f32 %v622_v25, %v621_v27  ;;  %v632_v27 = vsel %vm506_vm0, %v2011_v61, 0.0 }
 0x170   :  { %v625_v49 = vadd.f32 %v624_v38, %v623_v32  ;;  %v1613_v32 = vmov 512.0  }
 0x171   :  { %1609 = vrcp.f32 %v1613_v32 }
 0x172   :  { %v627_v11 = vadd.f32 %v626_v10, %v625_v49 }
 0x174   :  { %v629_v13 = vadd.f32 %v628_v12, %v627_v11 }
 0x176   :  { %v631_v24 = vadd.f32 %v630_v17, %v629_v13 }
 0x177   :  { %v1610_v20 = vpop.eup %1609 }
 0x178   :  { %v633_v25 = vadd.f32 %v632_v27, %v631_v24  ;;  %v641_v49 = vmul.f32 512.0, %v1610_v20  ;;  %vm645_vm1 = vweird.f32 %v1610_v20 }
 0x17a   :  { %v634_v38 = vrot.slane %v633_v25, 4  ;;  %v642_v18 = vsub.f32 1.0, %v641_v49 }
 0x17c   :  { %v635_v34 = vadd.f32 %v634_v38, %v633_v25  ;;  %v643_v11 = vmul.f32 %v1610_v20, %v642_v18 }
 0x17e   :  { %v636_v10 = vrot.slane %v635_v34, 2  ;;  %v644_v29 = vadd.f32 %v1610_v20, %v643_v11 }
 0x180   :  { %v637_v8 = vadd.f32 %v636_v10, %v635_v34  ;;  %v2015_v17 = vsel %vm645_vm1, %v1610_v20, %v644_v29 }
 0x182   :  { %v638_v12 = vrot.slane %v637_v8, 1 }
 0x184   :  { %v639_v13 = vadd.f32 %v638_v12, %v637_v8 }
 0x186   :  { %v2018_v31 = vmul.f32 %v2015_v17, %v639_v13 }
 0x188   :  { %v2022_v24 = vsub.f32 %v1747_v36, %v2018_v31  ;;  %v2026_v27 = vsub.f32 %v1757_v40, %v2018_v31  ;;  %v2030_v34 = vsub.f32 %v1761_v42, %v2018_v31  ;;  %v2034_v8 = vsub.f32 %v1768_v45, %v2018_v31 }
 0x189   :  { %v2042_v36 = vsub.f32 %v1774_v48, %v2018_v31  ;;  %v2048_v42 = vsub.f32 %v1779_v50, %v2018_v31  ;;  %v2056_v38 = vsub.f32 %v1785_v53, %v2018_v31  ;;  %v2063_v50 = vsub.f32 %v1791_v56, %v2018_v31 }
 0x18a   :  { %v712_v20 = vmul.f32 %v2022_v24, %v2022_v24  ;;  %v713_v18 = vmul.f32 %v2026_v27, %v2026_v27  ;;  %v714_v40 = vmul.f32 %v2030_v34, %v2030_v34  ;;  %v715_v45 = vmul.f32 %v2034_v8, %v2034_v8 }
 0x18b   :  { %v716_v48 = vmul.f32 %v2042_v36, %v2042_v36  ;;  %v717_v11 = vmul.f32 %v2048_v42, %v2048_v42  ;;  %v2070_v53 = vsub.f32 %v1797_v59, %v2018_v31  ;;  %v2077_v56 = vsub.f32 %v1803_v62, %v2018_v31 }
 0x18c   :  { %v776_v29 = vsel %vm506_vm0, %v712_v20, 0.0  ;;  %v777_v25 = vsel %vm506_vm0, %v713_v18, 0.0  ;;  %v779_v49 = vsel %vm506_vm0, %v714_v40, 0.0  ;;  %v781_v12 = vsel %vm506_vm0, %v715_v45, 0.0 }
 0x18d   :  { %v778_v32 = vadd.f32 %v777_v25, %v776_v29  ;;  %v718_v20 = vmul.f32 %v2056_v38, %v2056_v38  ;;  %v783_v18 = vsel %vm506_vm0, %v716_v48, 0.0  ;;  %v719_v29 = vmul.f32 %v2063_v50, %v2063_v50 }
 0x18e   :  { %v785_v45 = vsel %vm506_vm0, %v717_v11, 0.0  ;;  %v2084_v59 = vsub.f32 %v1807_v0, %v2018_v31  ;;  %v2091_v62 = vsub.f32 %v1815_v4, %v2018_v31  ;;  %v2098_v0 = vsub.f32 %v1831_v14, %v2018_v31 }
 0x18f   :  { %v780_v10 = vadd.f32 %v779_v49, %v778_v32  ;;  %v720_v32 = vmul.f32 %v2070_v53, %v2070_v53  ;;  %v787_v48 = vsel %vm506_vm0, %v718_v20, 0.0  ;;  %v789_v11 = vsel %vm506_vm0, %v719_v29, 0.0 }
 0x190   :  { %v2105_v4 = vsub.f32 %v1847_v26, %v2018_v31  ;;  %v2112_v14 = vsub.f32 %v1861_v39, %v2018_v31  ;;  %v2119_v26 = vsub.f32 %v1871_v15, %v2018_v31  ;;  %v2126_v39 = vsub.f32 %v1749_v37, %v2018_v31 }
 0x191   :  { %v782_v13 = vadd.f32 %v781_v12, %v780_v10  ;;  %v721_v10 = vmul.f32 %v2077_v56, %v2077_v56  ;;  %v791_v20 = vsel %vm506_vm0, %v720_v32, 0.0  ;;  %v2133_v15 = vsub.f32 %v1759_v41, %v2018_v31 }
 0x192   :  { %v2140_v37 = vsub.f32 %v1766_v44, %v2018_v31  ;;  %v2147_v41 = vsub.f32 %v1770_v46, %v2018_v31  ;;  %v2154_v44 = vsub.f32 %v1781_v51, %v2018_v31  ;;  %v2161_v46 = vsub.f32 %v1787_v54, %v2018_v31 }
 0x193   :  { %v784_v40 = vadd.f32 %v783_v18, %v782_v13  ;;  %v722_v13 = vmul.f32 %v2084_v59, %v2084_v59  ;;  %v793_v29 = vsel %vm506_vm0, %v721_v10, 0.0  ;;  %v2168_v51 = vsub.f32 %v1793_v57, %v2018_v31 }
 0x194   :  { %v2175_v54 = vsub.f32 %v1799_v60, %v2018_v31  ;;  %v2182_v57 = vsub.f32 %v1809_v1, %v2018_v31  ;;  %v2189_v60 = vsub.f32 %v1817_v5, %v2018_v31  ;;  %v2196_v1 = vsub.f32 %v1837_v19, %v2018_v31 }
 0x195   :  { %v786_v25 = vadd.f32 %v785_v45, %v784_v40  ;;  %v723_v40 = vmul.f32 %v2091_v62, %v2091_v62  ;;  %v795_v32 = vsel %vm506_vm0, %v722_v13, 0.0  ;;  %v2203_v5 = vsub.f32 %v1855_v33, %v2018_v31 }
 0x196   :  { %v2210_v19 = vsub.f32 %v1873_v16, %v2018_v31 }
 0x197   :  { %v788_v49 = vadd.f32 %v787_v48, %v786_v25  ;;  %v724_v25 = vmul.f32 %v2098_v0, %v2098_v0  ;;  %v797_v10 = vsel %vm506_vm0, %v723_v40, 0.0 }
 0x199   :  { %v790_v12 = vadd.f32 %v789_v11, %v788_v49  ;;  %v725_v49 = vmul.f32 %v2105_v4, %v2105_v4  ;;  %v799_v13 = vsel %vm506_vm0, %v724_v25, 0.0 }
 0x19b   :  { %v792_v18 = vadd.f32 %v791_v20, %v790_v12  ;;  %v726_v12 = vmul.f32 %v2112_v14, %v2112_v14  ;;  %v801_v40 = vsel %vm506_vm0, %v725_v49, 0.0 }
 0x19d   :  { %v794_v45 = vadd.f32 %v793_v29, %v792_v18  ;;  %v727_v18 = vmul.f32 %v2119_v26, %v2119_v26  ;;  %v803_v25 = vsel %vm506_vm0, %v726_v12, 0.0 }
 0x19f   :  { %v796_v48 = vadd.f32 %v795_v32, %v794_v45  ;;  %v728_v45 = vmul.f32 %v2126_v39, %v2126_v39  ;;  %v805_v49 = vsel %vm506_vm0, %v727_v18, 0.0 }
 0x1a1   :  { %v798_v11 = vadd.f32 %v797_v10, %v796_v48  ;;  %v729_v48 = vmul.f32 %v2133_v15, %v2133_v15  ;;  %v807_v12 = vsel %vm506_vm0, %v728_v45, 0.0 }
 0x1a3   :  { %v800_v20 = vadd.f32 %v799_v13, %v798_v11  ;;  %v730_v11 = vmul.f32 %v2140_v37, %v2140_v37  ;;  %v809_v18 = vsel %vm506_vm0, %v729_v48, 0.0 }
 0x1a5   :  { %v802_v29 = vadd.f32 %v801_v40, %v800_v20  ;;  %v731_v20 = vmul.f32 %v2147_v41, %v2147_v41  ;;  %v811_v45 = vsel %vm506_vm0, %v730_v11, 0.0 }
 0x1a7   :  { %v804_v32 = vadd.f32 %v803_v25, %v802_v29  ;;  %v732_v29 = vmul.f32 %v2154_v44, %v2154_v44  ;;  %v813_v48 = vsel %vm506_vm0, %v731_v20, 0.0 }
 0x1a9   :  { %v806_v10 = vadd.f32 %v805_v49, %v804_v32  ;;  %v733_v32 = vmul.f32 %v2161_v46, %v2161_v46  ;;  %v815_v11 = vsel %vm506_vm0, %v732_v29, 0.0 }
 0x1ab   :  { %v808_v13 = vadd.f32 %v807_v12, %v806_v10  ;;  %v734_v10 = vmul.f32 %v2168_v51, %v2168_v51  ;;  %v817_v20 = vsel %vm506_vm0, %v733_v32, 0.0 }
 0x1ad   :  { %v810_v40 = vadd.f32 %v809_v18, %v808_v13  ;;  %v735_v13 = vmul.f32 %v2175_v54, %v2175_v54  ;;  %v819_v29 = vsel %vm506_vm0, %v734_v10, 0.0 }
 0x1af   :  { %v812_v25 = vadd.f32 %v811_v45, %v810_v40  ;;  %v736_v40 = vmul.f32 %v2182_v57, %v2182_v57  ;;  %v821_v32 = vsel %vm506_vm0, %v735_v13, 0.0 }
 0x1b1   :  { %v814_v49 = vadd.f32 %v813_v48, %v812_v25  ;;  %v737_v25 = vmul.f32 %v2189_v60, %v2189_v60  ;;  %v823_v10 = vsel %vm506_vm0, %v736_v40, 0.0 }
 0x1b3   :  { %v816_v12 = vadd.f32 %v815_v11, %v814_v49  ;;  %v738_v49 = vmul.f32 %v2196_v1, %v2196_v1  ;;  %v825_v13 = vsel %vm506_vm0, %v737_v25, 0.0 }
 0x1b5   :  { %v818_v18 = vadd.f32 %v817_v20, %v816_v12  ;;  %v3410_v12 = vld [vmem:[#allocation7_spill] sm:$0xff]  ;;  %v739_v20 = vmul.f32 %v2203_v5, %v2203_v5  ;;  %v827_v40 = vsel %vm506_vm0, %v738_v49, 0.0 }
 0x1b6   :  { %v2217_v33 = vsub.f32 %v3410_v12, %v2018_v31 }
 0x1b7   :  { %v820_v45 = vadd.f32 %v819_v29, %v818_v18  ;;  %v3411_v29 = vld [vmem:[#allocation8_spill] sm:$0xff]  ;;  %v829_v25 = vsel %vm506_vm0, %v739_v20, 0.0 }
 0x1b8   :  { %v2224_v16 = vsub.f32 %v3411_v29, %v2018_v31  ;;  %v741_v12 = vmul.f32 %v2217_v33, %v2217_v33 }
 0x1b9   :  { %v822_v48 = vadd.f32 %v821_v32, %v820_v45  ;;  %v740_v45 = vmul.f32 %v2210_v19, %v2210_v19 }
 0x1ba   :  { %v742_v29 = vmul.f32 %v2224_v16, %v2224_v16  ;;  %v833_v20 = vsel %vm506_vm0, %v741_v12, 0.0 }
 0x1bb   :  { %v824_v11 = vadd.f32 %v823_v10, %v822_v48  ;;  %v3412_v48 = vld [vmem:[#allocation10_spill] sm:$0xff]  ;;  %v831_v49 = vsel %vm506_vm0, %v740_v45, 0.0 }
 0x1bc   :  { %v2231_v10 = vsub.f32 %v3412_v48, %v2018_v31  ;;  %v835_v45 = vsel %vm506_vm0, %v742_v29, 0.0 }
 0x1bd   :  { %v826_v18 = vadd.f32 %v825_v13, %v824_v11  ;;  %v2238_v13 = vsub.f32 %v1772_v47, %v2018_v31  ;;  %v2252_v47 = vsub.f32 %v1789_v55, %v2018_v31 }
 0x1be   :  { %3413 = vst [vmem:[#allocation7_spill] sm:$0xff] %v2231_v10  ;;  %v743_v48 = vmul.f32 %v2231_v10, %v2231_v10 }
 0x1bf   :  { %v828_v32 = vadd.f32 %v827_v40, %v826_v18  ;;  %3414 = vst [vmem:[#allocation8_spill] sm:$0xff] %v2238_v13  ;;  %v2245_v40 = vsub.f32 %v1783_v52, %v2018_v31 }
 0x1c0   :  { %v837_v12 = vsel %vm506_vm0, %v743_v48, 0.0 }
 0x1c1   :  { %v830_v11 = vadd.f32 %v829_v25, %v828_v32  ;;  %v744_v25 = vmul.f32 %v2238_v13, %v2238_v13  ;;  %v745_v10 = vmul.f32 %v2245_v40, %v2245_v40  ;;  %v746_v13 = vmul.f32 %v2252_v47, %v2252_v47 }
 0x1c3   :  { %v832_v18 = vadd.f32 %v831_v49, %v830_v11  ;;  %v3415_v49 = vld [vmem:[#allocation2_spill] sm:$0xff]  ;;  %v839_v29 = vsel %vm506_vm0, %v744_v25, 0.0  ;;  %v841_v48 = vsel %vm506_vm0, %v745_v10, 0.0  ;;  %v843_v25 = vsel %vm506_vm0, %v746_v13, 0.0 }
 0x1c4   :  { %v2259_v52 = vsub.f32 %v3415_v49, %v2018_v31 }
 0x1c5   :  { %v834_v32 = vadd.f32 %v833_v20, %v832_v18  ;;  %v3416_v20 = vld [vmem:[#allocation3_spill] sm:$0xff] }
 0x1c6   :  { %v2266_v55 = vsub.f32 %v3416_v20, %v2018_v31  ;;  %v747_v49 = vmul.f32 %v2259_v52, %v2259_v52 }
 0x1c7   :  { %v836_v11 = vadd.f32 %v835_v45, %v834_v32  ;;  %v2273_v45 = vsub.f32 %v1811_v2, %v2018_v31  ;;  %v2287_v2 = vsub.f32 %v1841_v21, %v2018_v31 }
 0x1c8   :  { %3417 = vst [vmem:[#allocation10_spill] sm:$0xff] %v2266_v55  ;;  %v748_v20 = vmul.f32 %v2266_v55, %v2266_v55  ;;  %v845_v10 = vsel %vm506_vm0, %v747_v49, 0.0 }
 0x1c9   :  { %v838_v18 = vadd.f32 %v837_v12, %v836_v11  ;;  %3418 = vst [vmem:[#allocation2_spill] sm:$0xff] %v2273_v45  ;;  %v2280_v12 = vsub.f32 %v1821_v7, %v2018_v31 }
 0x1ca   :  { %v847_v13 = vsel %vm506_vm0, %v748_v20, 0.0 }
 0x1cb   :  { %v840_v32 = vadd.f32 %v839_v29, %v838_v18  ;;  %v749_v29 = vmul.f32 %v2273_v45, %v2273_v45  ;;  %v750_v55 = vmul.f32 %v2280_v12, %v2280_v12  ;;  %v751_v45 = vmul.f32 %v2287_v2, %v2287_v2 }
 0x1cd   :  { %v842_v11 = vadd.f32 %v841_v48, %v840_v32  ;;  %v3419_v48 = vld [vmem:[#allocation5_spill] sm:$0xff]  ;;  %v849_v49 = vsel %vm506_vm0, %v749_v29, 0.0  ;;  %v851_v20 = vsel %vm506_vm0, %v750_v55, 0.0  ;;  %v853_v29 = vsel %vm506_vm0, %v751_v45, 0.0 }
 0x1ce   :  { %v2294_v7 = vsub.f32 %v3419_v48, %v2018_v31 }
 0x1cf   :  { %v844_v18 = vadd.f32 %v843_v25, %v842_v11  ;;  %v3420_v25 = vld [vmem:[#allocation6_spill] sm:$0xff] }
 0x1d0   :  { %v2301_v21 = vsub.f32 %v3420_v25, %v2018_v31  ;;  %v752_v48 = vmul.f32 %v2294_v7, %v2294_v7 }
 0x1d1   :  { %v846_v32 = vadd.f32 %v845_v10, %v844_v18  ;;  %v2308_v10 = vsub.f32 %v1893_v6, %v2018_v31  ;;  %v2322_v6 = vsub.f32 %v1925_v28, %v2018_v31  ;;  %v2336_v28 = vsub.f32 %v1953_v58, %v2018_v31 }
 0x1d2   :  { %3421 = vst [vmem:[#allocation3_spill] sm:$0xff] %v2301_v21  ;;  %v753_v25 = vmul.f32 %v2301_v21, %v2301_v21  ;;  %v855_v55 = vsel %vm506_vm0, %v752_v48, 0.0  ;;  %v2350_v58 = vsub.f32 %v1805_v63, %v2018_v31 }
 0x1d3   :  { %v848_v11 = vadd.f32 %v847_v13, %v846_v32  ;;  %v2315_v13 = vsub.f32 %v1909_v30, %v2018_v31  ;;  %3423 = vst [vmem:[#allocation5_spill] sm:$0xff] %v2336_v28 }
 0x1d4   :  { %v857_v45 = vsel %vm506_vm0, %v753_v25, 0.0  ;;  %3424 = vst [vmem:[#allocation6_spill] sm:$0xff] %v2350_v58 }
 0x1d5   :  { %v850_v18 = vadd.f32 %v849_v49, %v848_v11  ;;  %v754_v49 = vmul.f32 %v2308_v10, %v2308_v10  ;;  %v755_v21 = vmul.f32 %v2315_v13, %v2315_v13 }
 0x1d7   :  { %v852_v32 = vadd.f32 %v851_v20, %v850_v18  ;;  %v3422_v20 = vld [vmem:[#allocation12_spill] sm:$0xff]  ;;  %v859_v48 = vsel %vm506_vm0, %v754_v49, 0.0  ;;  %v861_v25 = vsel %vm506_vm0, %v755_v21, 0.0 }
 0x1d8   :  { %v2329_v30 = vsub.f32 %v3422_v20, %v2018_v31 }
 0x1d9   :  { %v854_v11 = vadd.f32 %v853_v29, %v852_v32  ;;  %v756_v29 = vmul.f32 %v2322_v6, %v2322_v6 }
 0x1da   :  { %v757_v20 = vmul.f32 %v2329_v30, %v2329_v30 }
 0x1db   :  { %v856_v18 = vadd.f32 %v855_v55, %v854_v11  ;;  %v2343_v55 = vsub.f32 %v1967_v35, %v2018_v31  ;;  %v863_v49 = vsel %vm506_vm0, %v756_v29, 0.0  ;;  %v2357_v35 = vsub.f32 %v1813_v3, %v2018_v31 }
 0x1dc   :  { %v865_v21 = vsel %vm506_vm0, %v757_v20, 0.0  ;;  %v2371_v3 = vsub.f32 %v1843_v23, %v2018_v31  ;;  %v2385_v23 = vsub.f32 %v1879_v22, %v2018_v31 }
 0x1dd   :  { %v858_v32 = vadd.f32 %v857_v45, %v856_v18  ;;  %v758_v45 = vmul.f32 %v2336_v28, %v2336_v28  ;;  %3425 = vst [vmem:[#allocation12_spill] sm:$0xff] %v2357_v35  ;;  %v760_v28 = vmul.f32 %v2350_v58, %v2350_v58 }
 0x1de   :  { %3428 = vst [vmem:[#allocation19_spill] sm:$0xff] %v2371_v3 }
 0x1df   :  { %v860_v11 = vadd.f32 %v859_v48, %v858_v32  ;;  %v759_v48 = vmul.f32 %v2343_v55, %v2343_v55  ;;  %v867_v29 = vsel %vm506_vm0, %v758_v45, 0.0  ;;  %v871_v45 = vsel %vm506_vm0, %v760_v28, 0.0  ;;  %3430 = vst [vmem:[#allocation21_spill] sm:$0xff] %v2385_v23 }
 0x1e1   :  { %v862_v18 = vadd.f32 %v861_v25, %v860_v11  ;;  %v3426_v25 = vld [vmem:[#allocation4_spill] sm:$0xff]  ;;  %v869_v20 = vsel %vm506_vm0, %v759_v48, 0.0 }
 0x1e2   :  { %v2364_v63 = vsub.f32 %v3426_v25, %v2018_v31 }
 0x1e3   :  { %v864_v32 = vadd.f32 %v863_v49, %v862_v18  ;;  %v761_v49 = vmul.f32 %v2357_v35, %v2357_v35 }
 0x1e4   :  { %3427 = vst [vmem:[#allocation4_spill] sm:$0xff] %v2364_v63  ;;  %v762_v25 = vmul.f32 %v2364_v63, %v2364_v63 }
 0x1e5   :  { %v866_v11 = vadd.f32 %v865_v21, %v864_v32  ;;  %v2378_v21 = vsub.f32 %v1863_v43, %v2018_v31  ;;  %v873_v48 = vsel %vm506_vm0, %v761_v49, 0.0  ;;  %v2392_v43 = vsub.f32 %v1895_v9, %v2018_v31 }
 0x1e6   :  { %v875_v28 = vsel %vm506_vm0, %v762_v25, 0.0 }
 0x1e7   :  { %v868_v18 = vadd.f32 %v867_v29, %v866_v11  ;;  %3429 = vst [vmem:[#allocation20_spill] sm:$0xff] %v2378_v21  ;;  %v763_v29 = vmul.f32 %v2371_v3, %v2371_v3  ;;  %v765_v3 = vmul.f32 %v2385_v23, %v2385_v23 }
 0x1e8   :  { %3431 = vst [vmem:[#allocation22_spill] sm:$0xff] %v2392_v43 }
 0x1e9   :  { %v870_v32 = vadd.f32 %v869_v20, %v868_v18  ;;  %v764_v20 = vmul.f32 %v2378_v21, %v2378_v21  ;;  %v877_v49 = vsel %vm506_vm0, %v763_v29, 0.0  ;;  %v766_v21 = vmul.f32 %v2392_v43, %v2392_v43 }
 0x1ea   :  { %v881_v29 = vsel %vm506_vm0, %v765_v3, 0.0 }
 0x1eb   :  { %v872_v11 = vadd.f32 %v871_v45, %v870_v32  ;;  %v3432_v45 = vld [vmem:[#allocation9_spill] sm:$0xff]  ;;  %v879_v25 = vsel %vm506_vm0, %v764_v20, 0.0  ;;  %v883_v20 = vsel %vm506_vm0, %v766_v21, 0.0 }
 0x1ec   :  { %v2399_v22 = vsub.f32 %v3432_v45, %v2018_v31 }
 0x1ed   :  { %v874_v18 = vadd.f32 %v873_v48, %v872_v11  ;;  %v3434_v48 = vld [vmem:[#allocation11_spill] sm:$0xff] }
 0x1ee   :  { %3433 = vst [vmem:[#allocation9_spill] sm:$0xff] %v2399_v22  ;;  %v2406_v9 = vsub.f32 %v3434_v48, %v2018_v31  ;;  %v767_v23 = vmul.f32 %v2399_v22, %v2399_v22 }
 0x1ef   :  { %v876_v32 = vadd.f32 %v875_v28, %v874_v18  ;;  %v3436_v28 = vld [vmem:[#allocation13_spill] sm:$0xff] }
 0x1f0   :  { %3435 = vst [vmem:[#allocation11_spill] sm:$0xff] %v2406_v9  ;;  %v2413_v45 = vsub.f32 %v3436_v28, %v2018_v31  ;;  %v768_v43 = vmul.f32 %v2406_v9, %v2406_v9  ;;  %v885_v3 = vsel %vm506_vm0, %v767_v23, 0.0  ;;  %v3442_v9 = vld [vmem:[#allocation16_spill] sm:$0xff]  ;;  %v3444_v23 = vld [vmem:[#allocation17_spill] sm:$0xff] }
 0x1f1   :  { %v878_v11 = vadd.f32 %v877_v49, %v876_v32  ;;  %v3438_v49 = vld [vmem:[#allocation14_spill] sm:$0xff]  ;;  %v2437_v63 = vsub.f32 %v3442_v9, %v2018_v31 }
 0x1f2   :  { %3437 = vst [vmem:[#allocation13_spill] sm:$0xff] %v2413_v45  ;;  %v2420_v48 = vsub.f32 %v3438_v49, %v2018_v31  ;;  %v769_v22 = vmul.f32 %v2413_v45, %v2413_v45  ;;  %v887_v49 = vsel %vm506_vm0, %v768_v43, 0.0 }
 0x1f3   :  { %v880_v18 = vadd.f32 %v879_v25, %v878_v11  ;;  %v3440_v25 = vld [vmem:[#allocation15_spill] sm:$0xff]  ;;  %3443 = vst [vmem:[#allocation16_spill] sm:$0xff] %v2437_v63  ;;  %v772_v43 = vmul.f32 %v2437_v63, %v2437_v63 }
 0x1f4   :  { %3439 = vst [vmem:[#allocation14_spill] sm:$0xff] %v2420_v48  ;;  %v2427_v28 = vsub.f32 %v3440_v25, %v2018_v31 }
 0x1f5   :  { %v882_v32 = vadd.f32 %v881_v29, %v880_v18  ;;  %v770_v29 = vmul.f32 %v2420_v48, %v2420_v48 }
 0x1f6   :  { %3441 = vst [vmem:[#allocation15_spill] sm:$0xff] %v2427_v28 }
 0x1f7   :  { %v884_v11 = vadd.f32 %v883_v20, %v882_v32  ;;  %v771_v32 = vmul.f32 %v2427_v28, %v2427_v28  ;;  %v889_v20 = vsel %vm506_vm0, %v769_v22, 0.0  ;;  %v891_v45 = vsel %vm506_vm0, %v770_v29, 0.0 }
 0x1f8   :  { %v895_v29 = vsel %vm506_vm0, %v772_v43, 0.0 }
 0x1f9   :  { %v886_v18 = vadd.f32 %v885_v3, %v884_v11  ;;  %v2445_v11 = vsub.f32 %v3444_v23, %v2018_v31  ;;  %v893_v9 = vsel %vm506_vm0, %v771_v32, 0.0 }
 0x1fb   :  { %v888_v21 = vadd.f32 %v887_v49, %v886_v18  ;;  %3445 = vst [vmem:[#allocation17_spill] sm:$0xff] %v2445_v11  ;;  %v3446_v18 = vld [vmem:[#allocation18_spill] sm:$0xff]  ;;  %v773_v22 = vmul.f32 %v2445_v11, %v2445_v11 }
 0x1fc   :  { %v2452_v49 = vsub.f32 %v3446_v18, %v2018_v31 }
 0x1fd   :  { %v890_v25 = vadd.f32 %v889_v20, %v888_v21  ;;  %v711_v20 = vsub.f32 %v2011_v61, %v2018_v31 }
 0x1fe   :  { %3447 = vst [vmem:[#allocation18_spill] sm:$0xff] %v2452_v49  ;;  %v774_v23 = vmul.f32 %v2452_v49, %v2452_v49 }
 0x1ff   :  { %v892_v3 = vadd.f32 %v891_v45, %v890_v25  ;;  %v897_v45 = vsel %vm506_vm0, %v773_v22, 0.0  ;;  %v775_v25 = vmul.f32 %v711_v20, %v711_v20 }
 0x201   :  { %v894_v48 = vadd.f32 %v893_v9, %v892_v3  ;;  %v899_v3 = vsel %vm506_vm0, %v774_v23, 0.0  ;;  %v901_v18 = vsel %vm506_vm0, %v775_v25, 0.0 }
 0x203   :  { %v896_v21 = vadd.f32 %v895_v29, %v894_v48 }
 0x205   :  { %v898_v32 = vadd.f32 %v897_v45, %v896_v21 }
 0x207   :  { %v900_v9 = vadd.f32 %v899_v3, %v898_v32 }
 0x209   :  { %v902_v63 = vadd.f32 %v901_v18, %v900_v9  ;;  %v3449_v9 = vld [vmem:[#allocation7_spill] sm:$0xff]  ;;  %v3450_v18 = vld [vmem:[#allocation8_spill] sm:$0xff] }
 0x20b   :  { %v903_v11 = vrot.slane %v902_v63, 4 }
 0x20d   :  { %v904_v28 = vadd.f32 %v903_v11, %v902_v63 }
 0x20f   :  { %v905_v43 = vrot.slane %v904_v28, 2 }
 0x211   :  { %v906_v48 = vadd.f32 %v905_v43, %v904_v28  ;;  %v2471_v28 = vld [vmem:[%s3351_s2] ss:$0 sm:$0xff] }
 0x212   :  { %v3451_v43 = vld [vmem:[#allocation10_spill] sm:$0xff] }
 0x213   :  { %v907_v29 = vrot.slane %v906_v48, 1 }
 0x215   :  { %v908_v35 = vadd.f32 %v907_v29, %v906_v48  ;;  %v3452_v29 = vld [vmem:[#allocation2_spill] sm:$0xff] }
 0x217   :  { %v909_v61 = vmul.f32 %v908_v35, %v2015_v17  ;;  %v2477_v35 = vld [vmem:[%s3352_s3] ss:$0 sm:$0xff] }
 0x219   :  { %v910_v31 = vadd.f32 1e-05, %v909_v61 }
 0x21b   :  { %1611 = vrsqrt.f32 %v910_v31  ;;  %vm917_vm3 = vweird.f32 %v910_v31 }
 0x221   :  { %v1612_v49 = vpop.eup %1611 }
 0x222   :  { %v912_v22 = vmul.f32 %v1612_v49, %v910_v31  ;;  %vm918_vm2 = vweird.f32 %v1612_v49  ;;  %v3453_v31 = vld [vmem:[#allocation3_spill] sm:$0xff] }
 0x223   :  { %vm919_vm4 = vmor %vm917_vm3, %vm918_vm2 }
 0x224   :  { %v913_v21 = vmul.f32 %v1612_v49, %v912_v22 }
 0x226   :  { %v914_v45 = vmul.f32 0.5, %v913_v21 }
 0x228   :  { %v915_v58 = vsub.f32 1.5, %v914_v45  ;;  %v3454_v45 = vld [vmem:[#allocation5_spill] sm:$0xff] }
 0x22a   :  { %v916_v23 = vmul.f32 %v1612_v49, %v915_v58 }
 0x22c   :  { %v2465_v32 = vsel %vm919_vm4, %v1612_v49, %v916_v23 }
 0x22d   :  { %v984_v63 = vmul.f32 %v2465_v32, %v711_v20  ;;  %v2484_v11 = vmul.f32 %v2465_v32, %v2022_v24  ;;  %v2488_v49 = vmul.f32 %v2465_v32, %v2026_v27  ;;  %v2492_v20 = vmul.f32 %v2465_v32, %v2030_v34 }
 0x22e   :  { %v2496_v25 = vmul.f32 %v2465_v32, %v2034_v8  ;;  %v2500_v3 = vmul.f32 %v2465_v32, %v2042_v36  ;;  %v2504_v24 = vmul.f32 %v2465_v32, %v2048_v42  ;;  %v2508_v27 = vmul.f32 %v2465_v32, %v2056_v38 }
 0x22f   :  { %v1052_v17 = vmul.f32 %v2471_v28, %v984_v63  ;;  %v2512_v34 = vmul.f32 %v2465_v32, %v2063_v50  ;;  %v2516_v8 = vmul.f32 %v2465_v32, %v2070_v53  ;;  %v2520_v36 = vmul.f32 %v2465_v32, %v2077_v56  ;;  %v3455_v63 = vld [vmem:[#allocation6_spill] sm:$0xff] }
 0x230   :  { %v2524_v42 = vmul.f32 %v2465_v32, %v2084_v59  ;;  %v2528_v38 = vmul.f32 %v2465_v32, %v2091_v62  ;;  %v2532_v50 = vmul.f32 %v2465_v32, %v2098_v0  ;;  %v2536_v53 = vmul.f32 %v2465_v32, %v2105_v4 }
 0x231   :  { %v2480_v58 = vadd.f32 %v2477_v35, %v1052_v17  ;;  %v2540_v56 = vmul.f32 %v2465_v32, %v2112_v14  ;;  %v2544_v59 = vmul.f32 %v2465_v32, %v2119_v26  ;;  %v2548_v62 = vmul.f32 %v2465_v32, %v2126_v39  ;;  %v3456_v17 = vld [vmem:[#allocation12_spill] sm:$0xff] }
 0x232   :  { %v2552_v0 = vmul.f32 %v2465_v32, %v2133_v15  ;;  %v2556_v4 = vmul.f32 %v2465_v32, %v2140_v37  ;;  %v2560_v14 = vmul.f32 %v2465_v32, %v2147_v41  ;;  %v2564_v26 = vmul.f32 %v2465_v32, %v2154_v44 }
 0x233   :  { %3448 = vst [vmem:[#allocation23_spill] sm:$0xff] %v2480_v58  ;;  %v2568_v39 = vmul.f32 %v2465_v32, %v2161_v46  ;;  %v2572_v15 = vmul.f32 %v2465_v32, %v2168_v51  ;;  %v2576_v37 = vmul.f32 %v2465_v32, %v2175_v54  ;;  %v2580_v41 = vmul.f32 %v2465_v32, %v2182_v57  ;;  %v3467_v58 = vld [vmem:[#allocation9_spill] sm:$0xff] }
 0x234   :  { %v2584_v44 = vmul.f32 %v2465_v32, %v2189_v60  ;;  %v2588_v46 = vmul.f32 %v2465_v32, %v2196_v1  ;;  %v2592_v51 = vmul.f32 %v2465_v32, %v2203_v5  ;;  %v2596_v54 = vmul.f32 %v2465_v32, %v2210_v19 }
 0x235   :  { %v2600_v57 = vmul.f32 %v2465_v32, %v2217_v33  ;;  %v2604_v60 = vmul.f32 %v2465_v32, %v2224_v16  ;;  %v2608_v1 = vmul.f32 %v2465_v32, %v3449_v9  ;;  %v2612_v5 = vmul.f32 %v2465_v32, %v3450_v18  ;;  %v3457_v9 = vld [vmem:[#allocation4_spill] sm:$0xff]  ;;  %v3459_v18 = vld [vmem:[#allocation19_spill] sm:$0xff] }
 0x236   :  { %v2616_v19 = vmul.f32 %v2465_v32, %v2245_v40  ;;  %v2620_v33 = vmul.f32 %v2465_v32, %v2252_v47  ;;  %v2624_v16 = vmul.f32 %v2465_v32, %v2259_v52  ;;  %v2628_v48 = vmul.f32 %v2465_v32, %v3451_v43 }
 0x237   :  { %v2632_v61 = vmul.f32 %v2465_v32, %v3452_v29  ;;  %v2636_v40 = vmul.f32 %v2465_v32, %v2280_v12  ;;  %v2640_v47 = vmul.f32 %v2465_v32, %v2287_v2  ;;  %v2644_v52 = vmul.f32 %v2465_v32, %v2294_v7  ;;  %v3461_v29 = vld [vmem:[#allocation20_spill] sm:$0xff] }
 0x238   :  { %v2648_v22 = vmul.f32 %v2465_v32, %v3453_v31  ;;  %v2652_v21 = vmul.f32 %v2465_v32, %v2308_v10  ;;  %v2656_v12 = vmul.f32 %v2465_v32, %v2315_v13  ;;  %v2660_v2 = vmul.f32 %v2465_v32, %v2322_v6  ;;  %v3463_v31 = vld [vmem:[#allocation21_spill] sm:$0xff] }
 0x239   :  { %v2664_v7 = vmul.f32 %v2465_v32, %v2329_v30  ;;  %v2668_v23 = vmul.f32 %v2465_v32, %v3454_v45  ;;  %v2672_v10 = vmul.f32 %v2465_v32, %v2343_v55  ;;  %v2676_v13 = vmul.f32 %v2465_v32, %v3455_v63  ;;  %v3465_v63 = vld [vmem:[#allocation22_spill] sm:$0xff] }
 0x23a   :  { %v2680_v6 = vmul.f32 %v2465_v32, %v3456_v17  ;;  %v2684_v30 = vmul.f32 %v2465_v32, %v3457_v9  ;;  %v2688_v43 = vmul.f32 %v2465_v32, %v3459_v18  ;;  %v2692_v55 = vmul.f32 %v2465_v32, %v3461_v29 }
 0x23b   :  { %v2696_v45 = vmul.f32 %v2465_v32, %v3463_v31  ;;  %v2700_v17 = vmul.f32 %v2465_v32, %v3465_v63  ;;  %v2704_v9 = vmul.f32 %v2465_v32, %v3467_v58 }
 0x23c   :  { %3458 = vst [vmem:[#allocation7_spill] sm:$0xff] %v2684_v30  ;;  %v3469_v30 = vld [vmem:[#allocation11_spill] sm:$0xff] }
 0x23d   :  { %3460 = vst [vmem:[#allocation8_spill] sm:$0xff] %v2688_v43  ;;  %v2708_v18 = vmul.f32 %v2465_v32, %v3469_v30  ;;  %v3471_v43 = vld [vmem:[#allocation13_spill] sm:$0xff] }
 0x23e   :  { %3462 = vst [vmem:[#allocation10_spill] sm:$0xff] %v2692_v55  ;;  %v2712_v29 = vmul.f32 %v2465_v32, %v3471_v43  ;;  %v3472_v55 = vld [vmem:[#allocation14_spill] sm:$0xff] }
 0x23f   :  { %3464 = vst [vmem:[#allocation2_spill] sm:$0xff] %v2696_v45  ;;  %v2716_v31 = vmul.f32 %v2465_v32, %v3472_v55  ;;  %v3474_v45 = vld [vmem:[#allocation15_spill] sm:$0xff]  ;;  %v989_v55 = vmul.f32 %v2471_v28, %v2484_v11  ;;  %v2750_v11 = vmul.f32 %v2471_v28, %v2512_v34  ;;  %v2778_v34 = vmul.f32 %v2471_v28, %v2540_v56 }
 0x240   :  { %3466 = vst [vmem:[#allocation3_spill] sm:$0xff] %v2700_v17  ;;  %v2720_v63 = vmul.f32 %v2465_v32, %v3474_v45  ;;  %v3475_v17 = vld [vmem:[#allocation16_spill] sm:$0xff]  ;;  %v991_v45 = vmul.f32 %v2471_v28, %v2492_v20  ;;  %v2758_v20 = vmul.f32 %v2471_v28, %v2520_v36  ;;  %v2786_v36 = vmul.f32 %v2471_v28, %v2548_v62 }
 0x241   :  { %3468 = vst [vmem:[#allocation5_spill] sm:$0xff] %v2704_v9  ;;  %v2724_v58 = vmul.f32 %v2465_v32, %v3475_v17  ;;  %v3476_v9 = vld [vmem:[#allocation17_spill] sm:$0xff]  ;;  %v992_v17 = vmul.f32 %v2471_v28, %v2496_v25  ;;  %v2762_v25 = vmul.f32 %v2471_v28, %v2524_v42  ;;  %v2790_v42 = vmul.f32 %v2471_v28, %v2552_v0 }
 0x242   :  { %3470 = vst [vmem:[#allocation6_spill] sm:$0xff] %v2708_v18  ;;  %v2728_v30 = vmul.f32 %v2465_v32, %v3476_v9  ;;  %v3478_v18 = vld [vmem:[#allocation18_spill] sm:$0xff]  ;;  %v993_v9 = vmul.f32 %v2471_v28, %v2500_v3  ;;  %v2766_v3 = vmul.f32 %v2471_v28, %v2528_v38  ;;  %v2794_v38 = vmul.f32 %v2471_v28, %v2556_v4 }
 0x243   :  { %3473 = vst [vmem:[#allocation12_spill] sm:$0xff] %v2716_v31  ;;  %v2732_v43 = vmul.f32 %v2465_v32, %v3478_v18  ;;  %v990_v31 = vmul.f32 %v2471_v28, %v2488_v49  ;;  %v995_v32 = vmul.f32 %v2471_v28, %v2508_v27  ;;  %v2754_v49 = vmul.f32 %v2471_v28, %v2516_v8  ;;  %v3485_v18 = vld [vmem:[#allocation7_spill] sm:$0xff] }
 0x244   :  { %3477 = vst [vmem:[#allocation4_spill] sm:$0xff] %v2728_v30  ;;  %v994_v30 = vmul.f32 %v2471_v28, %v2504_v24  ;;  %v2770_v24 = vmul.f32 %v2471_v28, %v2532_v50  ;;  %v2774_v27 = vmul.f32 %v2471_v28, %v2536_v53  ;;  %v2782_v8 = vmul.f32 %v2471_v28, %v2544_v59 }
 0x245   :  { %v2798_v50 = vmul.f32 %v2471_v28, %v2560_v14  ;;  %v2802_v53 = vmul.f32 %v2471_v28, %v2564_v26  ;;  %v2806_v56 = vmul.f32 %v2471_v28, %v2568_v39  ;;  %v2810_v59 = vmul.f32 %v2471_v28, %v2572_v15 }
 0x246   :  { %v2814_v62 = vmul.f32 %v2471_v28, %v2576_v37  ;;  %v2818_v0 = vmul.f32 %v2471_v28, %v2580_v41  ;;  %v2822_v4 = vmul.f32 %v2471_v28, %v2584_v44  ;;  %v2826_v14 = vmul.f32 %v2471_v28, %v2588_v46 }
 0x247   :  { %v2830_v26 = vmul.f32 %v2471_v28, %v2592_v51  ;;  %v2834_v39 = vmul.f32 %v2471_v28, %v2596_v54  ;;  %v2838_v15 = vmul.f32 %v2471_v28, %v2600_v57  ;;  %v2842_v37 = vmul.f32 %v2471_v28, %v2604_v60 }
 0x248   :  { %v2846_v41 = vmul.f32 %v2471_v28, %v2608_v1  ;;  %v2850_v44 = vmul.f32 %v2471_v28, %v2612_v5  ;;  %v2854_v46 = vmul.f32 %v2471_v28, %v2616_v19  ;;  %v2858_v51 = vmul.f32 %v2471_v28, %v2620_v33 }
 0x249   :  { %v2862_v54 = vmul.f32 %v2471_v28, %v2624_v16  ;;  %v2866_v57 = vmul.f32 %v2471_v28, %v2628_v48  ;;  %v2870_v60 = vmul.f32 %v2471_v28, %v2632_v61  ;;  %v2874_v1 = vmul.f32 %v2471_v28, %v2636_v40 }
 0x24a   :  { %v2878_v5 = vmul.f32 %v2471_v28, %v2640_v47  ;;  %v2882_v19 = vmul.f32 %v2471_v28, %v2644_v52  ;;  %v2886_v33 = vmul.f32 %v2471_v28, %v2648_v22  ;;  %v2890_v16 = vmul.f32 %v2471_v28, %v2652_v21 }
 0x24b   :  { %v1057_v48 = vadd.f32 %v2477_v35, %v989_v55  ;;  %v2895_v61 = vmul.f32 %v2471_v28, %v2656_v12  ;;  %v2899_v40 = vmul.f32 %v2471_v28, %v2660_v2  ;;  %v2903_v47 = vmul.f32 %v2471_v28, %v2664_v7 }
 0x24c   :  { %v1058_v52 = vadd.f32 %v2477_v35, %v990_v31  ;;  %v2908_v22 = vmul.f32 %v2471_v28, %v2668_v23  ;;  %v2912_v21 = vmul.f32 %v2471_v28, %v2672_v10  ;;  %v2916_v12 = vmul.f32 %v2471_v28, %v2676_v13  ;;  %v3487_v23 = vld [vmem:[#allocation8_spill] sm:$0xff] }
 0x24d   :  { %3479 = vst [vmem:[#allocation19_spill] sm:$0xff] %v2899_v40  ;;  %v1059_v2 = vadd.f32 %v2477_v35, %v991_v45  ;;  %v2921_v7 = vmul.f32 %v2471_v28, %v2680_v6  ;;  %v2925_v31 = vmul.f32 %v2471_v28, %v3485_v18  ;;  %v2929_v55 = vmul.f32 %v2471_v28, %v3487_v23 }
 0x24e   :  { %3480 = vst [vmem:[#allocation20_spill] sm:$0xff] %v2903_v47  ;;  %v1060_v10 = vadd.f32 %v2477_v35, %v992_v17  ;;  %v1061_v6 = vadd.f32 %v2477_v35, %v993_v9  ;;  %v1062_v17 = vadd.f32 %v2477_v35, %v994_v30  ;;  %v1063_v9 = vadd.f32 %v2477_v35, %v995_v32 }
 0x24f   :  { %3481 = vst [vmem:[#allocation21_spill] sm:$0xff] %v2908_v22  ;;  %v3493_v22 = vld [vmem:[#allocation3_spill] sm:$0xff]  ;;  %v1064_v30 = vadd.f32 %v2477_v35, %v2750_v11  ;;  %v2983_v11 = vmul.f32 %v2471_v28, %v2732_v43  ;;  %v1071_v43 = vadd.f32 %v2477_v35, %v2778_v34  ;;  %v1074_v34 = vadd.f32 %v2477_v35, %v2790_v42 }
 0x250   :  { %3482 = vst [vmem:[#allocation22_spill] sm:$0xff] %v2912_v21  ;;  %v3489_v21 = vld [vmem:[#allocation10_spill] sm:$0xff]  ;;  %v2943_v18 = vmul.f32 %v2471_v28, %v3493_v22  ;;  %v3500_v22 = vld [vmem:[#allocation12_spill] sm:$0xff]  ;;  %v1125_v32 = vmul.f32 0.2, %v1061_v6  ;;  %v1076_v42 = vadd.f32 %v2477_v35, %v2798_v50  ;;  %v1078_v50 = vadd.f32 %v2477_v35, %v2806_v56 }
 0x251   :  { %3483 = vst [vmem:[#allocation9_spill] sm:$0xff] %v2916_v12  ;;  %v2934_v13 = vmul.f32 %v2471_v28, %v3489_v21  ;;  %v3491_v12 = vld [vmem:[#allocation2_spill] sm:$0xff]  ;;  %v1080_v56 = vadd.f32 %v2477_v35, %v2814_v62  ;;  %v1082_v62 = vadd.f32 %v2477_v35, %v2822_v4  ;;  %v1084_v4 = vadd.f32 %v2477_v35, %v2830_v26 }
 0x252   :  { %3484 = vst [vmem:[#allocation11_spill] sm:$0xff] %v2921_v7  ;;  %v2938_v45 = vmul.f32 %v2471_v28, %v3491_v12  ;;  %v1121_v7 = vmul.f32 0.2, %v1057_v48  ;;  %v3497_v21 = vld [vmem:[#allocation6_spill] sm:$0xff]  ;;  %v2956_v12 = vmul.f32 %v2471_v28, %v2712_v29  ;;  %v1065_v29 = vadd.f32 %v2477_v35, %v2754_v49 }
 0x253   :  { %3486 = vst [vmem:[#allocation13_spill] sm:$0xff] %v2925_v31  ;;  %v3495_v31 = vld [vmem:[#allocation5_spill] sm:$0xff]  ;;  %v1086_v26 = vadd.f32 %v2477_v35, %v2838_v15  ;;  %v1088_v15 = vadd.f32 %v2477_v35, %v2846_v41  ;;  %v1090_v41 = vadd.f32 %v2477_v35, %v2854_v46  ;;  %v1092_v46 = vadd.f32 %v2477_v35, %v2862_v54 }
 0x254   :  { %3488 = vst [vmem:[#allocation14_spill] sm:$0xff] %v2929_v55  ;;  %v2947_v23 = vmul.f32 %v2471_v28, %v3495_v31  ;;  %v1122_v55 = vmul.f32 0.2, %v1058_v52  ;;  %v2965_v31 = vmul.f32 %v2471_v28, %v2720_v63  ;;  %v1066_v63 = vadd.f32 %v2477_v35, %v2758_v20 }
 0x255   :  { %3490 = vst [vmem:[#allocation15_spill] sm:$0xff] %v2934_v13  ;;  %v2952_v13 = vmul.f32 %v2471_v28, %v3497_v21  ;;  %v1124_v21 = vmul.f32 0.2, %v1060_v10  ;;  %v1070_v20 = vadd.f32 %v2477_v35, %v2774_v27  ;;  %v1073_v27 = vadd.f32 %v2477_v35, %v2786_v36 }
 0x256   :  { %3492 = vst [vmem:[#allocation16_spill] sm:$0xff] %v2938_v45  ;;  %v1123_v45 = vmul.f32 0.2, %v1059_v2  ;;  %v1075_v36 = vadd.f32 %v2477_v35, %v2794_v38  ;;  %v1077_v38 = vadd.f32 %v2477_v35, %v2802_v53  ;;  %v1079_v53 = vadd.f32 %v2477_v35, %v2810_v59 }
 0x257   :  { %3494 = vst [vmem:[#allocation17_spill] sm:$0xff] %v2943_v18  ;;  %v2961_v18 = vmul.f32 %v2471_v28, %v3500_v22  ;;  %v1081_v59 = vadd.f32 %v2477_v35, %v2818_v0  ;;  %v1083_v0 = vadd.f32 %v2477_v35, %v2826_v14  ;;  %v1085_v14 = vadd.f32 %v2477_v35, %v2834_v39 }
 0x258   :  { %3496 = vst [vmem:[#allocation18_spill] sm:$0xff] %v2947_v23  ;;  %v3504_v23 = vld [vmem:[#allocation4_spill] sm:$0xff]  ;;  %v1187_v49 = vmax.f32 %v1059_v2, %v1123_v45  ;;  %v1087_v39 = vadd.f32 %v2477_v35, %v2842_v37  ;;  %v1089_v37 = vadd.f32 %v2477_v35, %v2850_v44  ;;  %v1091_v44 = vadd.f32 %v2477_v35, %v2858_v51 }
 0x259   :  { %3498 = vst [vmem:[#allocation7_spill] sm:$0xff] %v2952_v13  ;;  %v2971_v13 = vmul.f32 %v2471_v28, %v2724_v58  ;;  %v2977_v22 = vmul.f32 %v2471_v28, %v3504_v23  ;;  %v1067_v58 = vadd.f32 %v2477_v35, %v2762_v25  ;;  %v1128_v23 = vmul.f32 0.2, %v1064_v30 }
 0x25a   :  { %3499 = vst [vmem:[#allocation8_spill] sm:$0xff] %v2956_v12  ;;  %v1185_v12 = vmax.f32 %v1057_v48, %v1121_v7  ;;  %v1068_v48 = vadd.f32 %v2477_v35, %v2766_v3  ;;  %v1069_v7 = vadd.f32 %v2477_v35, %v2770_v24  ;;  %v1130_v25 = vmul.f32 0.2, %v1066_v63 }
 0x25b   :  { %3501 = vst [vmem:[#allocation10_spill] sm:$0xff] %v2961_v18  ;;  %v1186_v18 = vmax.f32 %v1058_v52, %v1122_v55  ;;  %v1129_v52 = vmul.f32 0.2, %v1065_v29  ;;  %v1189_v55 = vmax.f32 %v1061_v6, %v1125_v32  ;;  %v1072_v3 = vadd.f32 %v2477_v35, %v2782_v8 }
 0x25c   :  { %3502 = vst [vmem:[#allocation2_spill] sm:$0xff] %v2965_v31  ;;  %v1126_v31 = vmul.f32 0.2, %v1062_v17  ;;  %v1249_v28 = vpack.c.bf16 %v1185_v12, %v1185_v12  ;;  %v1131_v45 = vmul.f32 0.2, %v1067_v58  ;;  %v1251_v24 = vpack.c.bf16 %v1187_v49, %v1187_v49 }
 0x25d   :  { %3503 = vst [vmem:[#allocation3_spill] sm:$0xff] %v2971_v13  ;;  %v1127_v13 = vmul.f32 0.2, %v1063_v9  ;;  %v1250_v2 = vpack.c.bf16 %v1186_v18, %v1186_v18  ;;  %v1132_v40 = vmul.f32 0.2, %v1068_v48  ;;  %v1193_v12 = vmax.f32 %v1065_v29, %v1129_v52 }
 0x25e   :  { %3505 = vst [vmem:[#allocation5_spill] sm:$0xff] %v2977_v22  ;;  %v1188_v22 = vmax.f32 %v1060_v10, %v1124_v21  ;;  %v1192_v10 = vmax.f32 %v1064_v30, %v1128_v23  ;;  %v1133_v6 = vmul.f32 0.2, %v1069_v7  ;;  %v1253_v32 = vpack.c.bf16 %v1189_v55, %v1189_v55 }
 0x25f   :  { %3506 = vst [vmem:[#allocation6_spill] sm:$0xff] %v2983_v11  ;;  %v1190_v11 = vmax.f32 %v1062_v17, %v1126_v31  ;;  %v1191_v47 = vmax.f32 %v1063_v9, %v1127_v13  ;;  %v1134_v8 = vmul.f32 0.2, %v1070_v20  ;;  %v1194_v13 = vmax.f32 %v1066_v63, %v1130_v25 }
 0x260   :  { %v1252_v21 = vpack.c.bf16 %v1188_v22, %v1188_v22  ;;  %1314 = vst.msk [vmem:[%s3353_s4] sm:$0xf] %vm1313_vm5, %v1249_v28  ;;  %v1135_v17 = vmul.f32 0.2, %v1071_v43  ;;  %v1195_v9 = vmax.f32 %v1067_v58, %v1131_v45  ;;  %v1136_v30 = vmul.f32 0.2, %v1072_v3 }
 0x261   :  { %v1254_v18 = vpack.c.bf16 %v1190_v11, %v1190_v11  ;;  %1315 = vst.msk [vmem:[%s3353_s4 + $0x4] sm:$0xf] %vm1313_vm5, %v1250_v2  ;;  %v1255_v31 = vpack.c.bf16 %v1191_v47, %v1191_v47  ;;  %v1196_v29 = vmax.f32 %v1068_v48, %v1132_v40  ;;  %v1256_v22 = vpack.c.bf16 %v1192_v10, %v1192_v10 }
 0x262   :  { %1316 = vst.msk [vmem:[%s3353_s4 + $0x8] sm:$0xf] %vm1313_vm5, %v1251_v24  ;;  %v1137_v47 = vmul.f32 0.2, %v1073_v27  ;;  %v1197_v63 = vmax.f32 %v1069_v7, %v1133_v6  ;;  %v1257_v11 = vpack.c.bf16 %v1193_v12, %v1193_v12  ;;  %v1138_v40 = vmul.f32 0.2, %v1074_v34 }
 0x263   :  { %1317 = vst.msk [vmem:[%s3353_s4 + $0xc] sm:$0xf] %vm1313_vm5, %v1252_v21  ;;  %v1198_v58 = vmax.f32 %v1070_v20, %v1134_v8  ;;  %v1258_v49 = vpack.c.bf16 %v1194_v13, %v1194_v13  ;;  %v1139_v48 = vmul.f32 0.2, %v1075_v36  ;;  %v1199_v7 = vmax.f32 %v1071_v43, %v1135_v17 }
 0x264   :  { %1318 = vst.msk [vmem:[%s3353_s4 + $0x10] sm:$0xf] %vm1313_vm5, %v1253_v32  ;;  %v1259_v23 = vpack.c.bf16 %v1195_v9, %v1195_v9  ;;  %v1140_v20 = vmul.f32 0.2, %v1076_v42  ;;  %v1200_v52 = vmax.f32 %v1072_v3, %v1136_v30  ;;  %v1260_v55 = vpack.c.bf16 %v1196_v29, %v1196_v29 }
 0x265   :  { %1319 = vst.msk [vmem:[%s3353_s4 + $0x14] sm:$0xf] %vm1313_vm5, %v1254_v18  ;;  %v1141_v28 = vmul.f32 0.2, %v1077_v38  ;;  %v1201_v43 = vmax.f32 %v1073_v27, %v1137_v47  ;;  %v1261_v25 = vpack.c.bf16 %v1197_v63, %v1197_v63  ;;  %v1142_v2 = vmul.f32 0.2, %v1078_v50 }
 0x266   :  { %1320 = vst.msk [vmem:[%s3353_s4 + $0x18] sm:$0xf] %vm1313_vm5, %v1255_v31  ;;  %v1202_v3 = vmax.f32 %v1074_v34, %v1138_v40  ;;  %v1262_v45 = vpack.c.bf16 %v1198_v58, %v1198_v58  ;;  %v1143_v24 = vmul.f32 0.2, %v1079_v53  ;;  %v1203_v10 = vmax.f32 %v1075_v36, %v1139_v48 }
 0x267   :  { %1321 = vst.msk [vmem:[%s3353_s4 + $0x1c] sm:$0xf] %vm1313_vm5, %v1256_v22  ;;  %v1263_v21 = vpack.c.bf16 %v1199_v7, %v1199_v7  ;;  %v1144_v27 = vmul.f32 0.2, %v1080_v56  ;;  %v1204_v6 = vmax.f32 %v1076_v42, %v1140_v20  ;;  %v1264_v12 = vpack.c.bf16 %v1200_v52, %v1200_v52 }
 0x268   :  { %1322 = vst.msk [vmem:[%s3353_s4 + $0x20] sm:$0xf] %vm1313_vm5, %v1257_v11  ;;  %v1145_v32 = vmul.f32 0.2, %v1081_v59  ;;  %v1205_v34 = vmax.f32 %v1077_v38, %v1141_v28  ;;  %v1265_v8 = vpack.c.bf16 %v1201_v43, %v1201_v43  ;;  %v1146_v13 = vmul.f32 0.2, %v1082_v62 }
 0x269   :  { %1323 = vst.msk [vmem:[%s3353_s4 + $0x24] sm:$0xf] %vm1313_vm5, %v1258_v49  ;;  %v1206_v18 = vmax.f32 %v1078_v50, %v1142_v2  ;;  %v1266_v36 = vpack.c.bf16 %v1202_v3, %v1202_v3  ;;  %v1147_v17 = vmul.f32 0.2, %v1083_v0  ;;  %v1207_v9 = vmax.f32 %v1079_v53, %v1143_v24 }
 0x26a   :  { %1324 = vst.msk [vmem:[%s3353_s4 + $0x28] sm:$0xf] %vm1313_vm5, %v1259_v23  ;;  %v1267_v31 = vpack.c.bf16 %v1203_v10, %v1203_v10  ;;  %v1148_v42 = vmul.f32 0.2, %v1084_v4  ;;  %v1208_v30 = vmax.f32 %v1080_v56, %v1144_v27  ;;  %v1268_v29 = vpack.c.bf16 %v1204_v6, %v1204_v6 }
 0x26b   :  { %1325 = vst.msk [vmem:[%s3353_s4 + $0x2c] sm:$0xf] %vm1313_vm5, %v1260_v55  ;;  %v1149_v22 = vmul.f32 0.2, %v1085_v14  ;;  %v1209_v38 = vmax.f32 %v1081_v59, %v1145_v32  ;;  %v1269_v47 = vpack.c.bf16 %v1205_v34, %v1205_v34  ;;  %v1150_v63 = vmul.f32 0.2, %v1086_v26 }
 0x26c   :  { %1326 = vst.msk [vmem:[%s3353_s4 + $0x30] sm:$0xf] %vm1313_vm5, %v1261_v25  ;;  %v1210_v11 = vmax.f32 %v1082_v62, %v1146_v13  ;;  %v1270_v50 = vpack.c.bf16 %v1206_v18, %v1206_v18  ;;  %v1151_v40 = vmul.f32 0.2, %v1087_v39  ;;  %v1211_v58 = vmax.f32 %v1083_v0, %v1147_v17 }
 0x26d   :  { %1327 = vst.msk [vmem:[%s3353_s4 + $0x34] sm:$0xf] %vm1313_vm5, %v1262_v45  ;;  %v1271_v49 = vpack.c.bf16 %v1207_v9, %v1207_v9  ;;  %v1152_v53 = vmul.f32 0.2, %v1088_v15  ;;  %v1212_v48 = vmax.f32 %v1084_v4, %v1148_v42  ;;  %v1272_v7 = vpack.c.bf16 %v1208_v30, %v1208_v30 }
 0x26e   :  { %1328 = vst.msk [vmem:[%s3353_s4 + $0x38] sm:$0xf] %vm1313_vm5, %v1263_v21  ;;  %v1093_v51 = vadd.f32 %v2477_v35, %v2866_v57  ;;  %v1153_v23 = vmul.f32 0.2, %v1089_v37  ;;  %v1213_v56 = vmax.f32 %v1085_v14, %v1149_v22  ;;  %v1273_v20 = vpack.c.bf16 %v1209_v38, %v1209_v38 }
 0x26f   :  { %1329 = vst.msk [vmem:[%s3353_s4 + $0x3c] sm:$0xf] %vm1313_vm5, %v1264_v12  ;;  %v1094_v54 = vadd.f32 %v2477_v35, %v2870_v60  ;;  %v1154_v52 = vmul.f32 0.2, %v1090_v41  ;;  %v1214_v55 = vmax.f32 %v1086_v26, %v1150_v63  ;;  %v1274_v59 = vpack.c.bf16 %v1210_v11, %v1210_v11  ;;  %v3511_v63 = vld [vmem:[#allocation9_spill] sm:$0xff] }
 0x270   :  { %1330 = vst.msk [vmem:[%s3353_s4 + $0x40] sm:$0xf] %vm1313_vm5, %v1265_v8  ;;  %v1095_v57 = vadd.f32 %v2477_v35, %v2874_v1  ;;  %v1155_v28 = vmul.f32 0.2, %v1091_v44  ;;  %v1215_v43 = vmax.f32 %v1087_v39, %v1151_v40  ;;  %v1275_v25 = vpack.c.bf16 %v1211_v58, %v1211_v58  ;;  %v3512_v58 = vld [vmem:[#allocation11_spill] sm:$0xff] }
 0x271   :  { %1331 = vst.msk [vmem:[%s3353_s4 + $0x44] sm:$0xf] %vm1313_vm5, %v1266_v36  ;;  %v1096_v60 = vadd.f32 %v2477_v35, %v2878_v5  ;;  %v1156_v62 = vmul.f32 0.2, %v1092_v46  ;;  %v1216_v2 = vmax.f32 %v1088_v15, %v1152_v53  ;;  %v1276_v3 = vpack.c.bf16 %v1212_v48, %v1212_v48 }
 0x272   :  { %1332 = vst.msk [vmem:[%s3353_s4 + $0x48] sm:$0xf] %vm1313_vm5, %v1267_v31  ;;  %v1097_v1 = vadd.f32 %v2477_v35, %v2882_v19  ;;  %v1157_v45 = vmul.f32 0.2, %v1093_v51  ;;  %v1217_v0 = vmax.f32 %v1089_v37, %v1153_v23  ;;  %v1277_v24 = vpack.c.bf16 %v1213_v56, %v1213_v56  ;;  %v3509_v31 = vld [vmem:[#allocation21_spill] sm:$0xff]  ;;  %v3510_v37 = vld [vmem:[#allocation22_spill] sm:$0xff] }
 0x273   :  { %1333 = vst.msk [vmem:[%s3353_s4 + $0x4c] sm:$0xf] %vm1313_vm5, %v1268_v29  ;;  %v1098_v5 = vadd.f32 %v2477_v35, %v2886_v33  ;;  %v1158_v10 = vmul.f32 0.2, %v1094_v54  ;;  %v1218_v21 = vmax.f32 %v1090_v41, %v1154_v52  ;;  %v1278_v4 = vpack.c.bf16 %v1214_v55, %v1214_v55 }
 0x274   :  { %1334 = vst.msk [vmem:[%s3353_s4 + $0x50] sm:$0xf] %vm1313_vm5, %v1269_v47  ;;  %v1099_v19 = vadd.f32 %v2477_v35, %v2890_v16  ;;  %v1159_v27 = vmul.f32 0.2, %v1095_v57  ;;  %v1219_v6 = vmax.f32 %v1091_v44, %v1155_v28  ;;  %v1279_v12 = vpack.c.bf16 %v1215_v43, %v1215_v43  ;;  %v3507_v16 = vld [vmem:[#allocation19_spill] sm:$0xff] }
 0x275   :  { %1335 = vst.msk [vmem:[%s3353_s4 + $0x54] sm:$0xf] %vm1313_vm5, %v1270_v50  ;;  %v1100_v33 = vadd.f32 %v2477_v35, %v2895_v61  ;;  %v1160_v14 = vmul.f32 0.2, %v1096_v60  ;;  %v1220_v32 = vmax.f32 %v1092_v46, %v1156_v62  ;;  %v1280_v34 = vpack.c.bf16 %v1216_v2, %v1216_v2  ;;  %v3508_v61 = vld [vmem:[#allocation20_spill] sm:$0xff]  ;;  %v3515_v28 = vld [vmem:[#allocation15_spill] sm:$0xff] }
 0x276   :  { %1336 = vst.msk [vmem:[%s3353_s4 + $0x58] sm:$0xf] %vm1313_vm5, %v1271_v49  ;;  %v1101_v8 = vadd.f32 %v2477_v35, %v3507_v16  ;;  %v1161_v26 = vmul.f32 0.2, %v1097_v1  ;;  %v1221_v13 = vmax.f32 %v1093_v51, %v1157_v45  ;;  %v1281_v18 = vpack.c.bf16 %v1217_v0, %v1217_v0  ;;  %v3516_v2 = vld [vmem:[#allocation16_spill] sm:$0xff] }
 0x277   :  { %1337 = vst.msk [vmem:[%s3353_s4 + $0x5c] sm:$0xf] %vm1313_vm5, %v1272_v7  ;;  %v1102_v36 = vadd.f32 %v2477_v35, %v3508_v61  ;;  %v1162_v39 = vmul.f32 0.2, %v1098_v5  ;;  %v1222_v17 = vmax.f32 %v1094_v54, %v1158_v10  ;;  %v1282_v9 = vpack.c.bf16 %v1218_v21, %v1218_v21  ;;  %v3513_v7 = vld [vmem:[#allocation13_spill] sm:$0xff]  ;;  %v3514_v54 = vld [vmem:[#allocation14_spill] sm:$0xff] }
 0x278   :  { %1338 = vst.msk [vmem:[%s3353_s4 + $0x60] sm:$0xf] %vm1313_vm5, %v1273_v20  ;;  %v1103_v15 = vadd.f32 %v2477_v35, %v3509_v31  ;;  %v1163_v42 = vmul.f32 0.2, %v1099_v19  ;;  %v1223_v30 = vmax.f32 %v1095_v57, %v1159_v27  ;;  %v1283_v29 = vpack.c.bf16 %v1219_v6, %v1219_v6 }
 0x279   :  { %1339 = vst.msk [vmem:[%s3353_s4 + $0x64] sm:$0xf] %vm1313_vm5, %v1274_v59  ;;  %v1104_v22 = vadd.f32 %v2477_v35, %v3510_v37  ;;  %v1164_v38 = vmul.f32 0.2, %v1100_v33  ;;  %v1224_v47 = vmax.f32 %v1096_v60, %v1160_v14  ;;  %v1284_v41 = vpack.c.bf16 %v1220_v32, %v1220_v32  ;;  %v3519_v14 = vld [vmem:[#allocation7_spill] sm:$0xff] }
 0x27a   :  { %1340 = vst.msk [vmem:[%s3353_s4 + $0x68] sm:$0xf] %vm1313_vm5, %v1275_v25  ;;  %v1105_v11 = vadd.f32 %v2477_v35, %v3511_v63  ;;  %v1165_v50 = vmul.f32 0.2, %v1101_v8  ;;  %v1225_v44 = vmax.f32 %v1097_v1, %v1161_v26  ;;  %v1285_v40 = vpack.c.bf16 %v1221_v13, %v1221_v13  ;;  %v3520_v26 = vld [vmem:[#allocation8_spill] sm:$0xff] }
 0x27b   :  { %1341 = vst.msk [vmem:[%s3353_s4 + $0x6c] sm:$0xf] %vm1313_vm5, %v1276_v3  ;;  %v1106_v49 = vadd.f32 %v2477_v35, %v3512_v58  ;;  %v1166_v46 = vmul.f32 0.2, %v1102_v36  ;;  %v1226_v53 = vmax.f32 %v1098_v5, %v1162_v39  ;;  %v1286_v48 = vpack.c.bf16 %v1222_v17, %v1222_v17  ;;  %v3521_v39 = vld [vmem:[#allocation10_spill] sm:$0xff] }
 0x27c   :  { %1342 = vst.msk [vmem:[%s3353_s4 + $0x70] sm:$0xf] %vm1313_vm5, %v1277_v24  ;;  %v1107_v51 = vadd.f32 %v2477_v35, %v3513_v7  ;;  %v1167_v23 = vmul.f32 0.2, %v1103_v15  ;;  %v1227_v56 = vmax.f32 %v1099_v19, %v1163_v42  ;;  %v1287_v20 = vpack.c.bf16 %v1223_v30, %v1223_v30  ;;  %v3517_v24 = vld [vmem:[#allocation17_spill] sm:$0xff]  ;;  %v3518_v19 = vld [vmem:[#allocation18_spill] sm:$0xff] }
 0x27d   :  { %1343 = vst.msk [vmem:[%s3353_s4 + $0x74] sm:$0xf] %vm1313_vm5, %v1278_v4  ;;  %v1108_v52 = vadd.f32 %v2477_v35, %v3514_v54  ;;  %v1168_v55 = vmul.f32 0.2, %v1104_v22  ;;  %v1228_v59 = vmax.f32 %v1100_v33, %v1164_v38  ;;  %v1288_v57 = vpack.c.bf16 %v1224_v47, %v1224_v47  ;;  %v3522_v42 = vld [vmem:[#allocation2_spill] sm:$0xff]  ;;  %v3523_v38 = vld [vmem:[#allocation3_spill] sm:$0xff] }
 0x27e   :  { %1344 = vst.msk [vmem:[%s3353_s4 + $0x78] sm:$0xf] %vm1313_vm5, %v1279_v12  ;;  %v1109_v43 = vadd.f32 %v2477_v35, %v3515_v28  ;;  %v1169_v25 = vmul.f32 0.2, %v1105_v11  ;;  %v1229_v60 = vmax.f32 %v1101_v8, %v1165_v50  ;;  %v1289_v62 = vpack.c.bf16 %v1225_v44, %v1225_v44  ;;  %v3524_v50 = vld [vmem:[#allocation5_spill] sm:$0xff] }
 0x27f   :  { %1345 = vst.msk [vmem:[%s3353_s4 + $0x7c] sm:$0xf] %vm1313_vm5, %v1280_v34  ;;  %v1110_v3 = vadd.f32 %v2477_v35, %v3516_v2  ;;  %v1170_v1 = vmul.f32 0.2, %v1106_v49  ;;  %v1230_v45 = vmax.f32 %v1102_v36, %v1166_v46  ;;  %v1290_v0 = vpack.c.bf16 %v1226_v53, %v1226_v53  ;;  %v3525_v46 = vld [vmem:[#allocation6_spill] sm:$0xff] }
 0x280   :  { %1346 = vst.msk [vmem:[%s3353_s4 + $0x80] sm:$0xf] %vm1313_vm5, %v1281_v18  ;;  %v1111_v5 = vadd.f32 %v2477_v35, %v3517_v24  ;;  %v1171_v10 = vmul.f32 0.2, %v1107_v51  ;;  %v1231_v21 = vmax.f32 %v1103_v15, %v1167_v23  ;;  %v1291_v4 = vpack.c.bf16 %v1227_v56, %v1227_v56 }
 0x281   :  { %1347 = vst.msk [vmem:[%s3353_s4 + $0x84] sm:$0xf] %vm1313_vm5, %v1282_v9  ;;  %v1112_v27 = vadd.f32 %v2477_v35, %v3518_v19  ;;  %v1172_v6 = vmul.f32 0.2, %v1108_v52  ;;  %v1232_v12 = vmax.f32 %v1104_v22, %v1168_v55  ;;  %v1292_v33 = vpack.c.bf16 %v1228_v59, %v1228_v59 }
 0x282   :  { %1348 = vst.msk [vmem:[%s3353_s4 + $0x88] sm:$0xf] %vm1313_vm5, %v1283_v29  ;;  %v1113_v32 = vadd.f32 %v2477_v35, %v3519_v14  ;;  %v1173_v34 = vmul.f32 0.2, %v1109_v43  ;;  %v1233_v16 = vmax.f32 %v1105_v11, %v1169_v25  ;;  %v1293_v8 = vpack.c.bf16 %v1229_v60, %v1229_v60  ;;  %v3526_v60 = vld [vmem:[#allocation23_spill] sm:$0xff] }
 0x283   :  { %1349 = vst.msk [vmem:[%s3353_s4 + $0x8c] sm:$0xf] %vm1313_vm5, %v1284_v41  ;;  %v1114_v13 = vadd.f32 %v2477_v35, %v3520_v26  ;;  %v1174_v18 = vmul.f32 0.2, %v1110_v3  ;;  %v1234_v61 = vmax.f32 %v1106_v49, %v1170_v1  ;;  %v1294_v36 = vpack.c.bf16 %v1230_v45, %v1230_v45 }
 0x284   :  { %1350 = vst.msk [vmem:[%s3353_s4 + $0x90] sm:$0xf] %vm1313_vm5, %v1285_v40  ;;  %v1115_v17 = vadd.f32 %v2477_v35, %v3521_v39  ;;  %v1175_v9 = vmul.f32 0.2, %v1111_v5  ;;  %v1235_v31 = vmax.f32 %v1107_v51, %v1171_v10  ;;  %v1295_v15 = vpack.c.bf16 %v1231_v21, %v1231_v21 }
 0x285   :  { %1351 = vst.msk [vmem:[%s3353_s4 + $0x94] sm:$0xf] %vm1313_vm5, %v1286_v48  ;;  %v1116_v30 = vadd.f32 %v2477_v35, %v3522_v42  ;;  %v1176_v29 = vmul.f32 0.2, %v1112_v27  ;;  %v1236_v37 = vmax.f32 %v1108_v52, %v1172_v6  ;;  %v1296_v22 = vpack.c.bf16 %v1232_v12, %v1232_v12 }
 0x286   :  { %1352 = vst.msk [vmem:[%s3353_s4 + $0x98] sm:$0xf] %vm1313_vm5, %v1287_v20  ;;  %v1117_v47 = vadd.f32 %v2477_v35, %v3523_v38  ;;  %v1177_v41 = vmul.f32 0.2, %v1113_v32  ;;  %v1237_v63 = vmax.f32 %v1109_v43, %v1173_v34  ;;  %v1297_v11 = vpack.c.bf16 %v1233_v16, %v1233_v16 }
 0x287   :  { %1353 = vst.msk [vmem:[%s3353_s4 + $0x9c] sm:$0xf] %vm1313_vm5, %v1288_v57  ;;  %v1118_v44 = vadd.f32 %v2477_v35, %v3524_v50  ;;  %v1178_v40 = vmul.f32 0.2, %v1114_v13  ;;  %v1238_v58 = vmax.f32 %v1110_v3, %v1174_v18  ;;  %v1298_v49 = vpack.c.bf16 %v1234_v61, %v1234_v61 }
 0x288   :  { %1354 = vst.msk [vmem:[%s3353_s4 + $0xa0] sm:$0xf] %vm1313_vm5, %v1289_v62  ;;  %v1119_v53 = vadd.f32 %v2477_v35, %v3525_v46  ;;  %v1179_v48 = vmul.f32 0.2, %v1115_v17  ;;  %v1239_v7 = vmax.f32 %v1111_v5, %v1175_v9  ;;  %v1299_v51 = vpack.c.bf16 %v1235_v31, %v1235_v31 }
 0x289   :  { %1355 = vst.msk [vmem:[%s3353_s4 + $0xa4] sm:$0xf] %vm1313_vm5, %v1290_v0  ;;  %v1180_v23 = vmul.f32 0.2, %v1116_v30  ;;  %v1240_v56 = vmax.f32 %v1112_v27, %v1176_v29  ;;  %v1300_v20 = vpack.c.bf16 %v1236_v37, %v1236_v37  ;;  %v1181_v54 = vmul.f32 0.2, %v1117_v47 }
 0x28a   :  { %1356 = vst.msk [vmem:[%s3353_s4 + $0xa8] sm:$0xf] %vm1313_vm5, %v1291_v4  ;;  %v1241_v52 = vmax.f32 %v1113_v32, %v1177_v41  ;;  %v1301_v55 = vpack.c.bf16 %v1237_v63, %v1237_v63  ;;  %v1182_v35 = vmul.f32 0.2, %v1118_v44  ;;  %v1242_v59 = vmax.f32 %v1114_v13, %v1178_v40 }
 0x28b   :  { %1357 = vst.msk [vmem:[%s3353_s4 + $0xac] sm:$0xf] %vm1313_vm5, %v1292_v33  ;;  %v1302_v57 = vpack.c.bf16 %v1238_v58, %v1238_v58  ;;  %v1183_v28 = vmul.f32 0.2, %v1119_v53  ;;  %v1243_v43 = vmax.f32 %v1115_v17, %v1179_v48  ;;  %v1303_v25 = vpack.c.bf16 %v1239_v7, %v1239_v7 }
 0x28c   :  { %1358 = vst.msk [vmem:[%s3353_s4 + $0xb0] sm:$0xf] %vm1313_vm5, %v1293_v8  ;;  %v1184_v62 = vmul.f32 0.2, %v3526_v60  ;;  %v1244_v2 = vmax.f32 %v1116_v30, %v1180_v23  ;;  %v1304_v3 = vpack.c.bf16 %v1240_v56, %v1240_v56  ;;  %v1245_v1 = vmax.f32 %v1117_v47, %v1181_v54 }
 0x28d   :  { %1359 = vst.msk [vmem:[%s3353_s4 + $0xb4] sm:$0xf] %vm1313_vm5, %v1294_v36  ;;  %v1305_v45 = vpack.c.bf16 %v1241_v52, %v1241_v52  ;;  %v1246_v0 = vmax.f32 %v1118_v44, %v1182_v35  ;;  %v1306_v24 = vpack.c.bf16 %v1242_v59, %v1242_v59  ;;  %v1247_v5 = vmax.f32 %v1119_v53, %v1183_v28 }
 0x28e   :  { %1360 = vst.msk [vmem:[%s3353_s4 + $0xb8] sm:$0xf] %vm1313_vm5, %v1295_v15  ;;  %v1307_v10 = vpack.c.bf16 %v1243_v43, %v1243_v43  ;;  %v1248_v21 = vmax.f32 %v3526_v60, %v1184_v62  ;;  %v1308_v4 = vpack.c.bf16 %v1244_v2, %v1244_v2  ;;  %v1309_v19 = vpack.c.bf16 %v1245_v1, %v1245_v1 }
 0x28f   :  { %1361 = vst.msk [vmem:[%s3353_s4 + $0xbc] sm:$0xf] %vm1313_vm5, %v1296_v22  ;;  %v1310_v27 = vpack.c.bf16 %v1246_v0, %v1246_v0  ;;  %v1311_v6 = vpack.c.bf16 %v1247_v5, %v1247_v5 }
 0x290   :  { %1362 = vst.msk [vmem:[%s3353_s4 + $0xc0] sm:$0xf] %vm1313_vm5, %v1297_v11  ;;  %v1312_v12 = vpack.c.bf16 %v1248_v21, %v1248_v21 }
 0x291   :  { %1363 = vst.msk [vmem:[%s3353_s4 + $0xc4] sm:$0xf] %vm1313_vm5, %v1298_v49 }
 0x292   :  { %1364 = vst.msk [vmem:[%s3353_s4 + $0xc8] sm:$0xf] %vm1313_vm5, %v1299_v51 }
 0x293   :  { %1365 = vst.msk [vmem:[%s3353_s4 + $0xcc] sm:$0xf] %vm1313_vm5, %v1300_v20 }
 0x294   :  { %1366 = vst.msk [vmem:[%s3353_s4 + $0xd0] sm:$0xf] %vm1313_vm5, %v1301_v55 }
 0x295   :  { %1367 = vst.msk [vmem:[%s3353_s4 + $0xd4] sm:$0xf] %vm1313_vm5, %v1302_v57 }
 0x296   :  { %1368 = vst.msk [vmem:[%s3353_s4 + $0xd8] sm:$0xf] %vm1313_vm5, %v1303_v25 }
 0x297   :  { %1369 = vst.msk [vmem:[%s3353_s4 + $0xdc] sm:$0xf] %vm1313_vm5, %v1304_v3 }
 0x298   :  { %1370 = vst.msk [vmem:[%s3353_s4 + $0xe0] sm:$0xf] %vm1313_vm5, %v1305_v45 }
 0x299   :  { %1371 = vst.msk [vmem:[%s3353_s4 + $0xe4] sm:$0xf] %vm1313_vm5, %v1306_v24 }
 0x29a   :  { %1372 = vst.msk [vmem:[%s3353_s4 + $0xe8] sm:$0xf] %vm1313_vm5, %v1307_v10 }
 0x29b   :  { %1373 = vst.msk [vmem:[%s3353_s4 + $0xec] sm:$0xf] %vm1313_vm5, %v1308_v4 }
 0x29c   :  { %1374 = vst.msk [vmem:[%s3353_s4 + $0xf0] sm:$0xf] %vm1313_vm5, %v1309_v19 }
 0x29d   :  { %1375 = vst.msk [vmem:[%s3353_s4 + $0xf4] sm:$0xf] %vm1313_vm5, %v1310_v27 }
 0x29e   :  { %1376 = vst.msk [vmem:[%s3353_s4 + $0xf8] sm:$0xf] %vm1313_vm5, %v1311_v6 }
 0x29f   :  { %1377 = vst.msk [vmem:[%s3353_s4 + $0xfc] sm:$0xf] %vm1313_vm5, %v1312_v12 }

// kernel: discriminator_forward.6
= control target key start
LH: loop header
LB: loop body
LE: loop exit
PB: predicated region body
PF: predicated region fallthrough
CT: control target
= control target key end

     0   :  { %vm339_vm0 = vcmask 261120   ;;  %vm570_vm5 = vcmask 257024   ;;  %s1194_s1 = inlined_call_operand.vmem [shape: bf16[256,32], index: 1, kind: input, shape index: {}]   ;;  %s1195_s0 = inlined_call_operand.vmem [shape: bf16[128,256], index: 0, kind: input, shape index: {}]   ;;  %s1196_s2 = inlined_call_operand.vmem [shape: f32[1,32], index: 2, kind: input, shape index: {}]   ;;  %s1197_s3 = inlined_call_operand.vmem [shape: f32[1,32], index: 3, kind: input, shape index: {}]   ;;  %s1198_s4 = inlined_call_operand.vmem [shape: bf16[128,32], index: 4, kind: output, shape index: {}]  }
   0x1   :  { %v742_v0 = vld [vmem:[%s1194_s1 + $0x38] sm:$0xff]  ;;  %v741_v2 = vld [vmem:[%s1194_s1 + $0x30] sm:$0xff]  ;;  %v740_v4 = vld [vmem:[%s1194_s1 + $0x28] sm:$0xff] }
   0x2   :  { %v750_v1 = vld [vmem:[%s1194_s1 + $0x78] sm:$0xff]  ;;  %241 = vmatpush.bf16.msra.mxu0 %v742_v0  ;;  %v749_v3 = vld [vmem:[%s1194_s1 + $0x70] sm:$0xff]  ;;  %751 = vmatpush.bf16.msra.mxu2 %v742_v0  ;;  %v748_v5 = vld [vmem:[%s1194_s1 + $0x68] sm:$0xff] }
   0x3   :  { %290 = vmatpush.bf16.msra.mxu1 %v750_v1  ;;  %759 = vmatpush.bf16.msra.mxu3 %v750_v1  ;;  %v739_v6 = vld [vmem:[%s1194_s1 + $0x20] sm:$0xff]  ;;  %v738_v8 = vld [vmem:[%s1194_s1 + $0x18] sm:$0xff]  ;;  %v737_v10 = vld [vmem:[%s1194_s1 + $0x10] sm:$0xff] }
   0x4   :  { %v747_v7 = vld [vmem:[%s1194_s1 + $0x60] sm:$0xff]  ;;  %v746_v9 = vld [vmem:[%s1194_s1 + $0x58] sm:$0xff]  ;;  %v745_v11 = vld [vmem:[%s1194_s1 + $0x50] sm:$0xff] }
   0x5   :  { %v736_v12 = vld [vmem:[%s1194_s1 + $0x8] sm:$0xff]  ;;  %v735_v14 = vld [vmem:[%s1194_s1] sm:$0xff]  ;;  %v601_v28 = vld [vmem:[%s1195_s0 + $0x10] sm:$0xf] }
   0x6   :  { %242 = vmatpush.bf16.msra.mxu0 %v741_v2  ;;  %752 = vmatpush.bf16.msra.mxu2 %v741_v2  ;;  %v744_v13 = vld [vmem:[%s1194_s1 + $0x48] sm:$0xff]  ;;  %v743_v15 = vld [vmem:[%s1194_s1 + $0x40] sm:$0xff]  ;;  %v722_v29 = vld [vmem:[%s1195_s0 + $0x14] sm:$0xf0] }
   0x7   :  { %291 = vmatpush.bf16.msra.mxu1 %v749_v3  ;;  %760 = vmatpush.bf16.msra.mxu3 %v749_v3  ;;  %v593_v16 = vld [vmem:[%s1195_s0] sm:$0xf]  ;;  %v720_v17 = vld [vmem:[%s1195_s0 + $0x4] sm:$0xf0]  ;;  %v719_v18 = vld [vmem:[%s1195_s0 + $0x4] sm:$0xf]  ;;  %v602_v36 = vor.u32 %v722_v29, %v601_v28 }
   0x8   :  { %v595_v19 = vld [vmem:[%s1195_s0 + $0x8] sm:$0xf0]  ;;  %v625_v20 = vld [vmem:[%s1195_s0 + $0x40] sm:$0xf]  ;;  %v728_v21 = vld [vmem:[%s1195_s0 + $0x44] sm:$0xf0]  ;;  %v594_v24 = vor.u32 %v720_v17, %v593_v16 }
   0x9   :  { %v727_v22 = vld [vmem:[%s1195_s0 + $0x44] sm:$0xf]  ;;  %v627_v23 = vld [vmem:[%s1195_s0 + $0x48] sm:$0xf0]  ;;  %v598_v25 = vor.u32 %v719_v18, %v595_v19  ;;  %v626_v26 = vor.u32 %v728_v21, %v625_v20  ;;  %v721_v30 = vld [vmem:[%s1195_s0 + $0x14] sm:$0xf] }
   0xa   :  { %243 = vmatpush.bf16.msra.mxu0 %v740_v4  ;;  %753 = vmatpush.bf16.msra.mxu2 %v740_v4  ;;  %v630_v27 = vor.u32 %v727_v22, %v627_v23  ;;  %v603_v31 = vld [vmem:[%s1195_s0 + $0x18] sm:$0xf0]  ;;  %v633_v32 = vld [vmem:[%s1195_s0 + $0x50] sm:$0xf]  ;;  %v730_v33 = vld [vmem:[%s1195_s0 + $0x54] sm:$0xf0] }
   0xb   :  { %292 = vmatpush.bf16.msra.mxu1 %v748_v5  ;;  %761 = vmatpush.bf16.msra.mxu3 %v748_v5  ;;  %v729_v34 = vld [vmem:[%s1195_s0 + $0x54] sm:$0xf]  ;;  %v635_v35 = vld [vmem:[%s1195_s0 + $0x58] sm:$0xf0]  ;;  %v606_v37 = vor.u32 %v721_v30, %v603_v31  ;;  %v634_v38 = vor.u32 %v730_v33, %v633_v32  ;;  %v609_v40 = vld [vmem:[%s1195_s0 + $0x20] sm:$0xf] }
   0xc   :  { %v638_v39 = vor.u32 %v729_v34, %v635_v35  ;;  %v724_v41 = vld [vmem:[%s1195_s0 + $0x24] sm:$0xf0]  ;;  %v723_v42 = vld [vmem:[%s1195_s0 + $0x24] sm:$0xf]  ;;  %v611_v43 = vld [vmem:[%s1195_s0 + $0x28] sm:$0xf0] }
   0xd   :  { %v641_v44 = vld [vmem:[%s1195_s0 + $0x60] sm:$0xf]  ;;  %v732_v45 = vld [vmem:[%s1195_s0 + $0x64] sm:$0xf0]  ;;  %v731_v46 = vld [vmem:[%s1195_s0 + $0x64] sm:$0xf]  ;;  %v610_v48 = vor.u32 %v724_v41, %v609_v40  ;;  %v614_v49 = vor.u32 %v723_v42, %v611_v43 }
   0xe   :  { %244 = vmatpush.bf16.msra.mxu0 %v739_v6  ;;  %754 = vmatpush.bf16.msra.mxu2 %v739_v6  ;;  %v643_v47 = vld [vmem:[%s1195_s0 + $0x68] sm:$0xf0]  ;;  %v642_v50 = vor.u32 %v732_v45, %v641_v44  ;;  %v617_v52 = vld [vmem:[%s1195_s0 + $0x30] sm:$0xf]  ;;  %v726_v53 = vld [vmem:[%s1195_s0 + $0x34] sm:$0xf0] }
   0xf   :  { %293 = vmatpush.bf16.msra.mxu1 %v747_v7  ;;  %762 = vmatpush.bf16.msra.mxu3 %v747_v7  ;;  %v646_v51 = vor.u32 %v731_v46, %v643_v47  ;;  %v725_v54 = vld [vmem:[%s1195_s0 + $0x34] sm:$0xf]  ;;  %v619_v55 = vld [vmem:[%s1195_s0 + $0x38] sm:$0xf0]  ;;  %v649_v56 = vld [vmem:[%s1195_s0 + $0x70] sm:$0xf]  ;;  %v618_v60 = vor.u32 %v726_v53, %v617_v52 }
  0x10   :  { %v734_v57 = vld [vmem:[%s1195_s0 + $0x74] sm:$0xf0]  ;;  %v733_v58 = vld [vmem:[%s1195_s0 + $0x74] sm:$0xf]  ;;  %v651_v59 = vld [vmem:[%s1195_s0 + $0x78] sm:$0xf0]  ;;  %v622_v61 = vor.u32 %v725_v54, %v619_v55 }
  0x11   :  { %v650_v62 = vor.u32 %v734_v57, %v649_v56  ;;  %v654_v63 = vor.u32 %v733_v58, %v651_v59  ;;  %v774_v58 = vmov 128.0  }
  0x12   :  { %245 = vmatpush.bf16.msra.mxu0 %v738_v8  ;;  %755 = vmatpush.bf16.msra.mxu2 %v738_v8  ;;  %770 = vrcp.f32 %v774_v58 }
  0x13   :  { %294 = vmatpush.bf16.msra.mxu1 %v746_v9  ;;  %763 = vmatpush.bf16.msra.mxu3 %v746_v9 }
  0x16   :  { %246 = vmatpush.bf16.msra.mxu0 %v737_v10  ;;  %756 = vmatpush.bf16.msra.mxu2 %v737_v10 }
  0x17   :  { %295 = vmatpush.bf16.msra.mxu1 %v745_v11  ;;  %764 = vmatpush.bf16.msra.mxu3 %v745_v11 }
  0x1a   :  { %247 = vmatpush.bf16.msra.mxu0 %v736_v12  ;;  %757 = vmatpush.bf16.msra.mxu2 %v736_v12 }
  0x1b   :  { %296 = vmatpush.bf16.msra.mxu1 %v744_v13  ;;  %765 = vmatpush.bf16.msra.mxu3 %v744_v13 }
  0x1e   :  { %248 = vmatpush.bf16.msra.mxu0 %v735_v14  ;;  %758 = vmatpush.bf16.msra.mxu2 %v735_v14 }
  0x1f   :  { %297 = vmatpush.bf16.msra.mxu1 %v743_v15  ;;  %766 = vmatpush.bf16.msra.mxu3 %v743_v15 }
  0x21   :  { %249 = vmatmul.bf16.vlgmr.msra.gmra.mxu0 %v594_v24  ;;  %269 = vmatmul.bf16.vlgmr.msra.gmra.mxu2 %v626_v26 }
  0x22   :  { %298 = vmatmul.bf16.vlgmr.msra.gmra.mxu1 %v598_v25  ;;  %318 = vmatmul.bf16.vlgmr.msra.gmra.mxu3 %v630_v27 }
  0x31   :  { %254 = vmatmul.bf16.gmra.mxu0 %v602_v36  ;;  %274 = vmatmul.bf16.gmra.mxu2 %v634_v38 }
  0x32   :  { %303 = vmatmul.bf16.gmra.mxu1 %v606_v37  ;;  %323 = vmatmul.bf16.gmra.mxu3 %v638_v39 }
  0x41   :  { %259 = vmatmul.bf16.gmra.mxu0 %v610_v48  ;;  %279 = vmatmul.bf16.gmra.mxu2 %v642_v50 }
  0x42   :  { %308 = vmatmul.bf16.gmra.mxu1 %v614_v49  ;;  %328 = vmatmul.bf16.gmra.mxu3 %v646_v51 }
  0x51   :  { %264 = vmatmul.bf16.gmra.mxu0 %v618_v60  ;;  %284 = vmatmul.bf16.gmra.mxu2 %v650_v62 }
  0x52   :  { %313 = vmatmul.bf16.gmra.mxu1 %v622_v61  ;;  %333 = vmatmul.bf16.gmra.mxu3 %v654_v63 }
  0x9e   :  { %v250_v0 = vpop.f32.mrf.mxu0 }
  0x9f   :  { %v299_v1 = vpop.f32.mrf.mxu1 }
  0xa0   :  { %v946_v23 = vadd.f32 %v299_v1, %v250_v0 }
  0xa2   :  { %v340_v27 = vsel %vm339_vm0, %v946_v23, 0.0 }
  0xa4   :  { %v270_v2 = vpop.f32.mrf.mxu2 }
  0xa5   :  { %v319_v3 = vpop.f32.mrf.mxu3 }
  0xa6   :  { %v252_v4 = vpop.f32.mrf.mxu0  ;;  %v972_v47 = vadd.f32 %v319_v3, %v270_v2  ;;  %v771_v3 = vpop.eup %770 }
  0xa7   :  { %v301_v5 = vpop.f32.mrf.mxu1  ;;  %vm382_vm1 = vweird.f32 %v771_v3 }
  0xa8   :  { %v944_v22 = vadd.f32 %v301_v5, %v252_v4  ;;  %v355_v55 = vsel %vm339_vm0, %v972_v47, 0.0 }
  0xaa   :  { %v341_v25 = vsel %vm339_vm0, %v944_v22, 0.0 }
  0xab   :  { %v342_v32 = vadd.f32 %v341_v25, %v340_v27 }
  0xac   :  { %v272_v6 = vpop.f32.mrf.mxu2 }
  0xad   :  { %v321_v7 = vpop.f32.mrf.mxu3 }
  0xae   :  { %v255_v8 = vpop.f32.mrf.mxu0  ;;  %v976_v52 = vadd.f32 %v321_v7, %v272_v6 }
  0xaf   :  { %v304_v9 = vpop.f32.mrf.mxu1 }
  0xb0   :  { %v948_v24 = vadd.f32 %v304_v9, %v255_v8  ;;  %v357_v59 = vsel %vm339_vm0, %v976_v52, 0.0 }
  0xb2   :  { %v343_v28 = vsel %vm339_vm0, %v948_v24, 0.0 }
  0xb3   :  { %v344_v37 = vadd.f32 %v343_v28, %v342_v32 }
  0xb4   :  { %v275_v10 = vpop.f32.mrf.mxu2 }
  0xb5   :  { %v324_v11 = vpop.f32.mrf.mxu3 }
  0xb6   :  { %v257_v12 = vpop.f32.mrf.mxu0  ;;  %v982_v56 = vadd.f32 %v324_v11, %v275_v10 }
  0xb7   :  { %v306_v13 = vpop.f32.mrf.mxu1 }
  0xb8   :  { %v952_v26 = vadd.f32 %v306_v13, %v257_v12  ;;  %v359_v62 = vsel %vm339_vm0, %v982_v56, 0.0  ;;  %v378_v12 = vmul.f32 128.0, %v771_v3 }
  0xba   :  { %v345_v35 = vsel %vm339_vm0, %v952_v26, 0.0 }
  0xbb   :  { %v346_v40 = vadd.f32 %v345_v35, %v344_v37 }
  0xbc   :  { %v277_v14 = vpop.f32.mrf.mxu2 }
  0xbd   :  { %v326_v15 = vpop.f32.mrf.mxu3 }
  0xbe   :  { %v260_v16 = vpop.f32.mrf.mxu0  ;;  %v986_v60 = vadd.f32 %v326_v15, %v277_v14 }
  0xbf   :  { %v309_v17 = vpop.f32.mrf.mxu1 }
  0xc0   :  { %v958_v29 = vadd.f32 %v309_v17, %v260_v16  ;;  %v361_v1 = vsel %vm339_vm0, %v986_v60, 0.0  ;;  %v379_v17 = vsub.f32 1.0, %v378_v12 }
  0xc2   :  { %v347_v38 = vsel %vm339_vm0, %v958_v29, 0.0 }
  0xc3   :  { %v348_v42 = vadd.f32 %v347_v38, %v346_v40 }
  0xc4   :  { %v280_v18 = vpop.f32.mrf.mxu2 }
  0xc5   :  { %v329_v19 = vpop.f32.mrf.mxu3 }
  0xc6   :  { %v262_v20 = vpop.f32.mrf.mxu0  ;;  %v990_v63 = vadd.f32 %v329_v19, %v280_v18 }
  0xc7   :  { %v311_v21 = vpop.f32.mrf.mxu1 }
  0xc8   :  { %v962_v36 = vadd.f32 %v311_v21, %v262_v20  ;;  %v363_v7 = vsel %vm339_vm0, %v990_v63, 0.0  ;;  %v380_v20 = vmul.f32 %v771_v3, %v379_v17 }
  0xca   :  { %v349_v41 = vsel %vm339_vm0, %v962_v36, 0.0  ;;  %v381_v27 = vadd.f32 %v771_v3, %v380_v20 }
  0xcb   :  { %v350_v44 = vadd.f32 %v349_v41, %v348_v42 }
  0xcc   :  { %v282_v30 = vpop.f32.mrf.mxu2 }
  0xcd   :  { %v331_v31 = vpop.f32.mrf.mxu3 }
  0xce   :  { %v265_v33 = vpop.f32.mrf.mxu0  ;;  %v994_v2 = vadd.f32 %v331_v31, %v282_v30  ;;  %v1008_v31 = vsel %vm382_vm1, %v771_v3, %v381_v27 }
  0xcf   :  { %v314_v34 = vpop.f32.mrf.mxu1 }
  0xd0   :  { %v966_v39 = vadd.f32 %v314_v34, %v265_v33  ;;  %v365_v10 = vsel %vm339_vm0, %v994_v2, 0.0 }
  0xd2   :  { %v351_v43 = vsel %vm339_vm0, %v966_v39, 0.0 }
  0xd3   :  { %v352_v49 = vadd.f32 %v351_v43, %v350_v44 }
  0xd4   :  { %v285_v50 = vpop.f32.mrf.mxu2 }
  0xd5   :  { %v334_v51 = vpop.f32.mrf.mxu3 }
  0xd6   :  { %v267_v45 = vpop.f32.mrf.mxu0  ;;  %v998_v8 = vadd.f32 %v334_v51, %v285_v50 }
  0xd7   :  { %v316_v46 = vpop.f32.mrf.mxu1 }
  0xd8   :  { %v974_v48 = vadd.f32 %v316_v46, %v267_v45  ;;  %v367_v14 = vsel %vm339_vm0, %v998_v8, 0.0 }
  0xda   :  { %v353_v53 = vsel %vm339_vm0, %v974_v48, 0.0 }
  0xdb   :  { %v354_v54 = vadd.f32 %v353_v53, %v352_v49 }
  0xdc   :  { %v287_v5 = vpop.f32.mrf.mxu2 }
  0xdd   :  { %v356_v57 = vadd.f32 %v355_v55, %v354_v54  ;;  %v336_v6 = vpop.f32.mrf.mxu3 }
  0xde   :  { %v1002_v11 = vadd.f32 %v336_v6, %v287_v5 }
  0xdf   :  { %v358_v61 = vadd.f32 %v357_v59, %v356_v57 }
  0xe0   :  { %v369_v16 = vsel %vm339_vm0, %v1002_v11, 0.0 }
  0xe1   :  { %v360_v0 = vadd.f32 %v359_v62, %v358_v61 }
  0xe3   :  { %v362_v4 = vadd.f32 %v361_v1, %v360_v0 }
  0xe5   :  { %v364_v9 = vadd.f32 %v363_v7, %v362_v4 }
  0xe7   :  { %v366_v13 = vadd.f32 %v365_v10, %v364_v9 }
  0xe9   :  { %v368_v15 = vadd.f32 %v367_v14, %v366_v13 }
  0xeb   :  { %v370_v18 = vadd.f32 %v369_v16, %v368_v15 }
  0xed   :  { %v371_v19 = vrot.slane %v370_v18, 4 }
  0xef   :  { %v372_v21 = vadd.f32 %v371_v19, %v370_v18 }
  0xf1   :  { %v373_v25 = vrot.slane %v372_v21, 2 }
  0xf3   :  { %v374_v28 = vadd.f32 %v373_v25, %v372_v21 }
  0xf5   :  { %v375_v30 = vrot.slane %v374_v28, 1 }
  0xf7   :  { %v376_v32 = vadd.f32 %v375_v30, %v374_v28 }
  0xf9   :  { %v384_v33 = vmul.f32 %v1008_v31, %v376_v32 }
  0xfb   :  { %v1012_v34 = vsub.f32 %v946_v23, %v384_v33  ;;  %v1015_v35 = vsub.f32 %v944_v22, %v384_v33  ;;  %v1018_v37 = vsub.f32 %v948_v24, %v384_v33  ;;  %v1021_v38 = vsub.f32 %v952_v26, %v384_v33 }
  0xfc   :  { %v1028_v42 = vsub.f32 %v958_v29, %v384_v33  ;;  %v1033_v22 = vsub.f32 %v962_v36, %v384_v33  ;;  %v1040_v45 = vsub.f32 %v966_v39, %v384_v33  ;;  %v1046_v36 = vsub.f32 %v974_v48, %v384_v33 }
  0xfd   :  { %v401_v40 = vmul.f32 %v1012_v34, %v1012_v34  ;;  %v402_v41 = vmul.f32 %v1015_v35, %v1015_v35  ;;  %v403_v23 = vmul.f32 %v1018_v37, %v1018_v37  ;;  %v404_v24 = vmul.f32 %v1021_v38, %v1021_v38 }
  0xfe   :  { %v405_v29 = vmul.f32 %v1028_v42, %v1028_v42  ;;  %v406_v50 = vmul.f32 %v1033_v22, %v1033_v22  ;;  %v1052_v54 = vsub.f32 %v972_v47, %v384_v33  ;;  %v407_v39 = vmul.f32 %v1040_v45, %v1040_v45 }
  0xff   :  { %v417_v26 = vsel %vm339_vm0, %v401_v40, 0.0  ;;  %v418_v43 = vsel %vm339_vm0, %v402_v41, 0.0  ;;  %v420_v46 = vsel %vm339_vm0, %v403_v23, 0.0  ;;  %v422_v51 = vsel %vm339_vm0, %v404_v24, 0.0 }
 0x100   :  { %v419_v44 = vadd.f32 %v418_v43, %v417_v26  ;;  %v424_v55 = vsel %vm339_vm0, %v405_v29, 0.0  ;;  %v1058_v58 = vsub.f32 %v976_v52, %v384_v33  ;;  %v408_v48 = vmul.f32 %v1046_v36, %v1046_v36 }
 0x101   :  { %v426_v59 = vsel %vm339_vm0, %v406_v50, 0.0  ;;  %v1064_v62 = vsub.f32 %v982_v56, %v384_v33  ;;  %v409_v47 = vmul.f32 %v1052_v54, %v1052_v54  ;;  %v428_v0 = vsel %vm339_vm0, %v407_v39, 0.0 }
 0x102   :  { %v421_v49 = vadd.f32 %v420_v46, %v419_v44  ;;  %v1070_v3 = vsub.f32 %v986_v60, %v384_v33  ;;  %v410_v52 = vmul.f32 %v1058_v58, %v1058_v58  ;;  %v430_v4 = vsel %vm339_vm0, %v408_v48, 0.0 }
 0x103   :  { %v1076_v6 = vsub.f32 %v990_v63, %v384_v33  ;;  %v411_v56 = vmul.f32 %v1064_v62, %v1064_v62  ;;  %v432_v7 = vsel %vm339_vm0, %v409_v47, 0.0  ;;  %v1082_v10 = vsub.f32 %v994_v2, %v384_v33 }
 0x104   :  { %v423_v53 = vadd.f32 %v422_v51, %v421_v49  ;;  %v412_v60 = vmul.f32 %v1070_v3, %v1070_v3  ;;  %v434_v12 = vsel %vm339_vm0, %v410_v52, 0.0  ;;  %v1088_v14 = vsub.f32 %v998_v8, %v384_v33 }
 0x105   :  { %v413_v63 = vmul.f32 %v1076_v6, %v1076_v6  ;;  %v436_v15 = vsel %vm339_vm0, %v411_v56, 0.0  ;;  %v1094_v17 = vsub.f32 %v1002_v11, %v384_v33  ;;  %v414_v2 = vmul.f32 %v1082_v10, %v1082_v10 }
 0x106   :  { %v425_v57 = vadd.f32 %v424_v55, %v423_v53  ;;  %v438_v18 = vsel %vm339_vm0, %v412_v60, 0.0  ;;  %v415_v20 = vmul.f32 %v1088_v14, %v1088_v14 }
 0x107   :  { %v440_v8 = vsel %vm339_vm0, %v413_v63, 0.0  ;;  %v416_v25 = vmul.f32 %v1094_v17, %v1094_v17  ;;  %v442_v27 = vsel %vm339_vm0, %v414_v2, 0.0 }
 0x108   :  { %v427_v61 = vadd.f32 %v426_v59, %v425_v57  ;;  %v444_v11 = vsel %vm339_vm0, %v415_v20, 0.0 }
 0x109   :  { %v446_v32 = vsel %vm339_vm0, %v416_v25, 0.0 }
 0x10a   :  { %v429_v1 = vadd.f32 %v428_v0, %v427_v61 }
 0x10c   :  { %v431_v5 = vadd.f32 %v430_v4, %v429_v1 }
 0x10e   :  { %v433_v9 = vadd.f32 %v432_v7, %v431_v5 }
 0x110   :  { %v435_v13 = vadd.f32 %v434_v12, %v433_v9 }
 0x112   :  { %v437_v16 = vadd.f32 %v436_v15, %v435_v13 }
 0x114   :  { %v439_v19 = vadd.f32 %v438_v18, %v437_v16 }
 0x116   :  { %v441_v21 = vadd.f32 %v440_v8, %v439_v19 }
 0x118   :  { %v443_v28 = vadd.f32 %v442_v27, %v441_v21 }
 0x11a   :  { %v445_v30 = vadd.f32 %v444_v11, %v443_v28 }
 0x11c   :  { %v447_v33 = vadd.f32 %v446_v32, %v445_v30 }
 0x11e   :  { %v448_v40 = vrot.slane %v447_v33, 4 }
 0x120   :  { %v449_v41 = vadd.f32 %v448_v40, %v447_v33 }
 0x122   :  { %v450_v23 = vrot.slane %v449_v41, 2 }
 0x124   :  { %v451_v24 = vadd.f32 %v450_v23, %v449_v41 }
 0x126   :  { %v452_v26 = vrot.slane %v451_v24, 1 }
 0x128   :  { %v453_v43 = vadd.f32 %v452_v26, %v451_v24 }
 0x12a   :  { %v454_v44 = vmul.f32 %v453_v43, %v1008_v31  ;;  %v768_v31 = vld [vmem:[%s1196_s2] ss:$0 sm:$0xff] }
 0x12c   :  { %v455_v29 = vadd.f32 1e-05, %v454_v44 }
 0x12e   :  { %772 = vrsqrt.f32 %v455_v29  ;;  %vm462_vm3 = vweird.f32 %v455_v29 }
 0x134   :  { %v773_v46 = vpop.eup %772 }
 0x135   :  { %v457_v49 = vmul.f32 %v773_v46, %v455_v29  ;;  %vm463_vm2 = vweird.f32 %v773_v46 }
 0x136   :  { %vm464_vm4 = vmor %vm462_vm3, %vm463_vm2 }
 0x137   :  { %v458_v50 = vmul.f32 %v773_v46, %v457_v49 }
 0x139   :  { %v459_v51 = vmul.f32 0.5, %v458_v50 }
 0x13b   :  { %v460_v53 = vsub.f32 1.5, %v459_v51 }
 0x13d   :  { %v461_v39 = vmul.f32 %v773_v46, %v460_v53 }
 0x13f   :  { %v465_v55 = vsel %vm464_vm4, %v773_v46, %v461_v39 }
 0x140   :  { %v466_v57 = vmul.f32 %v465_v55, %v1012_v34  ;;  %v467_v48 = vmul.f32 %v465_v55, %v1015_v35  ;;  %v468_v59 = vmul.f32 %v465_v55, %v1018_v37  ;;  %v469_v61 = vmul.f32 %v465_v55, %v1021_v38  ;;  %v769_v34 = vld [vmem:[%s1197_s3] ss:$0 sm:$0xff] }
 0x141   :  { %v470_v47 = vmul.f32 %v465_v55, %v1028_v42  ;;  %v471_v0 = vmul.f32 %v465_v55, %v1033_v22  ;;  %v472_v1 = vmul.f32 %v465_v55, %v1040_v45  ;;  %v473_v35 = vmul.f32 %v465_v55, %v1046_v36 }
 0x142   :  { %v486_v52 = vmul.f32 %v768_v31, %v466_v57  ;;  %v487_v4 = vmul.f32 %v768_v31, %v467_v48  ;;  %v488_v5 = vmul.f32 %v768_v31, %v468_v59  ;;  %v489_v56 = vmul.f32 %v768_v31, %v469_v61 }
 0x143   :  { %v474_v37 = vmul.f32 %v465_v55, %v1052_v54  ;;  %v490_v7 = vmul.f32 %v768_v31, %v470_v47  ;;  %v475_v38 = vmul.f32 %v465_v55, %v1058_v58  ;;  %v491_v42 = vmul.f32 %v768_v31, %v471_v0 }
 0x144   :  { %v476_v22 = vmul.f32 %v465_v55, %v1064_v62  ;;  %v492_v9 = vmul.f32 %v768_v31, %v472_v1  ;;  %v506_v45 = vadd.f32 %v769_v34, %v486_v52  ;;  %v507_v60 = vadd.f32 %v769_v34, %v487_v4 }
 0x145   :  { %v477_v12 = vmul.f32 %v465_v55, %v1070_v3  ;;  %v493_v13 = vmul.f32 %v768_v31, %v473_v35  ;;  %v508_v63 = vadd.f32 %v769_v34, %v488_v5  ;;  %v509_v15 = vadd.f32 %v769_v34, %v489_v56 }
 0x146   :  { %v478_v36 = vmul.f32 %v465_v55, %v1076_v6  ;;  %v479_v16 = vmul.f32 %v465_v55, %v1082_v10  ;;  %v494_v2 = vmul.f32 %v768_v31, %v474_v37  ;;  %v510_v54 = vadd.f32 %v769_v34, %v490_v7 }
 0x147   :  { %v480_v18 = vmul.f32 %v465_v55, %v1088_v14  ;;  %v481_v58 = vmul.f32 %v465_v55, %v1094_v17  ;;  %v495_v19 = vmul.f32 %v768_v31, %v475_v38  ;;  %v511_v62 = vadd.f32 %v769_v34, %v491_v42 }
 0x148   :  { %v496_v20 = vmul.f32 %v768_v31, %v476_v22  ;;  %v512_v8 = vadd.f32 %v769_v34, %v492_v9  ;;  %v522_v21 = vmul.f32 0.2, %v506_v45  ;;  %v523_v3 = vmul.f32 0.2, %v507_v60 }
 0x149   :  { %v497_v25 = vmul.f32 %v768_v31, %v477_v12  ;;  %v513_v27 = vadd.f32 %v769_v34, %v493_v13  ;;  %v524_v28 = vmul.f32 0.2, %v508_v63  ;;  %v525_v11 = vmul.f32 0.2, %v509_v15 }
 0x14a   :  { %v498_v6 = vmul.f32 %v768_v31, %v478_v36  ;;  %v499_v30 = vmul.f32 %v768_v31, %v479_v16  ;;  %v514_v10 = vadd.f32 %v769_v34, %v494_v2  ;;  %v526_v32 = vmul.f32 0.2, %v510_v54 }
 0x14b   :  { %v500_v33 = vmul.f32 %v768_v31, %v480_v18  ;;  %v501_v40 = vmul.f32 %v768_v31, %v481_v58  ;;  %v515_v14 = vadd.f32 %v769_v34, %v495_v19  ;;  %v527_v41 = vmul.f32 0.2, %v511_v62 }
 0x14c   :  { %v516_v17 = vadd.f32 %v769_v34, %v496_v20  ;;  %v528_v23 = vmul.f32 0.2, %v512_v8  ;;  %v538_v24 = vmax.f32 %v506_v45, %v522_v21  ;;  %v539_v26 = vmax.f32 %v507_v60, %v523_v3 }
 0x14d   :  { %v517_v43 = vadd.f32 %v769_v34, %v497_v25  ;;  %v529_v44 = vmul.f32 0.2, %v513_v27  ;;  %v540_v29 = vmax.f32 %v508_v63, %v524_v28  ;;  %v541_v46 = vmax.f32 %v509_v15, %v525_v11 }
 0x14e   :  { %v518_v49 = vadd.f32 %v769_v34, %v498_v6  ;;  %v519_v50 = vadd.f32 %v769_v34, %v499_v30  ;;  %v530_v51 = vmul.f32 0.2, %v514_v10  ;;  %v542_v53 = vmax.f32 %v510_v54, %v526_v32 }
 0x14f   :  { %v520_v39 = vadd.f32 %v769_v34, %v500_v33  ;;  %v521_v55 = vadd.f32 %v769_v34, %v501_v40  ;;  %v531_v57 = vmul.f32 0.2, %v515_v14  ;;  %v543_v48 = vmax.f32 %v511_v62, %v527_v41 }
 0x150   :  { %v532_v59 = vmul.f32 0.2, %v516_v17  ;;  %v544_v31 = vmax.f32 %v512_v8, %v528_v23  ;;  %v554_v61 = vpack.c.bf16 %v538_v24, %v538_v24  ;;  %v555_v47 = vpack.c.bf16 %v539_v26, %v539_v26 }
 0x151   :  { %v533_v0 = vmul.f32 0.2, %v517_v43  ;;  %v545_v1 = vmax.f32 %v513_v27, %v529_v44  ;;  %v556_v52 = vpack.c.bf16 %v540_v29, %v540_v29  ;;  %v557_v4 = vpack.c.bf16 %v541_v46, %v541_v46 }
 0x152   :  { %v534_v35 = vmul.f32 0.2, %v518_v49  ;;  %v546_v5 = vmax.f32 %v514_v10, %v530_v51  ;;  %v558_v56 = vpack.c.bf16 %v542_v53, %v542_v53  ;;  %571 = vst.msk [vmem:[%s1198_s4] sm:$0xf] %vm570_vm5, %v554_v61  ;;  %v535_v37 = vmul.f32 0.2, %v519_v50 }
 0x153   :  { %v547_v34 = vmax.f32 %v515_v14, %v531_v57  ;;  %v559_v7 = vpack.c.bf16 %v543_v48, %v543_v48  ;;  %572 = vst.msk [vmem:[%s1198_s4 + $0x4] sm:$0xf] %vm570_vm5, %v555_v47  ;;  %v536_v38 = vmul.f32 0.2, %v520_v39  ;;  %v548_v42 = vmax.f32 %v516_v17, %v532_v59 }
 0x154   :  { %v560_v22 = vpack.c.bf16 %v544_v31, %v544_v31  ;;  %573 = vst.msk [vmem:[%s1198_s4 + $0x8] sm:$0xf] %vm570_vm5, %v556_v52  ;;  %v537_v9 = vmul.f32 0.2, %v521_v55  ;;  %v549_v45 = vmax.f32 %v517_v43, %v533_v0  ;;  %v561_v60 = vpack.c.bf16 %v545_v1, %v545_v1 }
 0x155   :  { %574 = vst.msk [vmem:[%s1198_s4 + $0xc] sm:$0xf] %vm570_vm5, %v557_v4  ;;  %v550_v12 = vmax.f32 %v518_v49, %v534_v35  ;;  %v562_v13 = vpack.c.bf16 %v546_v5, %v546_v5  ;;  %v551_v63 = vmax.f32 %v519_v50, %v535_v37  ;;  %v563_v15 = vpack.c.bf16 %v547_v34, %v547_v34 }
 0x156   :  { %575 = vst.msk [vmem:[%s1198_s4 + $0x10] sm:$0xf] %vm570_vm5, %v558_v56  ;;  %v552_v36 = vmax.f32 %v520_v39, %v536_v38  ;;  %v564_v16 = vpack.c.bf16 %v548_v42, %v548_v42  ;;  %v553_v2 = vmax.f32 %v521_v55, %v537_v9  ;;  %v565_v54 = vpack.c.bf16 %v549_v45, %v549_v45 }
 0x157   :  { %576 = vst.msk [vmem:[%s1198_s4 + $0x14] sm:$0xf] %vm570_vm5, %v559_v7  ;;  %v566_v18 = vpack.c.bf16 %v550_v12, %v550_v12  ;;  %v567_v58 = vpack.c.bf16 %v551_v63, %v551_v63 }
 0x158   :  { %577 = vst.msk [vmem:[%s1198_s4 + $0x18] sm:$0xf] %vm570_vm5, %v560_v22  ;;  %v568_v19 = vpack.c.bf16 %v552_v36, %v552_v36  ;;  %v569_v62 = vpack.c.bf16 %v553_v2, %v553_v2 }
 0x159   :  { %578 = vst.msk [vmem:[%s1198_s4 + $0x1c] sm:$0xf] %vm570_vm5, %v561_v60 }
 0x15a   :  { %579 = vst.msk [vmem:[%s1198_s4 + $0x20] sm:$0xf] %vm570_vm5, %v562_v13 }
 0x15b   :  { %580 = vst.msk [vmem:[%s1198_s4 + $0x24] sm:$0xf] %vm570_vm5, %v563_v15 }
 0x15c   :  { %581 = vst.msk [vmem:[%s1198_s4 + $0x28] sm:$0xf] %vm570_vm5, %v564_v16 }
 0x15d   :  { %582 = vst.msk [vmem:[%s1198_s4 + $0x2c] sm:$0xf] %vm570_vm5, %v565_v54 }
 0x15e   :  { %583 = vst.msk [vmem:[%s1198_s4 + $0x30] sm:$0xf] %vm570_vm5, %v566_v18 }
 0x15f   :  { %584 = vst.msk [vmem:[%s1198_s4 + $0x34] sm:$0xf] %vm570_vm5, %v567_v58 }
 0x160   :  { %585 = vst.msk [vmem:[%s1198_s4 + $0x38] sm:$0xf] %vm570_vm5, %v568_v19 }
 0x161   :  { %586 = vst.msk [vmem:[%s1198_s4 + $0x3c] sm:$0xf] %vm570_vm5, %v569_v62 }

// kernel: discriminator_forward.7
= control target key start
LH: loop header
LB: loop body
LE: loop exit
PB: predicated region body
PF: predicated region fallthrough
CT: control target
= control target key end

     0   :  { %vm406_vm0 = vcmask 523264   ;;  %vm1323_vm5 = vcmask 1024   ;;  %s2435_s1 = inlined_call_operand.vmem [shape: bf16[512,64], index: 1, kind: input, shape index: {}]   ;;  %s2436_s0 = inlined_call_operand.vmem [shape: bf16[32,512], index: 0, kind: input, shape index: {}]   ;;  %s2437_s2 = inlined_call_operand.vmem [shape: f32[1,64], index: 2, kind: input, shape index: {}]   ;;  %s2438_s3 = inlined_call_operand.vmem [shape: f32[1,64], index: 3, kind: input, shape index: {}]   ;;  %s2439_s4 = inlined_call_operand.vmem [shape: bf16[16,64,1], index: 4, kind: input, shape index: {}]   ;;  %s2440_s5 = inlined_call_operand.<no memory space> [shape: f32[1,1], index: 5, kind: input, shape index: {}]   ;;  %s2441_s6 = inlined_call_operand.vmem [shape: f32[2,1], index: 6, kind: output, shape index: {}]  }
   0x1   :  { %v1896_v0 = vld [vmem:[%s2435_s1 + $0x38] sm:$0xff]  ;;  %v1895_v4 = vld [vmem:[%s2435_s1 + $0x30] sm:$0xff]  ;;  %v1894_v8 = vld [vmem:[%s2435_s1 + $0x28] sm:$0xff] }
   0x2   :  { %v1904_v1 = vld [vmem:[%s2435_s1 + $0x78] sm:$0xff]  ;;  %330 = vmatpush.bf16.msra.mxu0 %v1896_v0  ;;  %v1903_v5 = vld [vmem:[%s2435_s1 + $0x70] sm:$0xff]  ;;  %v1902_v9 = vld [vmem:[%s2435_s1 + $0x68] sm:$0xff] }
   0x3   :  { %v1912_v2 = vld [vmem:[%s2435_s1 + $0xb8] sm:$0xff]  ;;  %349 = vmatpush.bf16.msra.mxu1 %v1904_v1  ;;  %v1911_v6 = vld [vmem:[%s2435_s1 + $0xb0] sm:$0xff]  ;;  %v1910_v10 = vld [vmem:[%s2435_s1 + $0xa8] sm:$0xff] }
   0x4   :  { %v1920_v3 = vld [vmem:[%s2435_s1 + $0xf8] sm:$0xff]  ;;  %368 = vmatpush.bf16.msra.mxu2 %v1912_v2  ;;  %v1919_v7 = vld [vmem:[%s2435_s1 + $0xf0] sm:$0xff]  ;;  %v1918_v11 = vld [vmem:[%s2435_s1 + $0xe8] sm:$0xff] }
   0x5   :  { %387 = vmatpush.bf16.msra.mxu3 %v1920_v3  ;;  %v1893_v12 = vld [vmem:[%s2435_s1 + $0x20] sm:$0xff]  ;;  %v1892_v16 = vld [vmem:[%s2435_s1 + $0x18] sm:$0xff]  ;;  %v1891_v20 = vld [vmem:[%s2435_s1 + $0x10] sm:$0xff] }
   0x6   :  { %331 = vmatpush.bf16.msra.mxu0 %v1895_v4  ;;  %v1901_v13 = vld [vmem:[%s2435_s1 + $0x60] sm:$0xff]  ;;  %v1900_v17 = vld [vmem:[%s2435_s1 + $0x58] sm:$0xff]  ;;  %v1899_v21 = vld [vmem:[%s2435_s1 + $0x50] sm:$0xff] }
   0x7   :  { %350 = vmatpush.bf16.msra.mxu1 %v1903_v5  ;;  %v1909_v14 = vld [vmem:[%s2435_s1 + $0xa0] sm:$0xff]  ;;  %v1908_v18 = vld [vmem:[%s2435_s1 + $0x98] sm:$0xff]  ;;  %v1907_v22 = vld [vmem:[%s2435_s1 + $0x90] sm:$0xff] }
   0x8   :  { %369 = vmatpush.bf16.msra.mxu2 %v1911_v6  ;;  %v1917_v15 = vld [vmem:[%s2435_s1 + $0xe0] sm:$0xff]  ;;  %v1916_v19 = vld [vmem:[%s2435_s1 + $0xd8] sm:$0xff]  ;;  %v1915_v23 = vld [vmem:[%s2435_s1 + $0xd0] sm:$0xff] }
   0x9   :  { %388 = vmatpush.bf16.msra.mxu3 %v1919_v7  ;;  %v1890_v24 = vld [vmem:[%s2435_s1 + $0x8] sm:$0xff]  ;;  %v1889_v28 = vld [vmem:[%s2435_s1] sm:$0xff]  ;;  %v1883_v33 = vld [vmem:[%s2436_s0 + $0xc] sm:$0xf0] }
   0xa   :  { %332 = vmatpush.bf16.msra.mxu0 %v1894_v8  ;;  %v1898_v25 = vld [vmem:[%s2435_s1 + $0x48] sm:$0xff]  ;;  %v1897_v29 = vld [vmem:[%s2435_s1 + $0x40] sm:$0xff]  ;;  %v1333_v35 = vld [vmem:[%s2436_s0 + $0x10] sm:$0xf0]  ;;  %v1995_v8 = vmov 32.0  }
   0xb   :  { %351 = vmatpush.bf16.msra.mxu1 %v1902_v9  ;;  %v1906_v26 = vld [vmem:[%s2435_s1 + $0x88] sm:$0xff]  ;;  %v1905_v30 = vld [vmem:[%s2435_s1 + $0x80] sm:$0xff]  ;;  %v1884_v37 = vld [vmem:[%s2436_s0 + $0x14] sm:$0xf0]  ;;  %1989 = vrcp.f32 %v1995_v8 }
   0xc   :  { %370 = vmatpush.bf16.msra.mxu2 %v1910_v10  ;;  %v1914_v27 = vld [vmem:[%s2435_s1 + $0xc8] sm:$0xff]  ;;  %v1913_v31 = vld [vmem:[%s2435_s1 + $0xc0] sm:$0xff]  ;;  %v1341_v39 = vld [vmem:[%s2436_s0 + $0x18] sm:$0xf0] }
   0xd   :  { %389 = vmatpush.bf16.msra.mxu3 %v1918_v11  ;;  %v1331_v32 = vld [vmem:[%s2436_s0] sm:$0xf]  ;;  %v1881_v34 = vld [vmem:[%s2436_s0 + $0x4] sm:$0xf]  ;;  %v1339_v36 = vld [vmem:[%s2436_s0 + $0x8] sm:$0xf] }
   0xe   :  { %333 = vmatpush.bf16.msra.mxu0 %v1893_v12  ;;  %v1882_v38 = vld [vmem:[%s2436_s0 + $0xc] sm:$0xf]  ;;  %v1332_v40 = vor.u32 %v1883_v33, %v1331_v32  ;;  %v1336_v41 = vor.u32 %v1881_v34, %v1333_v35  ;;  %v1340_v42 = vor.u32 %v1884_v37, %v1339_v36  ;;  %v1347_v44 = vld [vmem:[%s2436_s0 + $0x20] sm:$0xf]  ;;  %v1887_v45 = vld [vmem:[%s2436_s0 + $0x2c] sm:$0xf0] }
   0xf   :  { %352 = vmatpush.bf16.msra.mxu1 %v1901_v13  ;;  %v1344_v43 = vor.u32 %v1882_v38, %v1341_v39  ;;  %v1885_v46 = vld [vmem:[%s2436_s0 + $0x24] sm:$0xf]  ;;  %v1349_v47 = vld [vmem:[%s2436_s0 + $0x30] sm:$0xf0]  ;;  %v1355_v48 = vld [vmem:[%s2436_s0 + $0x28] sm:$0xf]  ;;  %v1348_v52 = vor.u32 %v1887_v45, %v1347_v44 }
  0x10   :  { %371 = vmatpush.bf16.msra.mxu2 %v1909_v14  ;;  %v1888_v49 = vld [vmem:[%s2436_s0 + $0x34] sm:$0xf0]  ;;  %v1886_v50 = vld [vmem:[%s2436_s0 + $0x2c] sm:$0xf]  ;;  %v1357_v51 = vld [vmem:[%s2436_s0 + $0x38] sm:$0xf0]  ;;  %v1352_v53 = vor.u32 %v1885_v46, %v1349_v47 }
  0x11   :  { %390 = vmatpush.bf16.msra.mxu3 %v1917_v15  ;;  %v1356_v54 = vor.u32 %v1888_v49, %v1355_v48  ;;  %v1360_v55 = vor.u32 %v1886_v50, %v1357_v51  ;;  %v1930_v8 = vld [vmem:[%s2439_s4 + $0x48] sm:$0xff] }
  0x12   :  { %334 = vmatpush.bf16.msra.mxu0 %v1892_v16  ;;  %v1990_v16 = vpop.eup %1989 }
  0x13   :  { %353 = vmatpush.bf16.msra.mxu1 %v1900_v17  ;;  %vm425_vm1 = vweird.f32 %v1990_v16 }
  0x14   :  { %372 = vmatpush.bf16.msra.mxu2 %v1908_v18 }
  0x15   :  { %391 = vmatpush.bf16.msra.mxu3 %v1916_v19 }
  0x16   :  { %335 = vmatpush.bf16.msra.mxu0 %v1891_v20 }
  0x17   :  { %354 = vmatpush.bf16.msra.mxu1 %v1899_v21 }
  0x18   :  { %373 = vmatpush.bf16.msra.mxu2 %v1907_v22 }
  0x19   :  { %392 = vmatpush.bf16.msra.mxu3 %v1915_v23  ;;  %v421_v23 = vmul.f32 32.0, %v1990_v16 }
  0x1a   :  { %336 = vmatpush.bf16.msra.mxu0 %v1890_v24 }
  0x1b   :  { %355 = vmatpush.bf16.msra.mxu1 %v1898_v25 }
  0x1c   :  { %374 = vmatpush.bf16.msra.mxu2 %v1906_v26 }
  0x1d   :  { %393 = vmatpush.bf16.msra.mxu3 %v1914_v27 }
  0x1e   :  { %337 = vmatpush.bf16.msra.mxu0 %v1889_v28 }
  0x1f   :  { %356 = vmatpush.bf16.msra.mxu1 %v1897_v29  ;;  %v422_v29 = vsub.f32 1.0, %v421_v23 }
  0x20   :  { %375 = vmatpush.bf16.msra.mxu2 %v1905_v30 }
  0x21   :  { %394 = vmatpush.bf16.msra.mxu3 %v1913_v31  ;;  %338 = vmatmul.bf16.vlgmr.msra.gmra.mxu0 %v1332_v40  ;;  %v423_v32 = vmul.f32 %v1990_v16, %v422_v29 }
  0x22   :  { %357 = vmatmul.bf16.vlgmr.msra.gmra.mxu1 %v1336_v41 }
  0x23   :  { %376 = vmatmul.bf16.vlgmr.msra.gmra.mxu2 %v1340_v42  ;;  %v424_v35 = vadd.f32 %v1990_v16, %v423_v32  ;;  %v1950_v32 = vld [vmem:[%s2439_s4 + $0xe8] sm:$0xff] }
  0x24   :  { %395 = vmatmul.bf16.vlgmr.msra.gmra.mxu3 %v1344_v43 }
  0x25   :  { %v426_v38 = vsel %vm425_vm1, %v1990_v16, %v424_v35  ;;  %v1933_v16 = vld [vmem:[%s2439_s4 + $0x60] sm:$0xff] }
  0x26   :  { %v1945_v35 = vld [vmem:[%s2439_s4 + $0xc0] sm:$0xff] }
  0x31   :  { %343 = vmatmul.bf16.gmra.mxu0 %v1348_v52 }
  0x32   :  { %362 = vmatmul.bf16.gmra.mxu1 %v1352_v53 }
  0x33   :  { %381 = vmatmul.bf16.gmra.mxu2 %v1356_v54 }
  0x34   :  { %400 = vmatmul.bf16.gmra.mxu3 %v1360_v55  ;;  %v1924_v55 = vld [vmem:[%s2439_s4 + $0x18] sm:$0xff] }
  0x35   :  { %585 = vmatpush.bf16.msrb.mxu1 %v1924_v55 }
  0x9e   :  { %v339_v56 = vpop.f32.mrf.mxu0 }
  0x9f   :  { %v358_v57 = vpop.f32.mrf.mxu1 }
  0xa0   :  { %v359_v2 = vadd.f32 %v358_v57, %v339_v56 }
  0xa6   :  { %v377_v58 = vpop.f32.mrf.mxu2  ;;  %v341_v60 = vpop.f32.mrf.mxu0 }
  0xa7   :  { %v396_v59 = vpop.f32.mrf.mxu3  ;;  %v360_v61 = vpop.f32.mrf.mxu1  ;;  %v378_v9 = vadd.f32 %v377_v58, %v359_v2  ;;  %v1923_v58 = vld [vmem:[%s2439_s4 + $0x10] sm:$0xff] }
  0xa8   :  { %v361_v3 = vadd.f32 %v360_v61, %v341_v60  ;;  %v1932_v60 = vld [vmem:[%s2439_s4 + $0x58] sm:$0xff]  ;;  %586 = vmatpush.bf16.msrb.mxu1 %v1923_v58  ;;  %v1931_v2 = vld [vmem:[%s2439_s4 + $0x50] sm:$0xff] }
  0xa9   :  { %v397_v14 = vadd.f32 %v396_v59, %v378_v9  ;;  %v1928_v61 = vld [vmem:[%s2439_s4 + $0x38] sm:$0xff]  ;;  %635 = vmatpush.bf16.msrb.mxu2 %v1932_v60  ;;  %v1926_v9 = vld [vmem:[%s2439_s4 + $0x28] sm:$0xff] }
  0xaa   :  { %545 = vmatpush.bf16.msrb.mxu0 %v1928_v61  ;;  %v1964_v61 = vld [vmem:[%s2439_s4 + $0x158] sm:$0xff] }
  0xab   :  { %v407_v20 = vsel %vm406_vm0, %v397_v14, 0.0 }
  0xad   :  { %636 = vmatpush.bf16.msrb.mxu2 %v1931_v2  ;;  %v1958_v2 = vld [vmem:[%s2439_s4 + $0x128] sm:$0xff] }
  0xae   :  { %v379_v62 = vpop.f32.mrf.mxu2  ;;  %v344_v0 = vpop.f32.mrf.mxu0 }
  0xaf   :  { %v398_v63 = vpop.f32.mrf.mxu3  ;;  %v363_v1 = vpop.f32.mrf.mxu1  ;;  %v380_v5 = vadd.f32 %v379_v62, %v361_v3  ;;  %v1936_v62 = vld [vmem:[%s2439_s4 + $0x78] sm:$0xff]  ;;  %v1927_v3 = vld [vmem:[%s2439_s4 + $0x30] sm:$0xff] }
  0xb0   :  { %v364_v4 = vadd.f32 %v363_v1, %v344_v0  ;;  %v1922_v0 = vld [vmem:[%s2439_s4 + $0x8] sm:$0xff]  ;;  %686 = vmatpush.bf16.msrb.mxu3 %v1936_v62  ;;  %546 = vmatpush.bf16.msrb.mxu0 %v1927_v3 }
  0xb1   :  { %v399_v11 = vadd.f32 %v398_v63, %v380_v5  ;;  %587 = vmatpush.bf16.msrb.mxu1 %v1922_v0  ;;  %637 = vmatpush.bf16.msrb.mxu2 %v1930_v8  ;;  %v1956_v0 = vld [vmem:[%s2439_s4 + $0x118] sm:$0xff]  ;;  %v1957_v8 = vld [vmem:[%s2439_s4 + $0x120] sm:$0xff] }
  0xb3   :  { %v408_v17 = vsel %vm406_vm0, %v399_v11, 0.0 }
  0xb4   :  { %v409_v24 = vadd.f32 %v408_v17, %v407_v20  ;;  %547 = vmatpush.bf16.msrb.mxu0 %v1926_v9  ;;  %v1943_v17 = vld [vmem:[%s2439_s4 + $0xb0] sm:$0xff]  ;;  %v1952_v20 = vld [vmem:[%s2439_s4 + $0xf8] sm:$0xff] }
  0xb6   :  { %v382_v6 = vpop.f32.mrf.mxu2  ;;  %v346_v12 = vpop.f32.mrf.mxu0 }
  0xb7   :  { %v401_v7 = vpop.f32.mrf.mxu3  ;;  %v383_v10 = vadd.f32 %v382_v6, %v364_v4  ;;  %v365_v13 = vpop.f32.mrf.mxu1  ;;  %v1935_v4 = vld [vmem:[%s2439_s4 + $0x70] sm:$0xff]  ;;  %v1921_v6 = vld [vmem:[%s2439_s4] sm:$0xff] }
  0xb8   :  { %v366_v18 = vadd.f32 %v365_v13, %v346_v12  ;;  %687 = vmatpush.bf16.msrb.mxu3 %v1935_v4  ;;  %588 = vmatpush.bf16.msrb.mxu1 %v1921_v6  ;;  %v1944_v13 = vld [vmem:[%s2439_s4 + $0xb8] sm:$0xff]  ;;  %v1955_v6 = vld [vmem:[%s2439_s4 + $0x110] sm:$0xff] }
  0xb9   :  { %v402_v15 = vadd.f32 %v401_v7, %v383_v10  ;;  %v1934_v10 = vld [vmem:[%s2439_s4 + $0x68] sm:$0xff] }
  0xbb   :  { %v410_v21 = vsel %vm406_vm0, %v402_v15, 0.0 }
  0xbc   :  { %v411_v27 = vadd.f32 %v410_v21, %v409_v24  ;;  %688 = vmatpush.bf16.msrb.mxu3 %v1934_v10  ;;  %790 = vmatpush.bf16.msra.mxu1 %v1944_v13  ;;  %v1947_v24 = vld [vmem:[%s2439_s4 + $0xd0] sm:$0xff]  ;;  %v1966_v13 = vld [vmem:[%s2439_s4 + $0x168] sm:$0xff] }
  0xbe   :  { %v384_v19 = vpop.f32.mrf.mxu2 }
  0xbf   :  { %v385_v22 = vadd.f32 %v384_v19, %v366_v18  ;;  %v403_v25 = vpop.f32.mrf.mxu3  ;;  %v1948_v18 = vld [vmem:[%s2439_s4 + $0xd8] sm:$0xff] }
  0xc0   :  { %689 = vmatpush.bf16.msrb.mxu3 %v1933_v16  ;;  %791 = vmatpush.bf16.msra.mxu1 %v1943_v17  ;;  %v1940_v19 = vld [vmem:[%s2439_s4 + $0x98] sm:$0xff] }
  0xc1   :  { %v404_v26 = vadd.f32 %v403_v25, %v385_v22  ;;  %v1942_v22 = vld [vmem:[%s2439_s4 + $0xa8] sm:$0xff]  ;;  %v1939_v25 = vld [vmem:[%s2439_s4 + $0x90] sm:$0xff] }
  0xc3   :  { %v412_v28 = vsel %vm406_vm0, %v404_v26, 0.0 }
  0xc4   :  { %v413_v30 = vadd.f32 %v412_v28, %v411_v27  ;;  %892 = vmatpush.bf16.msra.mxu3 %v1952_v20  ;;  %792 = vmatpush.bf16.msra.mxu1 %v1942_v22  ;;  %v1941_v27 = vld [vmem:[%s2439_s4 + $0xa0] sm:$0xff]  ;;  %v1975_v20 = vld [vmem:[%s2439_s4 + $0x1b0] sm:$0xff] }
  0xc6   :  { %v414_v31 = vrot.slane %v413_v30, 4 }
  0xc8   :  { %v415_v33 = vadd.f32 %v414_v31, %v413_v30  ;;  %v1946_v30 = vld [vmem:[%s2439_s4 + $0xc8] sm:$0xff]  ;;  %793 = vmatpush.bf16.msra.mxu1 %v1941_v27 }
  0xc9   :  { %v1938_v31 = vld [vmem:[%s2439_s4 + $0x88] sm:$0xff] }
  0xca   :  { %v416_v34 = vrot.slane %v415_v33, 2 }
  0xcc   :  { %v417_v36 = vadd.f32 %v416_v34, %v415_v33 }
  0xce   :  { %v418_v37 = vrot.slane %v417_v36, 1 }
  0xd0   :  { %v419_v39 = vadd.f32 %v418_v37, %v417_v36  ;;  %v1937_v36 = vld [vmem:[%s2439_s4 + $0x80] sm:$0xff] }
  0xd1   :  { %v2295_v37 = vld [vmem:[%s2437_s2] ss:$0 sm:$0xff] }
  0xd2   :  { %v427_v40 = vmul.f32 %v426_v38, %v419_v39 }
  0xd4   :  { %v2179_v41 = vsub.f32 %v397_v14, %v427_v40  ;;  %v2181_v42 = vsub.f32 %v399_v11, %v427_v40  ;;  %v2183_v43 = vsub.f32 %v402_v15, %v427_v40  ;;  %v2185_v44 = vsub.f32 %v404_v26, %v427_v40  ;;  %v1929_v14 = vld [vmem:[%s2439_s4 + $0x40] sm:$0xff]  ;;  %v1951_v26 = vld [vmem:[%s2439_s4 + $0xf0] sm:$0xff] }
  0xd5   :  { %v1925_v15 = vld [vmem:[%s2439_s4 + $0x20] sm:$0xff]  ;;  %638 = vmatpush.bf16.msrb.mxu2 %v1929_v14  ;;  %893 = vmatpush.bf16.msra.mxu3 %v1951_v26  ;;  %v1976_v14 = vld [vmem:[%s2439_s4 + $0x1b8] sm:$0xff] }
  0xd6   :  { %v432_v45 = vmul.f32 %v2179_v41, %v2179_v41  ;;  %v433_v46 = vmul.f32 %v2181_v42, %v2181_v42  ;;  %v434_v47 = vmul.f32 %v2183_v43, %v2183_v43  ;;  %v435_v48 = vmul.f32 %v2185_v44, %v2185_v44  ;;  %548 = vmatpush.bf16.msrb.mxu0 %v1925_v15  ;;  %v1984_v26 = vld [vmem:[%s2439_s4 + $0x1f8] sm:$0xff] }
  0xd8   :  { %v436_v49 = vsel %vm406_vm0, %v432_v45, 0.0  ;;  %v437_v50 = vsel %vm406_vm0, %v433_v46, 0.0  ;;  %v439_v52 = vsel %vm406_vm0, %v434_v47, 0.0  ;;  %v441_v54 = vsel %vm406_vm0, %v435_v48, 0.0  ;;  %v2305_v46 = vld [vmem:[%s2438_s3] ss:$0 sm:$0xff] }
  0xd9   :  { %v438_v51 = vadd.f32 %v437_v50, %v436_v49  ;;  %841 = vmatpush.bf16.msra.mxu2 %v1948_v18  ;;  %894 = vmatpush.bf16.msra.mxu3 %v1950_v32  ;;  %v1961_v18 = vld [vmem:[%s2439_s4 + $0x140] sm:$0xff]  ;;  %v1971_v32 = vld [vmem:[%s2439_s4 + $0x190] sm:$0xff] }
  0xda   :  { %736 = vmatpush.bf16.msra.mxu0 %v1940_v19  ;;  %v1953_v19 = vld [vmem:[%s2439_s4 + $0x100] sm:$0xff] }
  0xdb   :  { %v440_v53 = vadd.f32 %v439_v52, %v438_v51 }
  0xdd   :  { %v442_v56 = vadd.f32 %v441_v54, %v440_v53  ;;  %842 = vmatpush.bf16.msra.mxu2 %v1947_v24 }
  0xde   :  { %737 = vmatpush.bf16.msra.mxu0 %v1939_v25  ;;  %v1972_v25 = vld [vmem:[%s2439_s4 + $0x198] sm:$0xff] }
  0xdf   :  { %v443_v57 = vrot.slane %v442_v56, 4 }
  0xe1   :  { %v444_v59 = vadd.f32 %v443_v57, %v442_v56  ;;  %843 = vmatpush.bf16.msra.mxu2 %v1946_v30  ;;  %v1959_v57 = vld [vmem:[%s2439_s4 + $0x130] sm:$0xff] }
  0xe2   :  { %738 = vmatpush.bf16.msra.mxu0 %v1938_v31  ;;  %v1979_v31 = vld [vmem:[%s2439_s4 + $0x1d0] sm:$0xff] }
  0xe3   :  { %v445_v63 = vrot.slane %v444_v59, 2 }
  0xe5   :  { %v446_v1 = vadd.f32 %v445_v63, %v444_v59  ;;  %844 = vmatpush.bf16.msra.mxu2 %v1945_v35 }
  0xe6   :  { %739 = vmatpush.bf16.msra.mxu0 %v1937_v36 }
  0xe7   :  { %v447_v5 = vrot.slane %v446_v1, 1 }
  0xe9   :  { %v448_v7 = vadd.f32 %v447_v5, %v446_v1  ;;  %v1968_v1 = vld [vmem:[%s2439_s4 + $0x178] sm:$0xff]  ;;  %v1963_v5 = vld [vmem:[%s2439_s4 + $0x150] sm:$0xff] }
  0xeb   :  { %v449_v11 = vmul.f32 %v448_v7, %v426_v38  ;;  %v1949_v38 = vld [vmem:[%s2439_s4 + $0xe0] sm:$0xff]  ;;  %v1967_v7 = vld [vmem:[%s2439_s4 + $0x170] sm:$0xff] }
  0xec   :  { %895 = vmatpush.bf16.msra.mxu3 %v1949_v38  ;;  %v1970_v38 = vld [vmem:[%s2439_s4 + $0x188] sm:$0xff] }
  0xed   :  { %v450_v12 = vadd.f32 1e-05, %v449_v11  ;;  %v1962_v11 = vld [vmem:[%s2439_s4 + $0x148] sm:$0xff] }
  0xef   :  { %1991 = vrsqrt.f32 %v450_v12  ;;  %vm457_vm3 = vweird.f32 %v450_v12 }
  0xf5   :  { %v1992_v21 = vpop.eup %1991 }
  0xf6   :  { %v452_v23 = vmul.f32 %v1992_v21, %v450_v12  ;;  %vm458_vm2 = vweird.f32 %v1992_v21  ;;  %v1954_v12 = vld [vmem:[%s2439_s4 + $0x108] sm:$0xff] }
  0xf7   :  { %vm459_vm4 = vmor %vm457_vm3, %vm458_vm2 }
  0xf8   :  { %v453_v28 = vmul.f32 %v1992_v21, %v452_v23  ;;  %v1980_v23 = vld [vmem:[%s2439_s4 + $0x1d8] sm:$0xff] }
  0xfa   :  { %v454_v29 = vmul.f32 0.5, %v453_v28  ;;  %v1974_v28 = vld [vmem:[%s2439_s4 + $0x1a8] sm:$0xff] }
  0xfc   :  { %v455_v33 = vsub.f32 1.5, %v454_v29 }
  0xfe   :  { %v456_v34 = vmul.f32 %v1992_v21, %v455_v33  ;;  %v1983_v33 = vld [vmem:[%s2439_s4 + $0x1f0] sm:$0xff] }
 0x100   :  { %v460_v39 = vsel %vm459_vm4, %v1992_v21, %v456_v34  ;;  %v1973_v34 = vld [vmem:[%s2439_s4 + $0x1a0] sm:$0xff] }
 0x101   :  { %v461_v40 = vmul.f32 %v460_v39, %v2179_v41  ;;  %v462_v45 = vmul.f32 %v460_v39, %v2181_v42  ;;  %v1960_v42 = vld [vmem:[%s2439_s4 + $0x138] sm:$0xff]  ;;  %v463_v53 = vmul.f32 %v460_v39, %v2183_v43  ;;  %v464_v15 = vmul.f32 %v460_v39, %v2185_v44  ;;  %v1965_v44 = vld [vmem:[%s2439_s4 + $0x160] sm:$0xff]  ;;  %v1982_v39 = vld [vmem:[%s2439_s4 + $0x1e8] sm:$0xff] }
 0x103   :  { %v470_v47 = vmul.f32 %v2295_v37, %v462_v45  ;;  %v469_v48 = vmul.f32 %v2295_v37, %v461_v40  ;;  %v471_v58 = vmul.f32 %v2295_v37, %v463_v53  ;;  %v472_v21 = vmul.f32 %v2295_v37, %v464_v15  ;;  %v1978_v37 = vld [vmem:[%s2439_s4 + $0x1c8] sm:$0xff] }
 0x105   :  { %v478_v49 = vadd.f32 %v2305_v46, %v470_v47  ;;  %v477_v50 = vadd.f32 %v2305_v46, %v469_v48  ;;  %v479_v3 = vadd.f32 %v2305_v46, %v471_v58  ;;  %v480_v29 = vadd.f32 %v2305_v46, %v472_v21  ;;  %v1977_v46 = vld [vmem:[%s2439_s4 + $0x1c0] sm:$0xff] }
 0x106   :  { %v1969_v47 = vld [vmem:[%s2439_s4 + $0x180] sm:$0xff] }
 0x107   :  { %v482_v51 = vmul.f32 0.2, %v478_v49  ;;  %v481_v41 = vmul.f32 0.2, %v477_v50  ;;  %v483_v9 = vmul.f32 0.2, %v479_v3 }
 0x108   :  { %v484_v35 = vmul.f32 0.2, %v480_v29  ;;  %v1981_v48 = vld [vmem:[%s2439_s4 + $0x1e0] sm:$0xff] }
 0x109   :  { %v485_v52 = vmax.f32 %v477_v50, %v481_v41  ;;  %v486_v54 = vmax.f32 %v478_v49, %v482_v51  ;;  %v487_v16 = vmax.f32 %v479_v3, %v483_v9 }
 0x10a   :  { %v488_v40 = vmax.f32 %v480_v29, %v484_v35 }
 0x10b   :  { %v489_v55 = vpack.c.bf16 %v485_v52, %v485_v52  ;;  %v490_v60 = vpack.c.bf16 %v486_v54, %v486_v54  ;;  %v491_v22 = vpack.c.bf16 %v487_v16, %v487_v16 }
 0x10c   :  { %v492_v49 = vpack.c.bf16 %v488_v40, %v488_v40 }
 0x10d   :  { %v511_v56 = vunpack.c.l.b16 %v489_v55  ;;  %1530 = vmatmul.msk.bf16.vlgmr.msrb.gmra.mxu1 %vm406_vm0, %v489_v55  ;;  %v756_v4 = vunpack.c.l.b16 %v490_v60  ;;  %v962_v30 = vunpack.c.l.b16 %v491_v22 }
 0x10e   :  { %996 = vmatpush.bf16.msrb.mxu1 %v1960_v42  ;;  %v1168_v41 = vunpack.c.l.b16 %v492_v49 }
 0x10f   :  { %v512_v59 = vpack.c.b16 %v511_v56, %v511_v56  ;;  %v757_v10 = vpack.c.b16 %v756_v4, %v756_v4  ;;  %v963_v36 = vpack.c.b16 %v962_v30, %v962_v30 }
 0x110   :  { %v1169_v52 = vpack.c.b16 %v1168_v41, %v1168_v41 }
 0x111   :  { %v513_v62 = vrot.slane %v512_v59, 1  ;;  %v603_v43 = vrot.slane %v512_v59, 2  ;;  %v654_v63 = vrot.slane %v512_v59, 3  ;;  %v758_v17 = vrot.slane %v757_v10, 1 }
 0x112   :  { %997 = vmatpush.bf16.msrb.mxu1 %v1959_v57  ;;  %v809_v24 = vrot.slane %v757_v10, 2  ;;  %v860_v27 = vrot.slane %v757_v10, 3  ;;  %v964_v45 = vrot.slane %v963_v36, 1  ;;  %v1015_v50 = vrot.slane %v963_v36, 2 }
 0x113   :  { %1513 = vmatmul.msk.bf16.vlgmr.msrb.gmra.mxu0 %vm406_vm0, %v513_v62  ;;  %1555 = vmatmul.msk.bf16.vlgmr.msrb.gmra.mxu2 %vm406_vm0, %v603_v43  ;;  %v1066_v51 = vrot.slane %v963_v36, 3  ;;  %v1170_v42 = vrot.slane %v1169_v52, 1  ;;  %v1221_v53 = vrot.slane %v1169_v52, 2  ;;  %v1272_v54 = vrot.slane %v1169_v52, 3 }
 0x114   :  { %1580 = vmatmul.msk.bf16.vlgmr.msrb.gmra.mxu3 %vm406_vm0, %v654_v63  ;;  %1047 = vmatpush.bf16.msrb.mxu2 %v1964_v61 }
 0x115   :  { %942 = vmatpush.bf16.msrb.mxu0 %v1956_v0  ;;  %1098 = vmatpush.bf16.msrb.mxu3 %v1968_v1 }
 0x116   :  { %998 = vmatpush.bf16.msrb.mxu1 %v1958_v2  ;;  %v11_v2 = vstv %s2440_s5 }
 0x117   :  { %12 = vst [vmem:[#allocation2] sm:$0x1] %v11_v2 }
 0x118   :  { %1048 = vmatpush.bf16.msrb.mxu2 %v1963_v5 }
 0x119   :  { %943 = vmatpush.bf16.msrb.mxu0 %v1955_v6  ;;  %1099 = vmatpush.bf16.msrb.mxu3 %v1967_v7 }
 0x11a   :  { %999 = vmatpush.bf16.msrb.mxu1 %v1957_v8 }
 0x11c   :  { %1049 = vmatpush.bf16.msrb.mxu2 %v1962_v11 }
 0x11d   :  { %1630 = vmatmul.msk.bf16.vlgmr.msra.gmra.mxu1 %vm406_vm0, %v758_v17  ;;  %944 = vmatpush.bf16.msrb.mxu0 %v1954_v12 }
 0x11e   :  { %1100 = vmatpush.bf16.msrb.mxu3 %v1966_v13  ;;  %1202 = vmatpush.bf16.msra.mxu1 %v1976_v14 }
 0x120   :  { %1050 = vmatpush.bf16.msrb.mxu2 %v1961_v18 }
 0x121   :  { %945 = vmatpush.bf16.msrb.mxu0 %v1953_v19 }
 0x122   :  { %1101 = vmatpush.bf16.msrb.mxu3 %v1965_v44  ;;  %1203 = vmatpush.bf16.msra.mxu1 %v1975_v20 }
 0x123   :  { %1605 = vmatmul.msk.bf16.vlgmr.msra.gmra.mxu0 %vm406_vm0, %v490_v60  ;;  %1655 = vmatmul.msk.bf16.vlgmr.msra.gmra.mxu2 %vm406_vm0, %v809_v24 }
 0x124   :  { %1680 = vmatmul.msk.bf16.vlgmr.msra.gmra.mxu3 %vm406_vm0, %v860_v27  ;;  %1253 = vmatpush.bf16.msra.mxu2 %v1980_v23 }
 0x125   :  { %1148 = vmatpush.bf16.msra.mxu0 %v1972_v25 }
 0x126   :  { %1304 = vmatpush.bf16.msra.mxu3 %v1984_v26  ;;  %1204 = vmatpush.bf16.msra.mxu1 %v1974_v28 }
 0x128   :  { %1254 = vmatpush.bf16.msra.mxu2 %v1979_v31 }
 0x129   :  { %1149 = vmatpush.bf16.msra.mxu0 %v1971_v32 }
 0x12a   :  { %1305 = vmatpush.bf16.msra.mxu3 %v1983_v33  ;;  %1205 = vmatpush.bf16.msra.mxu1 %v1973_v34  ;;  %v1988_v33 = vld [vmem:[#allocation2] ss:$0 sm:$0xff] }
 0x12c   :  { %1255 = vmatpush.bf16.msra.mxu2 %v1978_v37 }
 0x12d   :  { %1730 = vmatmul.msk.bf16.vlgmr.msrb.gmra.mxu1 %vm406_vm0, %v964_v45  ;;  %1150 = vmatpush.bf16.msra.mxu0 %v1970_v38 }
 0x12e   :  { %1306 = vmatpush.bf16.msra.mxu3 %v1982_v39 }
 0x130   :  { %1256 = vmatpush.bf16.msra.mxu2 %v1977_v46 }
 0x131   :  { %1151 = vmatpush.bf16.msra.mxu0 %v1969_v47 }
 0x132   :  { %1307 = vmatpush.bf16.msra.mxu3 %v1981_v48 }
 0x133   :  { %1705 = vmatmul.msk.bf16.vlgmr.msrb.gmra.mxu0 %vm406_vm0, %v491_v22  ;;  %1755 = vmatmul.msk.bf16.vlgmr.msrb.gmra.mxu2 %vm406_vm0, %v1015_v50 }
 0x134   :  { %1780 = vmatmul.msk.bf16.vlgmr.msrb.gmra.mxu3 %vm406_vm0, %v1066_v51 }
 0x13d   :  { %1830 = vmatmul.msk.bf16.vlgmr.msra.gmra.mxu1 %vm406_vm0, %v1170_v42 }
 0x143   :  { %1805 = vmatmul.msk.bf16.vlgmr.msra.gmra.mxu0 %vm406_vm0, %v492_v49  ;;  %1855 = vmatmul.msk.bf16.vlgmr.msra.gmra.mxu2 %vm406_vm0, %v1221_v53 }
 0x144   :  { %1880 = vmatmul.msk.bf16.vlgmr.msra.gmra.mxu3 %vm406_vm0, %v1272_v54 }
 0x18a   :  { %v590_v55 = vpop.f32.mrf.mxu1 }
 0x190   :  { %v550_v56 = vpop.f32.mrf.mxu0 }
 0x191   :  { %v591_v0 = vadd.f32 %v590_v55, %v550_v56 }
 0x192   :  { %v592_v57 = vpop.f32.mrf.mxu1 }
 0x196   :  { %v640_v58 = vpop.f32.mrf.mxu2 }
 0x197   :  { %v691_v59 = vpop.f32.mrf.mxu3  ;;  %v644_v3 = vadd.f32 %v640_v58, %v591_v0 }
 0x198   :  { %v552_v60 = vpop.f32.mrf.mxu0 }
 0x199   :  { %v695_v5 = vadd.f32 %v691_v59, %v644_v3 }
 0x19a   :  { %v795_v61 = vpop.f32.mrf.mxu1 }
 0x19e   :  { %v642_v62 = vpop.f32.mrf.mxu2 }
 0x19f   :  { %v693_v43 = vpop.f32.mrf.mxu3 }
 0x1a0   :  { %v741_v63 = vpop.f32.mrf.mxu0 }
 0x1a1   :  { %v745_v8 = vadd.f32 %v741_v63, %v695_v5 }
 0x1a2   :  { %v797_v1 = vpop.f32.mrf.mxu1 }
 0x1a3   :  { %v799_v10 = vadd.f32 %v795_v61, %v745_v8 }
 0x1a6   :  { %v846_v4 = vpop.f32.mrf.mxu2 }
 0x1a7   :  { %v897_v6 = vpop.f32.mrf.mxu3  ;;  %v850_v12 = vadd.f32 %v846_v4, %v799_v10 }
 0x1a8   :  { %v743_v7 = vpop.f32.mrf.mxu0 }
 0x1a9   :  { %v901_v16 = vadd.f32 %v897_v6, %v850_v12 }
 0x1aa   :  { %v1001_v9 = vpop.f32.mrf.mxu1 }
 0x1ae   :  { %v848_v11 = vpop.f32.mrf.mxu2 }
 0x1af   :  { %v899_v13 = vpop.f32.mrf.mxu3 }
 0x1b0   :  { %v947_v14 = vpop.f32.mrf.mxu0 }
 0x1b1   :  { %v951_v17 = vadd.f32 %v947_v14, %v901_v16 }
 0x1b2   :  { %v1003_v15 = vpop.f32.mrf.mxu1 }
 0x1b3   :  { %v1005_v20 = vadd.f32 %v1001_v9, %v951_v17 }
 0x1b6   :  { %v1052_v18 = vpop.f32.mrf.mxu2 }
 0x1b7   :  { %v1103_v19 = vpop.f32.mrf.mxu3  ;;  %v1056_v22 = vadd.f32 %v1052_v18, %v1005_v20 }
 0x1b8   :  { %v949_v44 = vpop.f32.mrf.mxu0 }
 0x1b9   :  { %v1107_v24 = vadd.f32 %v1103_v19, %v1056_v22 }
 0x1ba   :  { %v1207_v21 = vpop.f32.mrf.mxu1 }
 0x1be   :  { %v1054_v23 = vpop.f32.mrf.mxu2 }
 0x1bf   :  { %v1105_v25 = vpop.f32.mrf.mxu3 }
 0x1c0   :  { %v1153_v26 = vpop.f32.mrf.mxu0 }
 0x1c1   :  { %v1157_v27 = vadd.f32 %v1153_v26, %v1107_v24 }
 0x1c2   :  { %v1209_v28 = vpop.f32.mrf.mxu1 }
 0x1c3   :  { %v1211_v29 = vadd.f32 %v1207_v21, %v1157_v27 }
 0x1c6   :  { %v1258_v30 = vpop.f32.mrf.mxu2 }
 0x1c7   :  { %v1262_v31 = vadd.f32 %v1258_v30, %v1211_v29  ;;  %v1309_v32 = vpop.f32.mrf.mxu3 }
 0x1c8   :  { %v1155_v34 = vpop.f32.mrf.mxu0 }
 0x1c9   :  { %v1313_v35 = vadd.f32 %v1309_v32, %v1262_v31 }
 0x1cb   :  { %v1318_v36 = vadd.f32 %v1988_v33, %v1313_v35 }
 0x1cd   :  { %v1319_v37 = vmul.f32 0.5, %v1318_v36 }
 0x1ce   :  { %v1260_v38 = vpop.f32.mrf.mxu2 }
 0x1cf   :  { %1993 = vtanh.f32 %v1319_v37  ;;  %v1311_v39 = vpop.f32.mrf.mxu3 }
 0x1d5   :  { %v1994_v40 = vpop.eup %1993 }
 0x1d6   :  { %v1321_v45 = vmul.f32 0.5, %v1994_v40 }
 0x1d8   :  { %v1322_v46 = vadd.f32 0.5, %v1321_v45 }
 0x1da   :  { %1324 = vst.msk [vmem:[%s2441_s6] sm:$0x3] %vm1323_vm5, %v1322_v46 }

</bundles_post_ra>
